<compile_context>
chip_gen: v7x
topology: tpu7x:2x2x1
jax: 0.10.0
libtpu: 0.0.40
codegen_flags: <defaults>
</compile_context>

<pallas_src>
import jax
import jax.numpy as jnp
from jax.experimental import pallas as pl
from jax.experimental.pallas import tpu as pltpu


def _round_up(x, m):
    return ((x + m - 1) // m) * m


# ----------------------------------------------------------------------------
# Pallas kernel: MLPND -> BasicLayer -> MaxPool over the neighbor (g_k) axis
# ----------------------------------------------------------------------------
def _make_encoder_kernel(K: int, Dp: int):
    def kernel(x_ref, w0t_ref, b0_ref, wf_ref, b1a_ref, w1b_ref, b12_ref, o_ref):
        # x_ref: (K, Cin, tile_m) bf16  -- centers (tile_m) on the lane dim.
        # Weights bf16 (BN scale folded), biases f32 (BN shift folded).
        tm = o_ref.shape[0]
        d_hid = w0t_ref.shape[0]

        # Hoist weight loads and bias broadcasts out of the unrolled K loop
        # (JAX does not CSE broadcast_in_dim inside loops).
        w0t = w0t_ref[...]                                   # (d_hid, Cin)
        wf = wf_ref[...]                                     # (d_hid, 2*Dp)
        w1b = w1b_ref[...]                                   # (Dp, Dp)
        b0 = jnp.broadcast_to(b0_ref[...], (d_hid, tm))
        b1a = jnp.broadcast_to(b1a_ref[...], (tm, Dp))
        b12 = jnp.broadcast_to(b12_ref[...], (tm, Dp))

        # NOTE: contraction depths (Cin, d_hid) are far below the MXU depth;
        # that is inherent to the layer sizes (review item 9) -- the wide w1b
        # dot dominates the MXU work.
        acc = None
        for k in range(K):  # static unroll; MaxPool becomes a running max.
            xk = x_ref[k]                                    # (Cin, tm) bf16
            # MLPND: proj (BN scale folded) -> +shift -> ReLU, lane-dense.
            ht = jnp.dot(w0t, xk, preferred_element_type=jnp.float32)
            ht = jnp.maximum(ht + b0, 0.0)                   # (d_hid, tm) f32
            # Small transpose (d_hid x tm) so the wide dots are row-major with
            # the channel dim lane-dense.
            h = jnp.transpose(ht).astype(jnp.bfloat16)       # (tm, d_hid)
            # Fused [mlp1 first proj | mlp2 proj] in one MXU pass.
            z = jnp.dot(h, wf, preferred_element_type=jnp.float32)  # (tm, 2Dp)
            y1 = jnp.maximum(z[:, :Dp] + b1a, 0.0).astype(jnp.bfloat16)
            y1 = jnp.dot(y1, w1b, preferred_element_type=jnp.float32)
            # BasicLayer residual: relu(mlp1(h) + mlp2(h)); b12 = b1b + b2.
            y = jnp.maximum(y1 + z[:, Dp:] + b12, 0.0)       # (tm, Dp) f32
            acc = y if acc is None else jnp.maximum(acc, y)
        o_ref[...] = acc                                     # f32 (module dtype)

    return kernel


# ----------------------------------------------------------------------------
# Tiling / VMEM budgeting (generation aware)
# ----------------------------------------------------------------------------
def _pick_vmem_limit():
    cap = 64 * 1024 * 1024  # conservative fallback (v7x-sized)
    try:
        cap = int(pltpu.get_tpu_info().vmem_capacity_bytes)
    except Exception:
        pass
    # ~48 MiB on v7x (64 MiB physical), ~96-100 MiB on v5e/v6e (128 MiB).
    return int(min(cap * 3 // 4, 100 * 1024 * 1024))


def _choose_tiling(M, K, Cin, d_hid, Dp, vmem_limit):
    """Pick tile_m (centers per grid step) from a VMEM budget; multiple of 128."""
    per_m = (4 * K * Cin            # x bf16, double-buffered
             + 8 * Dp               # f32 output, double-buffered
             + 4 * 2 * Dp           # z f32
             + 4 * Dp + 2 * Dp      # y f32 + y1 bf16
             + 4 * Dp               # running-max accumulator f32
             + 2 * 4 * Dp           # hoisted bias broadcasts (b1a, b12)
             + 12 * d_hid)          # ht f32 + h bf16 + b0 broadcast
    budget = max(vmem_limit // 2, 4 * 1024 * 1024)
    t = budget // max(per_m, 1)
    t = max(128, min(4096, (t // 128) * 128))
    t = min(t, _round_up(M, 128))   # don't over-pad tiny problems
    grid = pl.cdiv(M, t)
    # Prefer an even grid for v7x's two TensorCores, but never shrink tiles
    # below 1024 centers for it (free on 1-TC v5e/v6e, harmless elsewhere).
    if grid > 1 and grid % 2 == 1:
        t2 = _round_up(pl.cdiv(M, grid + 1), 128)
        g2 = pl.cdiv(M, t2)
        if t2 >= 1024 and g2 % 2 == 0:
            t, grid = t2, g2
    return t, grid, grid * t


# ----------------------------------------------------------------------------
# Parameter packing: fold BN, fuse the two h-consuming matmuls, pad to lanes
# ----------------------------------------------------------------------------
def pack_params(params, d_out):
    Dp = ((d_out + 127) // 128) * 128
    pad_cols = lambda a: jnp.pad(a, ((0, 0), (0, Dp - d_out)))

    w0t = (params["w0"] * params["s0"]).T.astype(jnp.bfloat16)        # (d_hid, d_in)
    w1a = pad_cols(params["w1a"] * params["s1a"])                     # (d_hid, Dp)
    w2 = pad_cols(params["w2"] * params["s2"])                        # (d_hid, Dp)
    wf = jnp.concatenate([w1a, w2], axis=1).astype(jnp.bfloat16)      # (d_hid, 2*Dp)
    w1b = jnp.pad(params["w1b"] * params["s1b"],
                  ((0, Dp - d_out), (0, Dp - d_out))).astype(jnp.bfloat16)

    packed = {
        "w0t": w0t,
        "b0c": params["b0"].reshape(-1, 1).astype(jnp.float32),       # (d_hid, 1)
        "wf": wf,
        "b1a": pad_cols(params["b1a"]).astype(jnp.float32),           # (1, Dp)
        "w1b": w1b,                                                   # (Dp, Dp)
        "b12": pad_cols(params["b1b"] + params["b2"]).astype(jnp.float32),
    }
    return packed, Dp


# ----------------------------------------------------------------------------
# Pallas wrapper for the hot path
# ----------------------------------------------------------------------------
def pointnet_mlp_pool(x, packed, d_out, *, tile_m=None):
    """x: (M, K, Cin) -> (M, d_out) float32."""
    M, K, Cin = x.shape
    Dp = packed["w1b"].shape[0]
    d_hid = packed["w0t"].shape[0]
    vmem_limit = _pick_vmem_limit()

    if tile_m is None:
        tile_m, grid, M_pad = _choose_tiling(M, K, Cin, d_hid, Dp, vmem_limit)
    else:
        tile_m = _round_up(max(128, min(int(tile_m), 4096)), 128)
        tile_m = min(tile_m, _round_up(M, 128))
        grid = pl.cdiv(M, tile_m)
        M_pad = grid * tile_m

    x = x.astype(jnp.bfloat16)
    if M_pad != M:
        # Pad whole centers only: padded columns never share a K-group with a
        # valid center, their (garbage) pooled rows are sliced off below.
        x = jnp.pad(x, ((0, M_pad - M), (0, 0), (0, 0)))
    # Neighbor-outermost, channel-first, center-minor layout: every kernel
    # load/store is lane-dense (minor dim tile_m is a multiple of 128).
    x_t = jnp.transpose(x, (1, 2, 0))                        # (K, Cin, M_pad)

    ws = [packed[n] for n in ("w0t", "b0c", "wf", "b1a", "w1b", "b12")]

    def _const_spec(a):
        # Grid-invariant operands (tiny: ~tens of KiB total).
        return pl.BlockSpec(a.shape, lambda i, _nd=a.ndim: (0,) * _nd)

    out = pl.pallas_call(
        _make_encoder_kernel(K, Dp),
        out_shape=jax.ShapeDtypeStruct((M_pad, Dp), jnp.float32),
        grid_spec=pltpu.PrefetchScalarGridSpec(
            num_scalar_prefetch=0,
            grid=(grid,),
            in_specs=[pl.BlockSpec((K, Cin, tile_m), lambda i: (0, 0, i))]
                     + [_const_spec(a) for a in ws],
            out_specs=pl.BlockSpec((tile_m, Dp), lambda i: (i, 0)),
        ),
        compiler_params=pltpu.CompilerParams(
            dimension_semantics=("parallel",),
            vmem_limit_bytes=vmem_limit),
    )(x_t, *ws)
    return out[:M, :d_out]


# ----------------------------------------------------------------------------
# Pure-JAX mirrors used as correctness checks
# ----------------------------------------------------------------------------
def _mlp_pool_reference(x, packed, d_out):
    """Same bf16 casts as the kernel."""
    M, K, Cin = x.shape
    Dp = packed["w1b"].shape[0]
    xb = x.reshape(M * K, Cin).astype(jnp.bfloat16)
    h = jnp.dot(xb, packed["w0t"].T, preferred_element_type=jnp.float32)
    h = jnp.maximum(h + packed["b0c"].reshape(1, -1), 0.0).astype(jnp.bfloat16)
    z = jnp.dot(h, packed["wf"], preferred_element_type=jnp.float32)
    y1 = jnp.maximum(z[:, :Dp] + packed["b1a"], 0.0).astype(jnp.bfloat16)
    y1 = jnp.dot(y1, packed["w1b"], preferred_element_type=jnp.float32)
    y = jnp.maximum(y1 + z[:, Dp:] + packed["b12"], 0.0)
    return jnp.max(y.reshape(M, K, Dp), axis=1)[:, :d_out]


def _mlp_pool_reference_f32(x, params, d_out):
    """All-f32 reference (module semantics), for a loose drift bound."""
    M, K, Cin = x.shape
    xb = x.reshape(M * K, Cin).astype(jnp.float32)
    h = jnp.maximum(xb @ (params["w0"] * params["s0"]) + params["b0"], 0.0)
    a = jnp.maximum(h @ (params["w1a"] * params["s1a"]) + params["b1a"], 0.0)
    m1 = a @ (params["w1b"] * params["s1b"]) + params["b1b"]
    m2 = h @ (params["w2"] * params["s2"]) + params["b2"]
    y = jnp.maximum(m1 + m2, 0.0)
    return jnp.max(y.reshape(M, K, d_out), axis=1)


# ----------------------------------------------------------------------------
# Geometric glue ops (data-dependent / sequential) in plain JAX
# ----------------------------------------------------------------------------
def furthest_point_sampling(p, n_samples):
    """p: (B, N, 3) -> indices (B, n_samples) int32 (deterministic, starts at 0)."""
    def single(pts):
        N = pts.shape[0]

        def body(i, carry):
            idxs, dists, last = carry
            idxs = idxs.at[i].set(last)
            d = jnp.sum((pts - pts[last]) ** 2, axis=-1)
            dists = jnp.minimum(dists, d)
            nxt = jnp.argmax(dists).astype(jnp.int32)
            return idxs, dists, nxt

        idxs0 = jnp.zeros((n_samples,), jnp.int32)
        dists0 = jnp.full((N,), 1e10, jnp.float32)
        idxs, _, _ = jax.lax.fori_loop(0, n_samples, body,
                                       (idxs0, dists0, jnp.int32(0)))
        return idxs

    return jax.vmap(single)(p)


def ball_query(p, p_ce, k, r):
    """p: (B,N,3), p_ce: (B,M,3) -> (B,M,k) int32 indices within radius r.
    Groups with fewer than k neighbors are padded with the first found index
    (pointnet2 semantics); fully-empty groups fall back to index 0."""
    N = p.shape[1]
    d2 = jnp.sum((p_ce[:, :, None, :] - p[:, None, :, :]) ** 2, axis=-1)
    within = d2 <= r * r
    arange = jnp.arange(N, dtype=jnp.int32)
    key = jnp.where(within, arange, N)
    sorted_idx = jnp.sort(key, axis=-1)[..., :k]
    first = sorted_idx[..., :1]
    idx = jnp.where(sorted_idx >= N, first, sorted_idx)
    idx = jnp.where(idx >= N, 0, idx)
    return idx.astype(jnp.int32)


def gather_query(p, idx):
    """p: (B,N,C), idx: (B,M) -> (B,M,C)."""
    return jnp.take_along_axis(p, idx[..., None], axis=1)


def gather_group(f, idx):
    """f: (B,N,C), idx: (B,M,K) -> (B,M,K,C)."""
    B, M, K = idx.shape
    g = jnp.take_along_axis(f, idx.reshape(B, M * K)[..., None], axis=1)
    return g.reshape(B, M, K, f.shape[-1])


def _build_group_features(f, p, g_n, g_k, g_r, dtype=jnp.bfloat16):
    u_ce = furthest_point_sampling(p, g_n)                  # (B, g_n)
    p_ce = gather_query(p, u_ce)                            # (B, g_n, 3)
    u_ne = ball_query(p, p_ce, g_k, g_r)                    # (B, g_n, g_k)
    p_ne = gather_group(p, u_ne) - p_ce[:, :, None, :]      # (B, g_n, g_k, 3)
    f_ne = gather_group(f, u_ne)                            # (B, g_n, g_k, Cf)
    # Concat + cast fuse in XLA: the K-duplicated tensor is written once, in
    # the kernel's compute dtype (no separate f32->bf16 pass).
    x = jnp.concatenate([f_ne, p_ne], axis=-1).astype(dtype)
    B = p.shape[0]
    return x.reshape(B * g_n, g_k, x.shape[-1]), p_ce


# ----------------------------------------------------------------------------
# Parameter init (deterministic, synthetic; BN in inference mode)
# ----------------------------------------------------------------------------
def _fold_bn(key, c, eps=1e-5):
    k1, k2, k3, k4 = jax.random.split(key, 4)
    gamma = jax.random.uniform(k1, (1, c), jnp.float32, 0.5, 1.5)
    beta = jax.random.normal(k2, (1, c), jnp.float32) * 0.1
    mean = jax.random.normal(k3, (1, c), jnp.float32) * 0.1
    var = jax.random.uniform(k4, (1, c), jnp.float32, 0.5, 1.5)
    scale = gamma / jnp.sqrt(var + eps)
    shift = beta - mean * scale
    return scale, shift


def init_params(key, d_in, d_hid, d_out):
    ks = jax.random.split(key, 8)
    params = {}
    params["w0"] = jax.random.normal(ks[0], (d_in, d_hid), jnp.float32) * 0.2
    params["s0"], params["b0"] = _fold_bn(ks[1], d_hid)
    params["w1a"] = jax.random.normal(ks[2], (d_hid, d_out), jnp.float32) * 0.2
    params["s1a"], params["b1a"] = _fold_bn(ks[3], d_out)
    params["w1b"] = jax.random.normal(ks[4], (d_out, d_out), jnp.float32) * 0.2
    params["s1b"], params["b1b"] = _fold_bn(ks[5], d_out)
    params["w2"] = jax.random.normal(ks[6], (d_hid, d_out), jnp.float32) * 0.2
    params["s2"], params["b2"] = _fold_bn(ks[7], d_out)
    return params


# ----------------------------------------------------------------------------
# Full encoder forward
# ----------------------------------------------------------------------------
def pointnet_v11_encoder(f, p, g_n, g_k, g_r, params, *, tile_m=None):
    # TODO(synk): fuse the neighbor gather into the Pallas kernel (scalar-prefetch
    # u_ne + in-kernel gather / manual DMA from f,p kept in pl.ANY) to remove the
    # K-fold-duplicated grouped tensor from HBM entirely.
    B = p.shape[0]
    d_out = params["w1b"].shape[-1]
    x, p_ce = _build_group_features(f, p, g_n, g_k, g_r)     # (B*g_n, g_k, Cin) bf16
    packed, _ = pack_params(params, d_out)
    f_ce = pointnet_mlp_pool(x, packed, d_out, tile_m=tile_m)  # (B*g_n, d_out) f32
    return f_ce.reshape(B, g_n, d_out), p_ce                 # f_ce channel-last


if __name__ == "__main__":
    key = jax.random.PRNGKey(0)
    kf, kp, kw = jax.random.split(key, 3)

    # small shapes consistent with the module
    B, N = 2, 64
    d_in_feat = 5
    g_n, g_k, g_r = 16, 8, 0.5
    d_in, d_hid, d_out = d_in_feat + 3, 16, 32

    f = jax.random.normal(kf, (B, N, d_in_feat), jnp.float32)
    p = jax.random.uniform(kp, (B, N, 3), jnp.float32)
    params = init_params(kw, d_in, d_hid, d_out)

    f_ce, p_ce = pointnet_v11_encoder(f, p, g_n, g_k, g_r, params)
    jax.block_until_ready((f_ce, p_ce))
    assert f_ce.shape == (B, g_n, d_out)
    assert p_ce.shape == (B, g_n, 3)

    # 1) tight check vs a pure-JAX mirror with identical bf16 casts
    packed, _ = pack_params(params, d_out)
    x_bf, _ = _build_group_features(f, p, g_n, g_k, g_r)
    ref_bf = _mlp_pool_reference(x_bf, packed, d_out).reshape(B, g_n, d_out)
    err = float(jnp.max(jnp.abs(f_ce - ref_bf)))
    assert err < 1e-2, f"kernel vs bf16 mirror: max abs err {err}"

    # 2) loose drift bound vs an all-f32 reference (bounds bf16 operand error)
    x_f32, _ = _build_group_features(f, p, g_n, g_k, g_r, dtype=jnp.float32)
    ref32 = _mlp_pool_reference_f32(x_f32, params, d_out).reshape(B, g_n, d_out)
    drift = float(jnp.max(jnp.abs(f_ce - ref32)))
    tol = 3e-2 * float(jnp.max(jnp.abs(ref32))) + 1e-1
    assert drift < tol, f"bf16 drift {drift} exceeds bound {tol}"

    print("KERNEL_OK")
</pallas_src>

<mosaic_0001>
module attributes {stable_mosaic.version = 11 : i64} {
  func.func @kernel(%arg0: i32, %arg1: memref<8x8x128xbf16, #tpu.memory_space<vmem>>, %arg2: memref<16x8xbf16, #tpu.memory_space<vmem>>, %arg3: memref<16x1xf32, #tpu.memory_space<vmem>>, %arg4: memref<16x256xbf16, #tpu.memory_space<vmem>>, %arg5: memref<1x128xf32, #tpu.memory_space<vmem>>, %arg6: memref<128x128xbf16, #tpu.memory_space<vmem>>, %arg7: memref<1x128xf32, #tpu.memory_space<vmem>>, %arg8: memref<128x128xf32, #tpu.memory_space<vmem>>) attributes {dimension_semantics = [#tpu.dimension_semantics<parallel>], iteration_bounds = array<i64: 1>, scalar_prefetch = 0 : i64, scratch_operands = 0 : i64, tpu.core_type = #tpu.core_type<tc>, window_params = [{transform_indices = @transform_0, window_bounds = array<i64: 8, 8, 128>}, {pipeline_mode = #tpu.pipeline_mode<synchronous>, transform_indices = @transform_1, window_bounds = array<i64: 16, 8>}, {pipeline_mode = #tpu.pipeline_mode<synchronous>, transform_indices = @transform_2, window_bounds = array<i64: 16, 1>}, {pipeline_mode = #tpu.pipeline_mode<synchronous>, transform_indices = @transform_3, window_bounds = array<i64: 16, 256>}, {pipeline_mode = #tpu.pipeline_mode<synchronous>, transform_indices = @transform_4, window_bounds = array<i64: 1, 128>}, {pipeline_mode = #tpu.pipeline_mode<synchronous>, transform_indices = @transform_5, window_bounds = array<i64: 128, 128>}, {pipeline_mode = #tpu.pipeline_mode<synchronous>, transform_indices = @transform_6, window_bounds = array<i64: 1, 128>}, {transform_indices = @transform_7, window_bounds = array<i64: 128, 128>}]} {
    %c0 = arith.constant 0 : index
    %c0_0 = arith.constant 0 : index
    %0 = vector.load %arg2[%c0, %c0_0] : memref<16x8xbf16, #tpu.memory_space<vmem>>, vector<16x8xbf16>
    %c0_1 = arith.constant 0 : index
    %c0_2 = arith.constant 0 : index
    %1 = vector.load %arg4[%c0_1, %c0_2] : memref<16x256xbf16, #tpu.memory_space<vmem>>, vector<16x256xbf16>
    %c0_3 = arith.constant 0 : index
    %c0_4 = arith.constant 0 : index
    %2 = vector.load %arg6[%c0_3, %c0_4] : memref<128x128xbf16, #tpu.memory_space<vmem>>, vector<128x128xbf16>
    %c0_5 = arith.constant 0 : index
    %c0_6 = arith.constant 0 : index
    %3 = vector.load %arg3[%c0_5, %c0_6] : memref<16x1xf32, #tpu.memory_space<vmem>>, vector<16x1xf32>
    %4 = vector.shape_cast %3 : vector<16x1xf32> to vector<16x1xf32>
    %5 = vector.broadcast %4 : vector<16x1xf32> to vector<16x128xf32>
    %c0_7 = arith.constant 0 : index
    %c0_8 = arith.constant 0 : index
    %6 = vector.load %arg5[%c0_7, %c0_8] : memref<1x128xf32, #tpu.memory_space<vmem>>, vector<1x128xf32>
    %7 = vector.shape_cast %6 : vector<1x128xf32> to vector<1x128xf32>
    %8 = vector.broadcast %7 : vector<1x128xf32> to vector<128x128xf32>
    %c0_9 = arith.constant 0 : index
    %c0_10 = arith.constant 0 : index
    %9 = vector.load %arg7[%c0_9, %c0_10] : memref<1x128xf32, #tpu.memory_space<vmem>>, vector<1x128xf32>
    %10 = vector.shape_cast %9 : vector<1x128xf32> to vector<1x128xf32>
    %11 = vector.broadcast %10 : vector<1x128xf32> to vector<128x128xf32>
    %c0_11 = arith.constant 0 : index
    %c0_12 = arith.constant 0 : index
    %c0_13 = arith.constant 0 : index
    %12 = vector.load %arg1[%c0_11, %c0_12, %c0_13] : memref<8x8x128xbf16, #tpu.memory_space<vmem>>, vector<1x8x128xbf16>
    %13 = vector.shape_cast %12 : vector<1x8x128xbf16> to vector<8x128xbf16>
    %cst = arith.constant dense<0.000000e+00> : vector<16x128xf32>
    %14 = tpu.matmul %0, %13, %cst {dimension_numbers = #tpu.dot_dimension_numbers<[1], [0], [0], [1], [0, 0, 1, 1], [], []>} : vector<16x8xbf16>, vector<8x128xbf16>, vector<16x128xf32> -> vector<16x128xf32>
    %15 = arith.addf %14, %5 : vector<16x128xf32>
    %cst_14 = arith.constant 0.000000e+00 : f32
    %16 = vector.broadcast %cst_14 : f32 to vector<16x128xf32>
    %17 = arith.maximumf %15, %16 : vector<16x128xf32>
    %18 = tpu.transpose %17, [1, 0] : vector<16x128xf32> -> vector<128x16xf32>
    %19 = arith.truncf %18 : vector<128x16xf32> to vector<128x16xbf16>
    %cst_15 = arith.constant dense<0.000000e+00> : vector<128x256xf32>
    %20 = tpu.matmul %19, %1, %cst_15 {dimension_numbers = #tpu.dot_dimension_numbers<[1], [0], [0], [1], [0, 0, 1, 1], [], []>} : vector<128x16xbf16>, vector<16x256xbf16>, vector<128x256xf32> -> vector<128x256xf32>
    %21 = vector.extract_strided_slice %20 {offsets = [0, 0], sizes = [128, 128], strides = [1, 1]} : vector<128x256xf32> to vector<128x128xf32>
    %22 = arith.addf %21, %8 : vector<128x128xf32>
    %cst_16 = arith.constant 0.000000e+00 : f32
    %23 = vector.broadcast %cst_16 : f32 to vector<128x128xf32>
    %24 = arith.maximumf %22, %23 : vector<128x128xf32>
    %25 = arith.truncf %24 : vector<128x128xf32> to vector<128x128xbf16>
    %cst_17 = arith.constant dense<0.000000e+00> : vector<128x128xf32>
    %26 = tpu.matmul %25, %2, %cst_17 {dimension_numbers = #tpu.dot_dimension_numbers<[1], [0], [0], [1], [0, 0, 1, 1], [], []>} : vector<128x128xbf16>, vector<128x128xbf16>, vector<128x128xf32> -> vector<128x128xf32>
    %27 = vector.extract_strided_slice %20 {offsets = [0, 128], sizes = [128, 128], strides = [1, 1]} : vector<128x256xf32> to vector<128x128xf32>
    %28 = arith.addf %26, %27 : vector<128x128xf32>
    %29 = arith.addf %28, %11 : vector<128x128xf32>
    %cst_18 = arith.constant 0.000000e+00 : f32
    %30 = vector.broadcast %cst_18 : f32 to vector<128x128xf32>
    %31 = arith.maximumf %29, %30 : vector<128x128xf32>
    %c1 = arith.constant 1 : index
    %c0_19 = arith.constant 0 : index
    %c0_20 = arith.constant 0 : index
    %32 = vector.load %arg1[%c1, %c0_19, %c0_20] : memref<8x8x128xbf16, #tpu.memory_space<vmem>>, vector<1x8x128xbf16>
    %33 = vector.shape_cast %32 : vector<1x8x128xbf16> to vector<8x128xbf16>
    %cst_21 = arith.constant dense<0.000000e+00> : vector<16x128xf32>
    %34 = tpu.matmul %0, %33, %cst_21 {dimension_numbers = #tpu.dot_dimension_numbers<[1], [0], [0], [1], [0, 0, 1, 1], [], []>} : vector<16x8xbf16>, vector<8x128xbf16>, vector<16x128xf32> -> vector<16x128xf32>
    %35 = arith.addf %34, %5 : vector<16x128xf32>
    %cst_22 = arith.constant 0.000000e+00 : f32
    %36 = vector.broadcast %cst_22 : f32 to vector<16x128xf32>
    %37 = arith.maximumf %35, %36 : vector<16x128xf32>
    %38 = tpu.transpose %37, [1, 0] : vector<16x128xf32> -> vector<128x16xf32>
    %39 = arith.truncf %38 : vector<128x16xf32> to vector<128x16xbf16>
    %cst_23 = arith.constant dense<0.000000e+00> : vector<128x256xf32>
    %40 = tpu.matmul %39, %1, %cst_23 {dimension_numbers = #tpu.dot_dimension_numbers<[1], [0], [0], [1], [0, 0, 1, 1], [], []>} : vector<128x16xbf16>, vector<16x256xbf16>, vector<128x256xf32> -> vector<128x256xf32>
    %41 = vector.extract_strided_slice %40 {offsets = [0, 0], sizes = [128, 128], strides = [1, 1]} : vector<128x256xf32> to vector<128x128xf32>
    %42 = arith.addf %41, %8 : vector<128x128xf32>
    %cst_24 = arith.constant 0.000000e+00 : f32
    %43 = vector.broadcast %cst_24 : f32 to vector<128x128xf32>
    %44 = arith.maximumf %42, %43 : vector<128x128xf32>
    %45 = arith.truncf %44 : vector<128x128xf32> to vector<128x128xbf16>
    %cst_25 = arith.constant dense<0.000000e+00> : vector<128x128xf32>
    %46 = tpu.matmul %45, %2, %cst_25 {dimension_numbers = #tpu.dot_dimension_numbers<[1], [0], [0], [1], [0, 0, 1, 1], [], []>} : vector<128x128xbf16>, vector<128x128xbf16>, vector<128x128xf32> -> vector<128x128xf32>
    %47 = vector.extract_strided_slice %40 {offsets = [0, 128], sizes = [128, 128], strides = [1, 1]} : vector<128x256xf32> to vector<128x128xf32>
    %48 = arith.addf %46, %47 : vector<128x128xf32>
    %49 = arith.addf %48, %11 : vector<128x128xf32>
    %cst_26 = arith.constant 0.000000e+00 : f32
    %50 = vector.broadcast %cst_26 : f32 to vector<128x128xf32>
    %51 = arith.maximumf %49, %50 : vector<128x128xf32>
    %52 = arith.maximumf %31, %51 : vector<128x128xf32>
    %c2 = arith.constant 2 : index
    %c0_27 = arith.constant 0 : index
    %c0_28 = arith.constant 0 : index
    %53 = vector.load %arg1[%c2, %c0_27, %c0_28] : memref<8x8x128xbf16, #tpu.memory_space<vmem>>, vector<1x8x128xbf16>
    %54 = vector.shape_cast %53 : vector<1x8x128xbf16> to vector<8x128xbf16>
    %cst_29 = arith.constant dense<0.000000e+00> : vector<16x128xf32>
    %55 = tpu.matmul %0, %54, %cst_29 {dimension_numbers = #tpu.dot_dimension_numbers<[1], [0], [0], [1], [0, 0, 1, 1], [], []>} : vector<16x8xbf16>, vector<8x128xbf16>, vector<16x128xf32> -> vector<16x128xf32>
    %56 = arith.addf %55, %5 : vector<16x128xf32>
    %cst_30 = arith.constant 0.000000e+00 : f32
    %57 = vector.broadcast %cst_30 : f32 to vector<16x128xf32>
    %58 = arith.maximumf %56, %57 : vector<16x128xf32>
    %59 = tpu.transpose %58, [1, 0] : vector<16x128xf32> -> vector<128x16xf32>
    %60 = arith.truncf %59 : vector<128x16xf32> to vector<128x16xbf16>
    %cst_31 = arith.constant dense<0.000000e+00> : vector<128x256xf32>
    %61 = tpu.matmul %60, %1, %cst_31 {dimension_numbers = #tpu.dot_dimension_numbers<[1], [0], [0], [1], [0, 0, 1, 1], [], []>} : vector<128x16xbf16>, vector<16x256xbf16>, vector<128x256xf32> -> vector<128x256xf32>
    %62 = vector.extract_strided_slice %61 {offsets = [0, 0], sizes = [128, 128], strides = [1, 1]} : vector<128x256xf32> to vector<128x128xf32>
    %63 = arith.addf %62, %8 : vector<128x128xf32>
    %cst_32 = arith.constant 0.000000e+00 : f32
    %64 = vector.broadcast %cst_32 : f32 to vector<128x128xf32>
    %65 = arith.maximumf %63, %64 : vector<128x128xf32>
    %66 = arith.truncf %65 : vector<128x128xf32> to vector<128x128xbf16>
    %cst_33 = arith.constant dense<0.000000e+00> : vector<128x128xf32>
    %67 = tpu.matmul %66, %2, %cst_33 {dimension_numbers = #tpu.dot_dimension_numbers<[1], [0], [0], [1], [0, 0, 1, 1], [], []>} : vector<128x128xbf16>, vector<128x128xbf16>, vector<128x128xf32> -> vector<128x128xf32>
    %68 = vector.extract_strided_slice %61 {offsets = [0, 128], sizes = [128, 128], strides = [1, 1]} : vector<128x256xf32> to vector<128x128xf32>
    %69 = arith.addf %67, %68 : vector<128x128xf32>
    %70 = arith.addf %69, %11 : vector<128x128xf32>
    %cst_34 = arith.constant 0.000000e+00 : f32
    %71 = vector.broadcast %cst_34 : f32 to vector<128x128xf32>
    %72 = arith.maximumf %70, %71 : vector<128x128xf32>
    %73 = arith.maximumf %52, %72 : vector<128x128xf32>
    %c3 = arith.constant 3 : index
    %c0_35 = arith.constant 0 : index
    %c0_36 = arith.constant 0 : index
    %74 = vector.load %arg1[%c3, %c0_35, %c0_36] : memref<8x8x128xbf16, #tpu.memory_space<vmem>>, vector<1x8x128xbf16>
    %75 = vector.shape_cast %74 : vector<1x8x128xbf16> to vector<8x128xbf16>
    %cst_37 = arith.constant dense<0.000000e+00> : vector<16x128xf32>
    %76 = tpu.matmul %0, %75, %cst_37 {dimension_numbers = #tpu.dot_dimension_numbers<[1], [0], [0], [1], [0, 0, 1, 1], [], []>} : vector<16x8xbf16>, vector<8x128xbf16>, vector<16x128xf32> -> vector<16x128xf32>
    %77 = arith.addf %76, %5 : vector<16x128xf32>
    %cst_38 = arith.constant 0.000000e+00 : f32
    %78 = vector.broadcast %cst_38 : f32 to vector<16x128xf32>
    %79 = arith.maximumf %77, %78 : vector<16x128xf32>
    %80 = tpu.transpose %79, [1, 0] : vector<16x128xf32> -> vector<128x16xf32>
    %81 = arith.truncf %80 : vector<128x16xf32> to vector<128x16xbf16>
    %cst_39 = arith.constant dense<0.000000e+00> : vector<128x256xf32>
    %82 = tpu.matmul %81, %1, %cst_39 {dimension_numbers = #tpu.dot_dimension_numbers<[1], [0], [0], [1], [0, 0, 1, 1], [], []>} : vector<128x16xbf16>, vector<16x256xbf16>, vector<128x256xf32> -> vector<128x256xf32>
    %83 = vector.extract_strided_slice %82 {offsets = [0, 0], sizes = [128, 128], strides = [1, 1]} : vector<128x256xf32> to vector<128x128xf32>
    %84 = arith.addf %83, %8 : vector<128x128xf32>
    %cst_40 = arith.constant 0.000000e+00 : f32
    %85 = vector.broadcast %cst_40 : f32 to vector<128x128xf32>
    %86 = arith.maximumf %84, %85 : vector<128x128xf32>
    %87 = arith.truncf %86 : vector<128x128xf32> to vector<128x128xbf16>
    %cst_41 = arith.constant dense<0.000000e+00> : vector<128x128xf32>
    %88 = tpu.matmul %87, %2, %cst_41 {dimension_numbers = #tpu.dot_dimension_numbers<[1], [0], [0], [1], [0, 0, 1, 1], [], []>} : vector<128x128xbf16>, vector<128x128xbf16>, vector<128x128xf32> -> vector<128x128xf32>
    %89 = vector.extract_strided_slice %82 {offsets = [0, 128], sizes = [128, 128], strides = [1, 1]} : vector<128x256xf32> to vector<128x128xf32>
    %90 = arith.addf %88, %89 : vector<128x128xf32>
    %91 = arith.addf %90, %11 : vector<128x128xf32>
    %cst_42 = arith.constant 0.000000e+00 : f32
    %92 = vector.broadcast %cst_42 : f32 to vector<128x128xf32>
    %93 = arith.maximumf %91, %92 : vector<128x128xf32>
    %94 = arith.maximumf %73, %93 : vector<128x128xf32>
    %c4 = arith.constant 4 : index
    %c0_43 = arith.constant 0 : index
    %c0_44 = arith.constant 0 : index
    %95 = vector.load %arg1[%c4, %c0_43, %c0_44] : memref<8x8x128xbf16, #tpu.memory_space<vmem>>, vector<1x8x128xbf16>
    %96 = vector.shape_cast %95 : vector<1x8x128xbf16> to vector<8x128xbf16>
    %cst_45 = arith.constant dense<0.000000e+00> : vector<16x128xf32>
    %97 = tpu.matmul %0, %96, %cst_45 {dimension_numbers = #tpu.dot_dimension_numbers<[1], [0], [0], [1], [0, 0, 1, 1], [], []>} : vector<16x8xbf16>, vector<8x128xbf16>, vector<16x128xf32> -> vector<16x128xf32>
    %98 = arith.addf %97, %5 : vector<16x128xf32>
    %cst_46 = arith.constant 0.000000e+00 : f32
    %99 = vector.broadcast %cst_46 : f32 to vector<16x128xf32>
    %100 = arith.maximumf %98, %99 : vector<16x128xf32>
    %101 = tpu.transpose %100, [1, 0] : vector<16x128xf32> -> vector<128x16xf32>
    %102 = arith.truncf %101 : vector<128x16xf32> to vector<128x16xbf16>
    %cst_47 = arith.constant dense<0.000000e+00> : vector<128x256xf32>
    %103 = tpu.matmul %102, %1, %cst_47 {dimension_numbers = #tpu.dot_dimension_numbers<[1], [0], [0], [1], [0, 0, 1, 1], [], []>} : vector<128x16xbf16>, vector<16x256xbf16>, vector<128x256xf32> -> vector<128x256xf32>
    %104 = vector.extract_strided_slice %103 {offsets = [0, 0], sizes = [128, 128], strides = [1, 1]} : vector<128x256xf32> to vector<128x128xf32>
    %105 = arith.addf %104, %8 : vector<128x128xf32>
    %cst_48 = arith.constant 0.000000e+00 : f32
    %106 = vector.broadcast %cst_48 : f32 to vector<128x128xf32>
    %107 = arith.maximumf %105, %106 : vector<128x128xf32>
    %108 = arith.truncf %107 : vector<128x128xf32> to vector<128x128xbf16>
    %cst_49 = arith.constant dense<0.000000e+00> : vector<128x128xf32>
    %109 = tpu.matmul %108, %2, %cst_49 {dimension_numbers = #tpu.dot_dimension_numbers<[1], [0], [0], [1], [0, 0, 1, 1], [], []>} : vector<128x128xbf16>, vector<128x128xbf16>, vector<128x128xf32> -> vector<128x128xf32>
    %110 = vector.extract_strided_slice %103 {offsets = [0, 128], sizes = [128, 128], strides = [1, 1]} : vector<128x256xf32> to vector<128x128xf32>
    %111 = arith.addf %109, %110 : vector<128x128xf32>
    %112 = arith.addf %111, %11 : vector<128x128xf32>
    %cst_50 = arith.constant 0.000000e+00 : f32
    %113 = vector.broadcast %cst_50 : f32 to vector<128x128xf32>
    %114 = arith.maximumf %112, %113 : vector<128x128xf32>
    %115 = arith.maximumf %94, %114 : vector<128x128xf32>
    %c5 = arith.constant 5 : index
    %c0_51 = arith.constant 0 : index
    %c0_52 = arith.constant 0 : index
    %116 = vector.load %arg1[%c5, %c0_51, %c0_52] : memref<8x8x128xbf16, #tpu.memory_space<vmem>>, vector<1x8x128xbf16>
    %117 = vector.shape_cast %116 : vector<1x8x128xbf16> to vector<8x128xbf16>
    %cst_53 = arith.constant dense<0.000000e+00> : vector<16x128xf32>
    %118 = tpu.matmul %0, %117, %cst_53 {dimension_numbers = #tpu.dot_dimension_numbers<[1], [0], [0], [1], [0, 0, 1, 1], [], []>} : vector<16x8xbf16>, vector<8x128xbf16>, vector<16x128xf32> -> vector<16x128xf32>
    %119 = arith.addf %118, %5 : vector<16x128xf32>
    %cst_54 = arith.constant 0.000000e+00 : f32
    %120 = vector.broadcast %cst_54 : f32 to vector<16x128xf32>
    %121 = arith.maximumf %119, %120 : vector<16x128xf32>
    %122 = tpu.transpose %121, [1, 0] : vector<16x128xf32> -> vector<128x16xf32>
    %123 = arith.truncf %122 : vector<128x16xf32> to vector<128x16xbf16>
    %cst_55 = arith.constant dense<0.000000e+00> : vector<128x256xf32>
    %124 = tpu.matmul %123, %1, %cst_55 {dimension_numbers = #tpu.dot_dimension_numbers<[1], [0], [0], [1], [0, 0, 1, 1], [], []>} : vector<128x16xbf16>, vector<16x256xbf16>, vector<128x256xf32> -> vector<128x256xf32>
    %125 = vector.extract_strided_slice %124 {offsets = [0, 0], sizes = [128, 128], strides = [1, 1]} : vector<128x256xf32> to vector<128x128xf32>
    %126 = arith.addf %125, %8 : vector<128x128xf32>
    %cst_56 = arith.constant 0.000000e+00 : f32
    %127 = vector.broadcast %cst_56 : f32 to vector<128x128xf32>
    %128 = arith.maximumf %126, %127 : vector<128x128xf32>
    %129 = arith.truncf %128 : vector<128x128xf32> to vector<128x128xbf16>
    %cst_57 = arith.constant dense<0.000000e+00> : vector<128x128xf32>
    %130 = tpu.matmul %129, %2, %cst_57 {dimension_numbers = #tpu.dot_dimension_numbers<[1], [0], [0], [1], [0, 0, 1, 1], [], []>} : vector<128x128xbf16>, vector<128x128xbf16>, vector<128x128xf32> -> vector<128x128xf32>
    %131 = vector.extract_strided_slice %124 {offsets = [0, 128], sizes = [128, 128], strides = [1, 1]} : vector<128x256xf32> to vector<128x128xf32>
    %132 = arith.addf %130, %131 : vector<128x128xf32>
    %133 = arith.addf %132, %11 : vector<128x128xf32>
    %cst_58 = arith.constant 0.000000e+00 : f32
    %134 = vector.broadcast %cst_58 : f32 to vector<128x128xf32>
    %135 = arith.maximumf %133, %134 : vector<128x128xf32>
    %136 = arith.maximumf %115, %135 : vector<128x128xf32>
    %c6 = arith.constant 6 : index
    %c0_59 = arith.constant 0 : index
    %c0_60 = arith.constant 0 : index
    %137 = vector.load %arg1[%c6, %c0_59, %c0_60] : memref<8x8x128xbf16, #tpu.memory_space<vmem>>, vector<1x8x128xbf16>
    %138 = vector.shape_cast %137 : vector<1x8x128xbf16> to vector<8x128xbf16>
    %cst_61 = arith.constant dense<0.000000e+00> : vector<16x128xf32>
    %139 = tpu.matmul %0, %138, %cst_61 {dimension_numbers = #tpu.dot_dimension_numbers<[1], [0], [0], [1], [0, 0, 1, 1], [], []>} : vector<16x8xbf16>, vector<8x128xbf16>, vector<16x128xf32> -> vector<16x128xf32>
    %140 = arith.addf %139, %5 : vector<16x128xf32>
    %cst_62 = arith.constant 0.000000e+00 : f32
    %141 = vector.broadcast %cst_62 : f32 to vector<16x128xf32>
    %142 = arith.maximumf %140, %141 : vector<16x128xf32>
    %143 = tpu.transpose %142, [1, 0] : vector<16x128xf32> -> vector<128x16xf32>
    %144 = arith.truncf %143 : vector<128x16xf32> to vector<128x16xbf16>
    %cst_63 = arith.constant dense<0.000000e+00> : vector<128x256xf32>
    %145 = tpu.matmul %144, %1, %cst_63 {dimension_numbers = #tpu.dot_dimension_numbers<[1], [0], [0], [1], [0, 0, 1, 1], [], []>} : vector<128x16xbf16>, vector<16x256xbf16>, vector<128x256xf32> -> vector<128x256xf32>
    %146 = vector.extract_strided_slice %145 {offsets = [0, 0], sizes = [128, 128], strides = [1, 1]} : vector<128x256xf32> to vector<128x128xf32>
    %147 = arith.addf %146, %8 : vector<128x128xf32>
    %cst_64 = arith.constant 0.000000e+00 : f32
    %148 = vector.broadcast %cst_64 : f32 to vector<128x128xf32>
    %149 = arith.maximumf %147, %148 : vector<128x128xf32>
    %150 = arith.truncf %149 : vector<128x128xf32> to vector<128x128xbf16>
    %cst_65 = arith.constant dense<0.000000e+00> : vector<128x128xf32>
    %151 = tpu.matmul %150, %2, %cst_65 {dimension_numbers = #tpu.dot_dimension_numbers<[1], [0], [0], [1], [0, 0, 1, 1], [], []>} : vector<128x128xbf16>, vector<128x128xbf16>, vector<128x128xf32> -> vector<128x128xf32>
    %152 = vector.extract_strided_slice %145 {offsets = [0, 128], sizes = [128, 128], strides = [1, 1]} : vector<128x256xf32> to vector<128x128xf32>
    %153 = arith.addf %151, %152 : vector<128x128xf32>
    %154 = arith.addf %153, %11 : vector<128x128xf32>
    %cst_66 = arith.constant 0.000000e+00 : f32
    %155 = vector.broadcast %cst_66 : f32 to vector<128x128xf32>
    %156 = arith.maximumf %154, %155 : vector<128x128xf32>
    %157 = arith.maximumf %136, %156 : vector<128x128xf32>
    %c7 = arith.constant 7 : index
    %c0_67 = arith.constant 0 : index
    %c0_68 = arith.constant 0 : index
    %158 = vector.load %arg1[%c7, %c0_67, %c0_68] : memref<8x8x128xbf16, #tpu.memory_space<vmem>>, vector<1x8x128xbf16>
    %159 = vector.shape_cast %158 : vector<1x8x128xbf16> to vector<8x128xbf16>
    %cst_69 = arith.constant dense<0.000000e+00> : vector<16x128xf32>
    %160 = tpu.matmul %0, %159, %cst_69 {dimension_numbers = #tpu.dot_dimension_numbers<[1], [0], [0], [1], [0, 0, 1, 1], [], []>} : vector<16x8xbf16>, vector<8x128xbf16>, vector<16x128xf32> -> vector<16x128xf32>
    %161 = arith.addf %160, %5 : vector<16x128xf32>
    %cst_70 = arith.constant 0.000000e+00 : f32
    %162 = vector.broadcast %cst_70 : f32 to vector<16x128xf32>
    %163 = arith.maximumf %161, %162 : vector<16x128xf32>
    %164 = tpu.transpose %163, [1, 0] : vector<16x128xf32> -> vector<128x16xf32>
    %165 = arith.truncf %164 : vector<128x16xf32> to vector<128x16xbf16>
    %cst_71 = arith.constant dense<0.000000e+00> : vector<128x256xf32>
    %166 = tpu.matmul %165, %1, %cst_71 {dimension_numbers = #tpu.dot_dimension_numbers<[1], [0], [0], [1], [0, 0, 1, 1], [], []>} : vector<128x16xbf16>, vector<16x256xbf16>, vector<128x256xf32> -> vector<128x256xf32>
    %167 = vector.extract_strided_slice %166 {offsets = [0, 0], sizes = [128, 128], strides = [1, 1]} : vector<128x256xf32> to vector<128x128xf32>
    %168 = arith.addf %167, %8 : vector<128x128xf32>
    %cst_72 = arith.constant 0.000000e+00 : f32
    %169 = vector.broadcast %cst_72 : f32 to vector<128x128xf32>
    %170 = arith.maximumf %168, %169 : vector<128x128xf32>
    %171 = arith.truncf %170 : vector<128x128xf32> to vector<128x128xbf16>
    %cst_73 = arith.constant dense<0.000000e+00> : vector<128x128xf32>
    %172 = tpu.matmul %171, %2, %cst_73 {dimension_numbers = #tpu.dot_dimension_numbers<[1], [0], [0], [1], [0, 0, 1, 1], [], []>} : vector<128x128xbf16>, vector<128x128xbf16>, vector<128x128xf32> -> vector<128x128xf32>
    %173 = vector.extract_strided_slice %166 {offsets = [0, 128], sizes = [128, 128], strides = [1, 1]} : vector<128x256xf32> to vector<128x128xf32>
    %174 = arith.addf %172, %173 : vector<128x128xf32>
    %175 = arith.addf %174, %11 : vector<128x128xf32>
    %cst_74 = arith.constant 0.000000e+00 : f32
    %176 = vector.broadcast %cst_74 : f32 to vector<128x128xf32>
    %177 = arith.maximumf %175, %176 : vector<128x128xf32>
    %178 = arith.maximumf %157, %177 : vector<128x128xf32>
    %c0_75 = arith.constant 0 : index
    %c0_76 = arith.constant 0 : index
    %179 = vector.load %arg8[%c0_75, %c0_76] : memref<128x128xf32, #tpu.memory_space<vmem>>, vector<128x128xf32>
    tpu.vector_store %arg8[%c0_75, %c0_76], %178 {strides = array<i32>} : memref<128x128xf32, #tpu.memory_space<vmem>>, vector<128x128xf32>,
    return
  }
  func.func @transform_0(%arg0: i32) -> (i32, i32, i32) {
    %c0_i32 = arith.constant 0 : i32
    %c0_i32_0 = arith.constant 0 : i32
    %c0_i32_1 = arith.constant 0 : i32
    return %c0_i32, %c0_i32_0, %arg0 : i32, i32, i32
  }
  func.func @transform_1(%arg0: i32) -> (i32, i32) {
    %c0_i32 = arith.constant 0 : i32
    %c0_i32_0 = arith.constant 0 : i32
    %c0_i32_1 = arith.constant 0 : i32
    return %c0_i32, %c0_i32_0 : i32, i32
  }
  func.func @transform_2(%arg0: i32) -> (i32, i32) {
    %c0_i32 = arith.constant 0 : i32
    %c0_i32_0 = arith.constant 0 : i32
    %c0_i32_1 = arith.constant 0 : i32
    return %c0_i32, %c0_i32_0 : i32, i32
  }
  func.func @transform_3(%arg0: i32) -> (i32, i32) {
    %c0_i32 = arith.constant 0 : i32
    %c0_i32_0 = arith.constant 0 : i32
    %c0_i32_1 = arith.constant 0 : i32
    return %c0_i32, %c0_i32_0 : i32, i32
  }
  func.func @transform_4(%arg0: i32) -> (i32, i32) {
    %c0_i32 = arith.constant 0 : i32
    %c0_i32_0 = arith.constant 0 : i32
    %c0_i32_1 = arith.constant 0 : i32
    return %c0_i32, %c0_i32_0 : i32, i32
  }
  func.func @transform_5(%arg0: i32) -> (i32, i32) {
    %c0_i32 = arith.constant 0 : i32
    %c0_i32_0 = arith.constant 0 : i32
    %c0_i32_1 = arith.constant 0 : i32
    return %c0_i32, %c0_i32_0 : i32, i32
  }
  func.func @transform_6(%arg0: i32) -> (i32, i32) {
    %c0_i32 = arith.constant 0 : i32
    %c0_i32_0 = arith.constant 0 : i32
    %c0_i32_1 = arith.constant 0 : i32
    return %c0_i32, %c0_i32_0 : i32, i32
  }
  func.func @transform_7(%arg0: i32) -> (i32, i32) {
    %c0_i32 = arith.constant 0 : i32
    %c0_i32_0 = arith.constant 0 : i32
    return %arg0, %c0_i32 : i32, i32
  }
}

</mosaic_0001>

<bundles_post_ra>
// kernel: tpu_custom_call.1
= control target key start
LH: loop header
LB: loop body
LE: loop exit
PB: predicated region body
PF: predicated region fallthrough
CT: control target
= control target key end

     0   :  { %12 = vsyncpa [#allocation3], 0  ;;  %s5637_s0 = inlined_call_operand.hbm [shape: bf16[8,8,128], index: 0, kind: input, shape index: {}]   ;;  %s5638_s1 = inlined_call_operand.vmem [shape: bf16[16,8], index: 1, kind: input, shape index: {}]   ;;  %s5639_s2 = inlined_call_operand.vmem [shape: f32[16,1], index: 2, kind: input, shape index: {}]   ;;  %s5640_s3 = inlined_call_operand.vmem [shape: bf16[16,256], index: 3, kind: input, shape index: {}]   ;;  %s5641_s4 = inlined_call_operand.vmem [shape: f32[1,128], index: 4, kind: input, shape index: {}]   ;;  %s5642_s5 = inlined_call_operand.hbm [shape: bf16[128,128], index: 5, kind: input, shape index: {}]   ;;  %s5643_s6 = inlined_call_operand.vmem [shape: f32[1,128], index: 6, kind: input, shape index: {}]   ;;  %s5644_s7 = inlined_call_operand.hbm [shape: f32[128,128], index: 7, kind: output, shape index: {}]  }
   0x1   :  { %13 = vsyncpa [#allocation6], 0 }
   0x2   :  { %14 = vsyncpa [#allocation4], 0  ;;  %s4122_s24 = smov [#allocation2]   ;;  %s4050_s28 = scalar_lea.hbm %s5637_s0, 512 }
   0x3   :  { %s20_s25 = sshll.u32 %s4122_s24, 4  ;;  %p4051_p0 = scmp.ne.s32.totalorder %s5637_s0, %s4050_s28  ;;  %s21_s25 = int_to_ptr.vmem [resolvable:$true] %s20_s25 }
   0x4   :  { %p4054_p1 = scmp.lt.u32.totalorder %s4050_s28, %s5637_s0 }
   0x6   :  { %p4056_p2 = pnand %p4054_p1, %p4051_p0 }
   0x8   :  { %4059 = shalt.err (!%p4056_p2)
}
   0x9   :  { %s4060_s10 = scalar_lea.vmem %s21_s25, 512  ;;  %p4065_p4 = scmp.lt.s32.totalorder %s21_s25, %s21_s25 }
   0xa   :  { %p4061_p3 = scmp.ne.s32.totalorder %s21_s25, %s4060_s10  ;;  %p4066_p5 = scmp.lt.s32.totalorder %s4060_s10, %s4060_s10 }
   0xc   :  { %p4067_p6 = por %p4066_p5, %p4065_p4 }
   0xe   :  { %p4068_p7 = pnand %p4067_p6, %p4061_p3 }
  0x10   :  { %4071 = shalt.err (!%p4068_p7)
}
  0x11   :  { %s4123_s11 = smov 64   ;;  %s4124_s12 = smov 4  }
  0x12   :  { %26 = dma.hbm_to_vmem [thread:$0]  %s5637_s0, 512, %s21_s25, [#allocation3], %s4123_s11, %s4123_s11, %s4124_s12  }
  0x13   :  { %s4125_s15 = smov [#allocation5]   ;;  %s4072_s19 = scalar_lea.hbm %s5642_s5, 1024 }
  0x14   :  { %s40_s16 = sshll.u32 %s4125_s15, 4  ;;  %p4073_p8 = scmp.ne.s32.totalorder %s5642_s5, %s4072_s19  ;;  %s41_s16 = int_to_ptr.vmem [resolvable:$true] %s40_s16 }
  0x15   :  { %p4076_p9 = scmp.lt.u32.totalorder %s4072_s19, %s5642_s5 }
  0x17   :  { %p4078_p10 = pnand %p4076_p9, %p4073_p8 }
  0x19   :  { %4081 = shalt.err (!%p4078_p10)
}
  0x1a   :  { %s4082_s24 = scalar_lea.vmem %s41_s16, 1024  ;;  %p4087_p12 = scmp.lt.s32.totalorder %s41_s16, %s41_s16 }
  0x1b   :  { %p4083_p11 = scmp.ne.s32.totalorder %s41_s16, %s4082_s24  ;;  %p4088_p13 = scmp.lt.s32.totalorder %s4082_s24, %s4082_s24 }
  0x1d   :  { %p4089_p0 = por %p4088_p13, %p4087_p12 }
  0x1f   :  { %p4090_p1 = pnand %p4089_p0, %p4083_p11 }
  0x21   :  { %4093 = shalt.err (!%p4090_p1)
}
  0x22   :  { %46 = dma.hbm_to_vmem [thread:$0]  %s5642_s5, 1024, %s41_s16, [#allocation6], %s4123_s11, %s4123_s11, %s4124_s12  }
  0x23   :  { %4116 = dma.done.wait [#allocation3], 512  }
  0x24   :  { %4117 = vsyncadd [#allocation3], 4294966784 }
  0x25   :  { %4118 = dma.done.wait [#allocation6], 1024  }
  0x26   :  { %4119 = vsyncadd [#allocation6], 4294966272  ;;  %v4126_v0 = vmov 0.0   ;;  %vm4127_vm0 = vmmov 0   ;;  %v4128_v1 = vmov 0   ;;  %vm112_vm1 = vcmask 1043456  }
  0x27   :  { %3697 = vmatprep.subr.bf16.mxu0 %v4126_v0  ;;  %3699 = vmatprep.mubr.msk.bf16.mxu0 %vm4127_vm0, %v4126_v0  ;;  %v102_v2 = vld [vmem:[#allocation2] sm:$0xf]  ;;  %v77_v6 = vld [vmem:[%s5639_s2 + $0x8] sm:$0xff]  ;;  %vm108_vm2 = vcmask 64512   ;;  %v4241_v21 = vld [vmem:[#allocation5 + $0x10] sm:$0xff]   ;;  %vm209_vm3 = vcmask 130048  }
  0x28   :  { %4011 = vset.pattern.permute.xlu0 %v4128_v1  ;;  %266 = vmatprep.mubr.bf16.mxu1 %v4128_v1  ;;  %v114_v3 = vsel %vm112_vm1, %v102_v2, 0  ;;  %v4205_v4 = vld [vmem:[%s5638_s1] sm:$0xff]   ;;  %v4236_v20 = vld [vmem:[#allocation5 + $0x8] sm:$0xff]   ;;  %v4245_v22 = vld [vmem:[#allocation5 + $0x18] sm:$0xff]  }
  0x29   :  { %v76_v5 = vld [vmem:[%s5639_s2] sm:$0xff]  ;;  %3698 = vmatpush3.bf16.msra.mxu0 %v114_v3  ;;  %v4272_v48 = vld [vmem:[#allocation5 + $0x28] sm:$0xff]   ;;  %v4276_v49 = vld [vmem:[#allocation5 + $0x30] sm:$0xff]  }
  0x2a   :  { %80 = vperm.xlu0 %4011, %v76_v5   ;;  %v4224_v16 = vld [vmem:[%s5640_s3 + $0x4] ss:$8 sps:$4 sm:$0xff]   ;;  %v4229_v17 = vld [vmem:[%s5640_s3] ss:$8 sps:$4 sm:$0xff]   ;;  %v4280_v50 = vld [vmem:[#allocation5 + $0x38] sm:$0xff]  }
  0x2b   :  { %234 = vmatprep.subr.bf16.mxu1 %v4224_v16  ;;  %v4234_v19 = vld [vmem:[#allocation5] sm:$0xff]  }
  0x2c   :  { %3700 = vmatmul.mubr.msk.bf16.vlgmr.msra.gmra.mrb[0].mxu0 %vm108_vm2, %v4205_v4  ;;  %235 = vmatpush1.bf16.msra.mxu1 %v4229_v17  ;;  %v4268_v47 = vld [vmem:[#allocation5 + $0x20] sm:$0xff]  }
  0x2d   :  { %676 = vmatprep.subr.bf16.mxu1 %v4224_v16  ;;  %3703 = vmatprep.subr.bf16.mxu0 %v4234_v19  ;;  %v4288_v51 = vld [vmem:[%s5641_s4] ss:$0 sm:$0xff] }
  0x2e   :  { %85 = vperm.xlu0 %4011, %v77_v6   ;;  %3704 = vmatpush3.bf16.msra.mxu0 %v4234_v19  ;;  %v565_v6 = vld [vmem:[#allocation2 + $0x4] sm:$0xf] }
  0x2f   :  { %3705 = vmatprep.subr.bf16.mxu0 %v4236_v20 }
  0x32   :  { %3706 = vmatpush3.bf16.msra.mxu0 %v4236_v20 }
  0x33   :  { %3707 = vmatprep.subr.bf16.mxu0 %v4241_v21 }
  0x36   :  { %3708 = vmatpush3.bf16.msra.mxu0 %v4241_v21 }
  0x37   :  { %3709 = vmatprep.subr.bf16.mxu0 %v4245_v22 }
  0x3a   :  { %3710 = vmatpush3.bf16.msra.mxu0 %v4245_v22 }
  0x3b   :  { %3711 = vmatprep.subr.bf16.mxu0 %v4268_v47 }
  0x3e   :  { %3712 = vmatpush3.bf16.msra.mxu0 %v4268_v47 }
  0x3f   :  { %3713 = vmatprep.subr.bf16.mxu0 %v4272_v48 }
  0x42   :  { %3714 = vmatpush3.bf16.msra.mxu0 %v4272_v48 }
  0x43   :  { %3715 = vmatprep.subr.bf16.mxu0 %v4276_v49 }
  0x46   :  { %3716 = vmatpush3.bf16.msra.mxu0 %v4276_v49 }
  0x47   :  { %3717 = vmatprep.subr.bf16.mxu0 %v4280_v50 }
  0x4a   :  { %3718 = vmatpush3.bf16.msra.mxu0 %v4280_v50 }
  0x4b   :  { %3735 = vmatprep.subr.bf16.mxu0 %v4126_v0 }
  0xa9   :  { %v4215_v7 = vpop.permute.xlu0 %80 }
  0xad   :  { %v4218_v11 = vpop.permute.xlu0 %85 }
  0xff   :  { %v150_v8 = vpop.f32.mrb[0].mxu0 }
 0x100   :  { %v3701_v9 = vpop.f32.mrb[1].mxu0  ;;  %v151_v10 = vadd.f32 %v150_v8, %v4215_v7 }
 0x101   :  { %v153_v12 = vpop.f32.mrb[2].mxu0 }
 0x102   :  { %v154_v13 = vadd.f32 %v153_v12, %v4218_v11  ;;  %v3702_v14 = vpop.f32.mrb[3].mxu0  ;;  %v157_v15 = vmax.f32 %v151_v10, 0.0  ;;  %v567_v12 = vsel %vm112_vm1, %v565_v6, 0 }
 0x104   :  { %159 = vxpose.xlu1.b32.start [1/2] (short) %v157_v15, 128  ;;  %v158_v18 = vmax.f32 %v154_v13, 0.0 }
 0x108   :  { %160 = vxpose.xlu1.b32.end [2/2] (short) %v158_v18, 128 }
 0x184   :  { %v175_v23 = vpop.trf.xlu1 }
 0x188   :  { %v176_v24 = vpop.trf.xlu1 }
 0x189   :  { %v191_v25 = vpack.c.bf16 %v176_v24, %v175_v23 }
 0x18b   :  { %3474 = vmatmul.mubr.msk.bf16.vlgmr.msra.gmra.mrb[0].mxu1 %vm209_vm3, %v191_v25 }
 0x18c   :  { %v177_v26 = vpop.trf.xlu1  ;;  %276 = vmatprep.mubr.bf16.mxu1 %v4128_v1  ;;  %677 = vmatpush1.bf16.msra.mxu1 %v4229_v17 }
 0x18d   :  { %1086 = vmatprep.subr.bf16.mxu1 %v4224_v16 }
 0x190   :  { %v178_v27 = vpop.trf.xlu1 }
 0x191   :  { %v192_v28 = vpack.c.bf16 %v178_v27, %v177_v26 }
 0x193   :  { %3475 = vmatmul.mubr.msk.bf16.gmra.mrb[4].mxu1 %vm209_vm3, %v192_v28 }
 0x194   :  { %v179_v29 = vpop.trf.xlu1  ;;  %286 = vmatprep.mubr.bf16.mxu1 %v4128_v1 }
 0x198   :  { %v180_v30 = vpop.trf.xlu1 }
 0x199   :  { %v193_v31 = vpack.c.bf16 %v180_v30, %v179_v29 }
 0x19b   :  { %3476 = vmatmul.mubr.msk.bf16.gmra.mrb[8].mxu1 %vm209_vm3, %v193_v31 }
 0x19c   :  { %v181_v32 = vpop.trf.xlu1  ;;  %296 = vmatprep.mubr.bf16.mxu1 %v4128_v1 }
 0x1a0   :  { %v182_v33 = vpop.trf.xlu1 }
 0x1a1   :  { %v194_v34 = vpack.c.bf16 %v182_v33, %v181_v32 }
 0x1a3   :  { %3477 = vmatmul.mubr.msk.bf16.gmra.mrb[12].mxu1 %vm209_vm3, %v194_v34 }
 0x1a4   :  { %v183_v35 = vpop.trf.xlu1  ;;  %306 = vmatprep.mubr.bf16.mxu1 %v4128_v1 }
 0x1a8   :  { %v184_v36 = vpop.trf.xlu1 }
 0x1a9   :  { %v195_v37 = vpack.c.bf16 %v184_v36, %v183_v35 }
 0x1ab   :  { %3478 = vmatmul.mubr.msk.bf16.gmra.mrb[16].mxu1 %vm209_vm3, %v195_v37 }
 0x1ac   :  { %v185_v38 = vpop.trf.xlu1  ;;  %316 = vmatprep.mubr.bf16.mxu1 %v4128_v1 }
 0x1b0   :  { %v186_v39 = vpop.trf.xlu1 }
 0x1b1   :  { %v196_v40 = vpack.c.bf16 %v186_v39, %v185_v38 }
 0x1b3   :  { %3479 = vmatmul.mubr.msk.bf16.gmra.mrb[20].mxu1 %vm209_vm3, %v196_v40 }
 0x1b4   :  { %v187_v41 = vpop.trf.xlu1  ;;  %326 = vmatprep.mubr.bf16.mxu1 %v4128_v1 }
 0x1b8   :  { %v188_v42 = vpop.trf.xlu1 }
 0x1b9   :  { %v197_v43 = vpack.c.bf16 %v188_v42, %v187_v41 }
 0x1bb   :  { %3480 = vmatmul.mubr.msk.bf16.gmra.mrb[24].mxu1 %vm209_vm3, %v197_v43 }
 0x1bc   :  { %v189_v44 = vpop.trf.xlu1  ;;  %336 = vmatprep.mubr.bf16.mxu1 %v4128_v1 }
 0x1c0   :  { %v190_v45 = vpop.trf.xlu1 }
 0x1c1   :  { %v198_v46 = vpack.c.bf16 %v190_v45, %v189_v44 }
 0x1c3   :  { %3481 = vmatmul.mubr.msk.bf16.gmra.mrb[28].mxu1 %vm209_vm3, %v198_v46 }
 0x1c4   :  { %708 = vmatprep.mubr.bf16.mxu1 %v4128_v1 }
 0x25e   :  { %v268_v52 = vpop.f32.mrb[0].mxu1 }
 0x25f   :  { %v347_v53 = vadd.f32 %v4288_v51, %v268_v52  ;;  %v4291_v54 = vpop.f32.mrb[1].mxu1 }
 0x260   :  { %v272_v55 = vpop.f32.mrb[2].mxu1 }
 0x261   :  { %v348_v56 = vadd.f32 %v4288_v51, %v272_v55  ;;  %v4294_v57 = vpop.f32.mrb[3].mxu1  ;;  %v363_v58 = vmax.f32 %v347_v53, 0.0 }
 0x263   :  { %v364_v59 = vmax.f32 %v348_v56, 0.0 }
 0x265   :  { %v379_v60 = vpack.c.bf16 %v364_v59, %v363_v58 }
 0x266   :  { %v278_v61 = vpop.f32.mrb[4].mxu1 }
 0x267   :  { %v349_v62 = vadd.f32 %v4288_v51, %v278_v61  ;;  %v4297_v63 = vpop.f32.mrb[5].mxu1  ;;  %3719 = vmatprep.mubr.bf16.mxu0 %v379_v60 }
 0x268   :  { %v282_v2 = vpop.f32.mrb[6].mxu1 }
 0x269   :  { %v350_v3 = vadd.f32 %v4288_v51, %v282_v2  ;;  %v4300_v5 = vpop.f32.mrb[7].mxu1  ;;  %v365_v8 = vmax.f32 %v349_v62, 0.0 }
 0x26b   :  { %v366_v9 = vmax.f32 %v350_v3, 0.0 }
 0x26d   :  { %v380_v10 = vpack.c.bf16 %v366_v9, %v365_v8 }
 0x26e   :  { %v288_v13 = vpop.f32.mrb[8].mxu1 }
 0x26f   :  { %v351_v14 = vadd.f32 %v4288_v51, %v288_v13  ;;  %v4304_v15 = vpop.f32.mrb[9].mxu1  ;;  %3720 = vmatmul.mubr.bf16.vlgmr.msra.gmra.mrb[4].mxu0 %v380_v10 }
 0x270   :  { %v292_v18 = vpop.f32.mrb[10].mxu1  ;;  %3736 = vmatpush3.bf16.msra.mxu0 %v567_v12 }
 0x271   :  { %v352_v23 = vadd.f32 %v4288_v51, %v292_v18  ;;  %v4307_v24 = vpop.f32.mrb[11].mxu1  ;;  %3741 = vmatprep.subr.bf16.mxu0 %v4234_v19  ;;  %v367_v25 = vmax.f32 %v351_v14, 0.0 }
 0x273   :  { %v368_v26 = vmax.f32 %v352_v23, 0.0 }
 0x275   :  { %v381_v27 = vpack.c.bf16 %v368_v26, %v367_v25 }
 0x276   :  { %v298_v28 = vpop.f32.mrb[12].mxu1 }
 0x277   :  { %v353_v29 = vadd.f32 %v4288_v51, %v298_v28  ;;  %v4311_v30 = vpop.f32.mrb[13].mxu1  ;;  %3723 = vmatprep.mubr.bf16.mxu0 %v381_v27 }
 0x278   :  { %v302_v31 = vpop.f32.mrb[14].mxu1 }
 0x279   :  { %v354_v32 = vadd.f32 %v4288_v51, %v302_v31  ;;  %v4314_v33 = vpop.f32.mrb[15].mxu1  ;;  %v369_v34 = vmax.f32 %v353_v29, 0.0 }
 0x27b   :  { %v370_v35 = vmax.f32 %v354_v32, 0.0 }
 0x27d   :  { %v382_v36 = vpack.c.bf16 %v370_v35, %v369_v34 }
 0x27e   :  { %v308_v37 = vpop.f32.mrb[16].mxu1 }
 0x27f   :  { %v355_v38 = vadd.f32 %v4288_v51, %v308_v37  ;;  %v4317_v39 = vpop.f32.mrb[17].mxu1  ;;  %3724 = vmatmul.mubr.bf16.gmra.mrb[8].mxu0 %v382_v36 }
 0x280   :  { %v312_v40 = vpop.f32.mrb[18].mxu1 }
 0x281   :  { %v356_v41 = vadd.f32 %v4288_v51, %v312_v40  ;;  %v4320_v42 = vpop.f32.mrb[19].mxu1  ;;  %v371_v43 = vmax.f32 %v355_v38, 0.0 }
 0x283   :  { %v372_v44 = vmax.f32 %v356_v41, 0.0 }
 0x285   :  { %v383_v45 = vpack.c.bf16 %v372_v44, %v371_v43 }
 0x286   :  { %v318_v46 = vpop.f32.mrb[20].mxu1 }
 0x287   :  { %v357_v52 = vadd.f32 %v4288_v51, %v318_v46  ;;  %v4323_v53 = vpop.f32.mrb[21].mxu1  ;;  %3727 = vmatprep.mubr.bf16.mxu0 %v383_v45 }
 0x288   :  { %v322_v55 = vpop.f32.mrb[22].mxu1 }
 0x289   :  { %v358_v56 = vadd.f32 %v4288_v51, %v322_v55  ;;  %v4326_v58 = vpop.f32.mrb[23].mxu1  ;;  %v373_v59 = vmax.f32 %v357_v52, 0.0 }
 0x28b   :  { %v374_v60 = vmax.f32 %v358_v56, 0.0 }
 0x28d   :  { %v384_v61 = vpack.c.bf16 %v374_v60, %v373_v59 }
 0x28e   :  { %v328_v62 = vpop.f32.mrb[24].mxu1 }
 0x28f   :  { %v359_v2 = vadd.f32 %v4288_v51, %v328_v62  ;;  %v4329_v3 = vpop.f32.mrb[25].mxu1  ;;  %3728 = vmatmul.mubr.bf16.gmra.mrb[12].mxu0 %v384_v61 }
 0x290   :  { %v332_v6 = vpop.f32.mrb[26].mxu1 }
 0x291   :  { %v360_v8 = vadd.f32 %v4288_v51, %v332_v6  ;;  %v4332_v9 = vpop.f32.mrb[27].mxu1  ;;  %v375_v10 = vmax.f32 %v359_v2, 0.0 }
 0x293   :  { %v376_v12 = vmax.f32 %v360_v8, 0.0 }
 0x295   :  { %v385_v13 = vpack.c.bf16 %v376_v12, %v375_v10 }
 0x296   :  { %v338_v14 = vpop.f32.mrb[28].mxu1 }
 0x297   :  { %v361_v18 = vadd.f32 %v4288_v51, %v338_v14  ;;  %v340_v23 = vpop.f32.mrb[29].mxu1  ;;  %3731 = vmatprep.mubr.bf16.mxu0 %v385_v13 }
 0x298   :  { %v342_v25 = vpop.f32.mrb[30].mxu1 }
 0x299   :  { %v362_v26 = vadd.f32 %v4288_v51, %v342_v25  ;;  %v344_v27 = vpop.f32.mrb[31].mxu1  ;;  %v377_v28 = vmax.f32 %v361_v18, 0.0 }
 0x29b   :  { %v378_v29 = vmax.f32 %v362_v26, 0.0 }
 0x29d   :  { %v386_v31 = vpack.c.bf16 %v378_v29, %v377_v28 }
 0x29f   :  { %3732 = vmatmul.mubr.bf16.gmra.mrb[16].mxu0 %v386_v31 }
 0x2a0   :  { %3737 = vmatprep.mubr.msk.bf16.mxu0 %vm4127_vm0, %v4126_v0 }
 0x2a7   :  { %3738 = vmatmul.mubr.msk.bf16.vlgmr.msra.gmra.mrb[20].mxu0 %vm108_vm2, %v4205_v4 }
 0x2a8   :  { %3742 = vmatpush3.bf16.msra.mxu0 %v4234_v19 }
 0x2a9   :  { %3743 = vmatprep.subr.bf16.mxu0 %v4236_v20 }
 0x2ac   :  { %3744 = vmatpush3.bf16.msra.mxu0 %v4236_v20 }
 0x2ad   :  { %3745 = vmatprep.subr.bf16.mxu0 %v4241_v21 }
 0x2b0   :  { %3746 = vmatpush3.bf16.msra.mxu0 %v4241_v21 }
 0x2b1   :  { %3747 = vmatprep.subr.bf16.mxu0 %v4245_v22 }
 0x2b4   :  { %3748 = vmatpush3.bf16.msra.mxu0 %v4245_v22 }
 0x2b5   :  { %3749 = vmatprep.subr.bf16.mxu0 %v4268_v47 }
 0x2b8   :  { %3750 = vmatpush3.bf16.msra.mxu0 %v4268_v47 }
 0x2b9   :  { %3751 = vmatprep.subr.bf16.mxu0 %v4272_v48 }
 0x2bc   :  { %3752 = vmatpush3.bf16.msra.mxu0 %v4272_v48 }
 0x2bd   :  { %3753 = vmatprep.subr.bf16.mxu0 %v4276_v49 }
 0x2c0   :  { %3754 = vmatpush3.bf16.msra.mxu0 %v4276_v49 }
 0x2c1   :  { %3755 = vmatprep.subr.bf16.mxu0 %v4280_v50 }
 0x2c4   :  { %3756 = vmatpush3.bf16.msra.mxu0 %v4280_v50 }
 0x2c5   :  { %3773 = vmatprep.subr.bf16.mxu0 %v4126_v0 }
 0x342   :  { %v3721_v32 = vpop.f32.mrb[4].mxu0 }
 0x343   :  { %v4357_v34 = vadd.f32 %v3721_v32, %v4297_v63  ;;  %v469_v35 = vpop.f32.mrb[5].mxu0 }
 0x344   :  { %v4360_v36 = vadd.f32 %v469_v35, %v4291_v54  ;;  %v3722_v37 = vpop.f32.mrb[6].mxu0 }
 0x345   :  { %v4363_v38 = vadd.f32 %v3722_v37, %v4300_v5  ;;  %v472_v40 = vpop.f32.mrb[7].mxu0 }
 0x346   :  { %v4366_v41 = vadd.f32 %v472_v40, %v4294_v57 }
 0x352   :  { %v3725_v43 = vpop.f32.mrb[8].mxu0 }
 0x353   :  { %v4369_v44 = vadd.f32 %v3725_v43, %v4311_v30  ;;  %v485_v45 = vpop.f32.mrb[9].mxu0 }
 0x354   :  { %v4372_v63 = vadd.f32 %v485_v45, %v4304_v15  ;;  %v3726_v46 = vpop.f32.mrb[10].mxu0 }
 0x355   :  { %v4375_v54 = vadd.f32 %v3726_v46, %v4314_v33  ;;  %v488_v52 = vpop.f32.mrb[11].mxu0 }
 0x356   :  { %v4378_v5 = vadd.f32 %v488_v52, %v4307_v24 }
 0x362   :  { %v3729_v55 = vpop.f32.mrb[12].mxu0 }
 0x363   :  { %v4381_v57 = vadd.f32 %v3729_v55, %v4323_v53  ;;  %v501_v56 = vpop.f32.mrb[13].mxu0 }
 0x364   :  { %v4384_v30 = vadd.f32 %v501_v56, %v4317_v39  ;;  %v3730_v59 = vpop.f32.mrb[14].mxu0 }
 0x365   :  { %v4387_v15 = vadd.f32 %v3730_v59, %v4326_v58  ;;  %v504_v60 = vpop.f32.mrb[15].mxu0 }
 0x366   :  { %v4390_v33 = vadd.f32 %v504_v60, %v4320_v42 }
 0x372   :  { %v3733_v61 = vpop.f32.mrb[16].mxu0 }
 0x373   :  { %v4392_v62 = vadd.f32 %v3733_v61, %v340_v23  ;;  %v517_v24 = vpop.f32.mrb[17].mxu0 }
 0x374   :  { %v4395_v2 = vadd.f32 %v517_v24, %v4329_v3  ;;  %v3734_v53 = vpop.f32.mrb[18].mxu0 }
 0x375   :  { %v4397_v6 = vadd.f32 %v3734_v53, %v344_v27  ;;  %v520_v39 = vpop.f32.mrb[19].mxu0 }
 0x376   :  { %v4400_v8 = vadd.f32 %v520_v39, %v4332_v9 }
 0x37a   :  { %v603_v58 = vpop.f32.mrb[20].mxu0 }
 0x37b   :  { %v604_v10 = vadd.f32 %v603_v58, %v4215_v7  ;;  %v3739_v12 = vpop.f32.mrb[21].mxu0 }
 0x37c   :  { %v606_v42 = vpop.f32.mrb[22].mxu0 }
 0x37d   :  { %v610_v13 = vmax.f32 %v604_v10, 0.0  ;;  %v607_v14 = vadd.f32 %v606_v42, %v4218_v11  ;;  %v3740_v18 = vpop.f32.mrb[23].mxu0 }
 0x37f   :  { %612 = vxpose.xlu0.b32.start [1/2] (short) %v610_v13, 128  ;;  %v611_v23 = vmax.f32 %v607_v14, 0.0 }
 0x383   :  { %613 = vxpose.xlu0.b32.end [2/2] (short) %v611_v23, 128 }
 0x3ff   :  { %v628_v3 = vpop.trf.xlu0 }
 0x403   :  { %v629_v25 = vpop.trf.xlu0 }
 0x404   :  { %v644_v26 = vpack.c.bf16 %v629_v25, %v628_v3 }
 0x406   :  { %3491 = vmatmul.mubr.msk.bf16.vlgmr.msra.gmra.mrb[32].mxu1 %vm209_vm3, %v644_v26 }
 0x407   :  { %v630_v27 = vpop.trf.xlu0  ;;  %718 = vmatprep.mubr.bf16.mxu1 %v4128_v1  ;;  %1087 = vmatpush1.bf16.msra.mxu1 %v4229_v17 }
 0x408   :  { %1496 = vmatprep.subr.bf16.mxu1 %v4224_v16 }
 0x40b   :  { %v631_v9 = vpop.trf.xlu0 }
 0x40c   :  { %v645_v28 = vpack.c.bf16 %v631_v9, %v630_v27 }
 0x40e   :  { %3492 = vmatmul.mubr.msk.bf16.gmra.mrb[36].mxu1 %vm209_vm3, %v645_v28 }
 0x40f   :  { %v632_v29 = vpop.trf.xlu0  ;;  %728 = vmatprep.mubr.bf16.mxu1 %v4128_v1 }
 0x413   :  { %v633_v31 = vpop.trf.xlu0 }
 0x414   :  { %v646_v32 = vpack.c.bf16 %v633_v31, %v632_v29  ;;  %v975_v31 = vld [vmem:[#allocation2 + $0x8] sm:$0xf] }
 0x416   :  { %3493 = vmatmul.mubr.msk.bf16.gmra.mrb[40].mxu1 %vm209_vm3, %v646_v32 }
 0x417   :  { %v634_v35 = vpop.trf.xlu0  ;;  %738 = vmatprep.mubr.bf16.mxu1 %v4128_v1 }
 0x41b   :  { %v635_v37 = vpop.trf.xlu0 }
 0x41c   :  { %v647_v40 = vpack.c.bf16 %v635_v37, %v634_v35 }
 0x41e   :  { %3494 = vmatmul.mubr.msk.bf16.gmra.mrb[44].mxu1 %vm209_vm3, %v647_v40  ;;  %v977_v40 = vsel %vm112_vm1, %v975_v31, 0 }
 0x41f   :  { %v636_v43 = vpop.trf.xlu0  ;;  %748 = vmatprep.mubr.bf16.mxu1 %v4128_v1 }
 0x423   :  { %v637_v45 = vpop.trf.xlu0 }
 0x424   :  { %v648_v46 = vpack.c.bf16 %v637_v45, %v636_v43 }
 0x426   :  { %3495 = vmatmul.mubr.msk.bf16.gmra.mrb[48].mxu1 %vm209_vm3, %v648_v46 }
 0x427   :  { %v638_v52 = vpop.trf.xlu0  ;;  %758 = vmatprep.mubr.bf16.mxu1 %v4128_v1 }
 0x42b   :  { %v639_v55 = vpop.trf.xlu0 }
 0x42c   :  { %v649_v56 = vpack.c.bf16 %v639_v55, %v638_v52 }
 0x42e   :  { %3496 = vmatmul.mubr.msk.bf16.gmra.mrb[52].mxu1 %vm209_vm3, %v649_v56 }
 0x42f   :  { %v640_v59 = vpop.trf.xlu0  ;;  %768 = vmatprep.mubr.bf16.mxu1 %v4128_v1 }
 0x433   :  { %v641_v60 = vpop.trf.xlu0 }
 0x434   :  { %v650_v61 = vpack.c.bf16 %v641_v60, %v640_v59 }
 0x436   :  { %3497 = vmatmul.mubr.msk.bf16.gmra.mrb[56].mxu1 %vm209_vm3, %v650_v61 }
 0x437   :  { %v642_v24 = vpop.trf.xlu0  ;;  %778 = vmatprep.mubr.bf16.mxu1 %v4128_v1 }
 0x43b   :  { %v643_v53 = vpop.trf.xlu0 }
 0x43c   :  { %v651_v39 = vpack.c.bf16 %v643_v53, %v642_v24 }
 0x43e   :  { %3498 = vmatmul.mubr.msk.bf16.gmra.mrb[60].mxu1 %vm209_vm3, %v651_v39 }
 0x43f   :  { %1118 = vmatprep.mubr.bf16.mxu1 %v4128_v1 }
 0x4d9   :  { %v710_v58 = vpop.f32.mrb[32].mxu1 }
 0x4da   :  { %v789_v10 = vadd.f32 %v4288_v51, %v710_v58  ;;  %v4423_v12 = vpop.f32.mrb[33].mxu1 }
 0x4db   :  { %v714_v42 = vpop.f32.mrb[34].mxu1 }
 0x4dc   :  { %v790_v13 = vadd.f32 %v4288_v51, %v714_v42  ;;  %v4426_v14 = vpop.f32.mrb[35].mxu1  ;;  %v805_v18 = vmax.f32 %v789_v10, 0.0 }
 0x4de   :  { %v806_v23 = vmax.f32 %v790_v13, 0.0 }
 0x4e0   :  { %v821_v3 = vpack.c.bf16 %v806_v23, %v805_v18 }
 0x4e1   :  { %v720_v25 = vpop.f32.mrb[36].mxu1 }
 0x4e2   :  { %v791_v26 = vadd.f32 %v4288_v51, %v720_v25  ;;  %v4429_v27 = vpop.f32.mrb[37].mxu1  ;;  %3757 = vmatprep.mubr.bf16.mxu0 %v821_v3 }
 0x4e3   :  { %v724_v9 = vpop.f32.mrb[38].mxu1 }
 0x4e4   :  { %v792_v28 = vadd.f32 %v4288_v51, %v724_v9  ;;  %v4432_v29 = vpop.f32.mrb[39].mxu1  ;;  %v807_v32 = vmax.f32 %v791_v26, 0.0 }
 0x4e6   :  { %v808_v35 = vmax.f32 %v792_v28, 0.0 }
 0x4e8   :  { %v822_v37 = vpack.c.bf16 %v808_v35, %v807_v32 }
 0x4e9   :  { %v730_v43 = vpop.f32.mrb[40].mxu1 }
 0x4ea   :  { %v793_v45 = vadd.f32 %v4288_v51, %v730_v43  ;;  %v4436_v46 = vpop.f32.mrb[41].mxu1  ;;  %3758 = vmatmul.mubr.bf16.vlgmr.msra.gmra.mrb[24].mxu0 %v822_v37 }
 0x4eb   :  { %v734_v52 = vpop.f32.mrb[42].mxu1  ;;  %3774 = vmatpush3.bf16.msra.mxu0 %v977_v40 }
 0x4ec   :  { %v794_v55 = vadd.f32 %v4288_v51, %v734_v52  ;;  %v4439_v56 = vpop.f32.mrb[43].mxu1  ;;  %3779 = vmatprep.subr.bf16.mxu0 %v4234_v19  ;;  %v809_v59 = vmax.f32 %v793_v45, 0.0 }
 0x4ee   :  { %v810_v60 = vmax.f32 %v794_v55, 0.0 }
 0x4f0   :  { %v823_v61 = vpack.c.bf16 %v810_v60, %v809_v59 }
 0x4f1   :  { %v740_v24 = vpop.f32.mrb[44].mxu1 }
 0x4f2   :  { %v795_v53 = vadd.f32 %v4288_v51, %v740_v24  ;;  %v4443_v39 = vpop.f32.mrb[45].mxu1  ;;  %3761 = vmatprep.mubr.bf16.mxu0 %v823_v61 }
 0x4f3   :  { %v744_v58 = vpop.f32.mrb[46].mxu1 }
 0x4f4   :  { %v796_v10 = vadd.f32 %v4288_v51, %v744_v58  ;;  %v4446_v42 = vpop.f32.mrb[47].mxu1  ;;  %v811_v13 = vmax.f32 %v795_v53, 0.0 }
 0x4f6   :  { %v812_v18 = vmax.f32 %v796_v10, 0.0 }
 0x4f8   :  { %v824_v23 = vpack.c.bf16 %v812_v18, %v811_v13 }
 0x4f9   :  { %v750_v3 = vpop.f32.mrb[48].mxu1 }
 0x4fa   :  { %v797_v25 = vadd.f32 %v4288_v51, %v750_v3  ;;  %v4449_v26 = vpop.f32.mrb[49].mxu1  ;;  %3762 = vmatmul.mubr.bf16.gmra.mrb[28].mxu0 %v824_v23 }
 0x4fb   :  { %v754_v9 = vpop.f32.mrb[50].mxu1 }
 0x4fc   :  { %v798_v28 = vadd.f32 %v4288_v51, %v754_v9  ;;  %v4452_v31 = vpop.f32.mrb[51].mxu1  ;;  %v813_v32 = vmax.f32 %v797_v25, 0.0 }
 0x4fe   :  { %v814_v35 = vmax.f32 %v798_v28, 0.0 }
 0x500   :  { %v825_v37 = vpack.c.bf16 %v814_v35, %v813_v32 }
 0x501   :  { %v760_v40 = vpop.f32.mrb[52].mxu1 }
 0x502   :  { %v799_v43 = vadd.f32 %v4288_v51, %v760_v40  ;;  %v4455_v45 = vpop.f32.mrb[53].mxu1  ;;  %3765 = vmatprep.mubr.bf16.mxu0 %v825_v37 }
 0x503   :  { %v764_v52 = vpop.f32.mrb[54].mxu1 }
 0x504   :  { %v800_v55 = vadd.f32 %v4288_v51, %v764_v52  ;;  %v4458_v59 = vpop.f32.mrb[55].mxu1  ;;  %v815_v60 = vmax.f32 %v799_v43, 0.0 }
 0x506   :  { %v816_v61 = vmax.f32 %v800_v55, 0.0 }
 0x508   :  { %v826_v24 = vpack.c.bf16 %v816_v61, %v815_v60 }
 0x509   :  { %v770_v53 = vpop.f32.mrb[56].mxu1 }
 0x50a   :  { %v801_v58 = vadd.f32 %v4288_v51, %v770_v53  ;;  %v4461_v10 = vpop.f32.mrb[57].mxu1  ;;  %3766 = vmatmul.mubr.bf16.gmra.mrb[32].mxu0 %v826_v24 }
 0x50b   :  { %v774_v13 = vpop.f32.mrb[58].mxu1 }
 0x50c   :  { %v802_v18 = vadd.f32 %v4288_v51, %v774_v13  ;;  %v4464_v23 = vpop.f32.mrb[59].mxu1  ;;  %v817_v3 = vmax.f32 %v801_v58, 0.0 }
 0x50e   :  { %v818_v25 = vmax.f32 %v802_v18, 0.0 }
 0x510   :  { %v827_v9 = vpack.c.bf16 %v818_v25, %v817_v3 }
 0x511   :  { %v780_v28 = vpop.f32.mrb[60].mxu1 }
 0x512   :  { %v803_v32 = vadd.f32 %v4288_v51, %v780_v28  ;;  %v4467_v35 = vpop.f32.mrb[61].mxu1  ;;  %3769 = vmatprep.mubr.bf16.mxu0 %v827_v9 }
 0x513   :  { %v784_v37 = vpop.f32.mrb[62].mxu1 }
 0x514   :  { %v804_v40 = vadd.f32 %v4288_v51, %v784_v37  ;;  %v4470_v43 = vpop.f32.mrb[63].mxu1  ;;  %v819_v52 = vmax.f32 %v803_v32, 0.0 }
 0x516   :  { %v820_v55 = vmax.f32 %v804_v40, 0.0 }
 0x518   :  { %v828_v60 = vpack.c.bf16 %v820_v55, %v819_v52 }
 0x51a   :  { %3770 = vmatmul.mubr.bf16.gmra.mrb[36].mxu0 %v828_v60 }
 0x51b   :  { %3775 = vmatprep.mubr.msk.bf16.mxu0 %vm4127_vm0, %v4126_v0 }
 0x522   :  { %3776 = vmatmul.mubr.msk.bf16.vlgmr.msra.gmra.mrb[40].mxu0 %vm108_vm2, %v4205_v4  ;;  %v4495_v4 = vld [vmem:[%s5643_s6] ss:$0 sm:$0xff] }
 0x523   :  { %3780 = vmatpush3.bf16.msra.mxu0 %v4234_v19  ;;  %v538_v52 = vadd.f32 %v4495_v4, %v4369_v44  ;;  %v537_v44 = vadd.f32 %v4495_v4, %v4378_v5 }
 0x524   :  { %3781 = vmatprep.subr.bf16.mxu0 %v4236_v20 }
 0x527   :  { %3782 = vmatpush3.bf16.msra.mxu0 %v4236_v20  ;;  %v534_v20 = vadd.f32 %v4495_v4, %v4357_v34  ;;  %v533_v34 = vadd.f32 %v4495_v4, %v4366_v41 }
 0x528   :  { %3783 = vmatprep.subr.bf16.mxu0 %v4241_v21 }
 0x529   :  { %v550_v13 = vmax.f32 %v534_v20, 0.0  ;;  %v549_v28 = vmax.f32 %v533_v34, 0.0 }
 0x52b   :  { %3784 = vmatpush3.bf16.msra.mxu0 %v4241_v21 }
 0x52c   :  { %3785 = vmatprep.subr.bf16.mxu0 %v4245_v22 }
 0x52f   :  { %3786 = vmatpush3.bf16.msra.mxu0 %v4245_v22 }
 0x530   :  { %3787 = vmatprep.subr.bf16.mxu0 %v4268_v47 }
 0x533   :  { %3788 = vmatpush3.bf16.msra.mxu0 %v4268_v47  ;;  %v532_v47 = vadd.f32 %v4495_v4, %v4360_v36 }
 0x534   :  { %3789 = vmatprep.subr.bf16.mxu0 %v4272_v48 }
 0x535   :  { %v548_v18 = vmax.f32 %v532_v47, 0.0 }
 0x537   :  { %3790 = vmatpush3.bf16.msra.mxu0 %v4272_v48 }
 0x538   :  { %3791 = vmatprep.subr.bf16.mxu0 %v4276_v49 }
 0x53b   :  { %3792 = vmatpush3.bf16.msra.mxu0 %v4276_v49 }
 0x53c   :  { %3793 = vmatprep.subr.bf16.mxu0 %v4280_v50 }
 0x53f   :  { %3794 = vmatpush3.bf16.msra.mxu0 %v4280_v50  ;;  %v535_v50 = vadd.f32 %v4495_v4, %v4363_v38 }
 0x540   :  { %3811 = vmatprep.subr.bf16.mxu0 %v4126_v0 }
 0x541   :  { %v551_v25 = vmax.f32 %v535_v50, 0.0 }
 0x5bd   :  { %v3759_v19 = vpop.f32.mrb[24].mxu0 }
 0x5be   :  { %v872_v21 = vadd.f32 %v3759_v19, %v4429_v27  ;;  %v863_v22 = vpop.f32.mrb[25].mxu0  ;;  %v536_v19 = vadd.f32 %v4495_v4, %v4372_v63 }
 0x5bf   :  { %v864_v48 = vadd.f32 %v863_v22, %v4423_v12  ;;  %v3760_v49 = vpop.f32.mrb[26].mxu0  ;;  %v539_v22 = vadd.f32 %v4495_v4, %v4375_v54 }
 0x5c0   :  { %v928_v61 = vadd.f32 %v4495_v4, %v872_v21  ;;  %v875_v24 = vadd.f32 %v3760_v49, %v4432_v29  ;;  %v866_v53 = vpop.f32.mrb[27].mxu0 }
 0x5c1   :  { %v926_v27 = vadd.f32 %v4495_v4, %v864_v48  ;;  %v867_v58 = vadd.f32 %v866_v53, %v4426_v14  ;;  %v555_v34 = vmax.f32 %v539_v22, 0.0 }
 0x5c2   :  { %v944_v36 = vmax.f32 %v928_v61, 0.0  ;;  %v929_v12 = vadd.f32 %v4495_v4, %v875_v24  ;;  %v554_v61 = vmax.f32 %v538_v52, 0.0  ;;  %v552_v24 = vmax.f32 %v536_v19, 0.0 }
 0x5c3   :  { %v942_v3 = vmax.f32 %v926_v27, 0.0  ;;  %v927_v38 = vadd.f32 %v4495_v4, %v867_v58  ;;  %v553_v58 = vmax.f32 %v537_v44, 0.0 }
 0x5c4   :  { %v4513_v9 = vmax.f32 %v550_v13, %v944_v36  ;;  %v945_v29 = vmax.f32 %v929_v12, 0.0 }
 0x5c5   :  { %v4515_v32 = vmax.f32 %v548_v18, %v942_v3  ;;  %v943_v41 = vmax.f32 %v927_v38, 0.0  ;;  %v542_v18 = vadd.f32 %v4495_v4, %v4381_v57  ;;  %v541_v57 = vadd.f32 %v4495_v4, %v4390_v33 }
 0x5c6   :  { %v4517_v37 = vmax.f32 %v551_v25, %v945_v29  ;;  %v540_v25 = vadd.f32 %v4495_v4, %v4384_v30 }
 0x5c7   :  { %v4519_v40 = vmax.f32 %v549_v28, %v943_v41  ;;  %v543_v41 = vadd.f32 %v4495_v4, %v4387_v15  ;;  %v558_v19 = vmax.f32 %v542_v18, 0.0 }
 0x5c9   :  { %v559_v22 = vmax.f32 %v543_v41, 0.0 }
 0x5cd   :  { %v3763_v14 = vpop.f32.mrb[28].mxu0 }
 0x5ce   :  { %v888_v55 = vadd.f32 %v3763_v14, %v4443_v39  ;;  %v879_v60 = vpop.f32.mrb[29].mxu0 }
 0x5cf   :  { %v880_v20 = vadd.f32 %v879_v60, %v4436_v46  ;;  %v3764_v21 = vpop.f32.mrb[30].mxu0 }
 0x5d0   :  { %v932_v47 = vadd.f32 %v4495_v4, %v888_v55  ;;  %v891_v48 = vadd.f32 %v3764_v21, %v4446_v42  ;;  %v882_v49 = vpop.f32.mrb[31].mxu0 }
 0x5d1   :  { %v930_v39 = vadd.f32 %v4495_v4, %v880_v20  ;;  %v883_v50 = vadd.f32 %v882_v49, %v4439_v56  ;;  %v556_v20 = vmax.f32 %v540_v25, 0.0 }
 0x5d2   :  { %v948_v63 = vmax.f32 %v932_v47, 0.0  ;;  %v933_v46 = vadd.f32 %v4495_v4, %v891_v48  ;;  %v557_v48 = vmax.f32 %v541_v57, 0.0 }
 0x5d3   :  { %v946_v53 = vmax.f32 %v930_v39, 0.0  ;;  %v931_v54 = vadd.f32 %v4495_v4, %v883_v50  ;;  %v546_v50 = vadd.f32 %v4495_v4, %v4392_v62  ;;  %v545_v62 = vadd.f32 %v4495_v4, %v4400_v8 }
 0x5d4   :  { %v4537_v27 = vmax.f32 %v554_v61, %v948_v63  ;;  %v949_v42 = vmax.f32 %v933_v46, 0.0  ;;  %v544_v46 = vadd.f32 %v4495_v4, %v4395_v2 }
 0x5d5   :  { %v4539_v13 = vmax.f32 %v552_v24, %v946_v53  ;;  %v947_v5 = vmax.f32 %v931_v54, 0.0  ;;  %v547_v54 = vadd.f32 %v4495_v4, %v4397_v6 }
 0x5d6   :  { %v4541_v36 = vmax.f32 %v555_v34, %v949_v42  ;;  %v560_v18 = vmax.f32 %v544_v46, 0.0 }
 0x5d7   :  { %v4543_v12 = vmax.f32 %v553_v58, %v947_v5 }
 0x5dd   :  { %v3767_v56 = vpop.f32.mrb[32].mxu0 }
 0x5de   :  { %v904_v3 = vadd.f32 %v3767_v56, %v4455_v45  ;;  %v895_v38 = vpop.f32.mrb[33].mxu0  ;;  %v562_v56 = vmax.f32 %v546_v50, 0.0 }
 0x5df   :  { %v896_v29 = vadd.f32 %v895_v38, %v4449_v26  ;;  %v3768_v28 = vpop.f32.mrb[34].mxu0  ;;  %v563_v38 = vmax.f32 %v547_v54, 0.0 }
 0x5e0   :  { %v936_v14 = vadd.f32 %v4495_v4, %v904_v3  ;;  %v907_v52 = vadd.f32 %v3768_v28, %v4458_v59  ;;  %v898_v55 = vpop.f32.mrb[35].mxu0 }
 0x5e1   :  { %v934_v45 = vadd.f32 %v4495_v4, %v896_v29  ;;  %v899_v60 = vadd.f32 %v898_v55, %v4452_v31  ;;  %v561_v29 = vmax.f32 %v545_v62, 0.0 }
 0x5e2   :  { %v952_v30 = vmax.f32 %v936_v14, 0.0  ;;  %v937_v26 = vadd.f32 %v4495_v4, %v907_v52 }
 0x5e3   :  { %v950_v21 = vmax.f32 %v934_v45, 0.0  ;;  %v935_v15 = vadd.f32 %v4495_v4, %v899_v60 }
 0x5e4   :  { %v4561_v47 = vmax.f32 %v558_v19, %v952_v30  ;;  %v953_v59 = vmax.f32 %v937_v26, 0.0 }
 0x5e5   :  { %v4563_v49 = vmax.f32 %v556_v20, %v950_v21  ;;  %v951_v33 = vmax.f32 %v935_v15, 0.0 }
 0x5e6   :  { %v4565_v44 = vmax.f32 %v559_v22, %v953_v59 }
 0x5e7   :  { %v4567_v39 = vmax.f32 %v557_v48, %v951_v33 }
 0x5ed   :  { %v3771_v31 = vpop.f32.mrb[36].mxu0 }
 0x5ee   :  { %v920_v61 = vadd.f32 %v3771_v31, %v4467_v35  ;;  %v911_v63 = vpop.f32.mrb[37].mxu0 }
 0x5ef   :  { %v912_v24 = vadd.f32 %v911_v63, %v4461_v10  ;;  %v3772_v53 = vpop.f32.mrb[38].mxu0 }
 0x5f0   :  { %v940_v34 = vadd.f32 %v4495_v4, %v920_v61  ;;  %v923_v42 = vadd.f32 %v3772_v53, %v4470_v43  ;;  %v914_v58 = vpop.f32.mrb[39].mxu0 }
 0x5f1   :  { %v938_v35 = vadd.f32 %v4495_v4, %v912_v24  ;;  %v915_v5 = vadd.f32 %v914_v58, %v4464_v23 }
 0x5f2   :  { %v956_v2 = vmax.f32 %v940_v34, 0.0  ;;  %v941_v10 = vadd.f32 %v4495_v4, %v923_v42 }
 0x5f3   :  { %v954_v3 = vmax.f32 %v938_v35, 0.0  ;;  %v939_v6 = vadd.f32 %v4495_v4, %v915_v5 }
 0x5f4   :  { %v4585_v25 = vmax.f32 %v562_v56, %v956_v2  ;;  %v957_v43 = vmax.f32 %v941_v10, 0.0 }
 0x5f5   :  { %v4587_v28 = vmax.f32 %v560_v18, %v954_v3  ;;  %v955_v8 = vmax.f32 %v939_v6, 0.0  ;;  %v1013_v41 = vpop.f32.mrb[40].mxu0 }
 0x5f6   :  { %v4589_v14 = vmax.f32 %v563_v38, %v957_v43  ;;  %v1014_v23 = vadd.f32 %v1013_v41, %v4215_v7  ;;  %v3777_v52 = vpop.f32.mrb[41].mxu0 }
 0x5f7   :  { %v4592_v55 = vmax.f32 %v561_v29, %v955_v8  ;;  %v1016_v57 = vpop.f32.mrb[42].mxu0 }
 0x5f8   :  { %v1020_v45 = vmax.f32 %v1014_v23, 0.0  ;;  %v1017_v60 = vadd.f32 %v1016_v57, %v4218_v11  ;;  %v3778_v19 = vpop.f32.mrb[43].mxu0 }
 0x5fa   :  { %1022 = vxpose.xlu1.b32.start [1/2] (short) %v1020_v45, 128  ;;  %v1021_v30 = vmax.f32 %v1017_v60, 0.0  ;;  %v1385_v60 = vld [vmem:[#allocation2 + $0xc] sm:$0xf] }
 0x5fe   :  { %1023 = vxpose.xlu1.b32.end [2/2] (short) %v1021_v30, 128 }
 0x67a   :  { %v1038_v26 = vpop.trf.xlu1 }
 0x67e   :  { %v1039_v20 = vpop.trf.xlu1 }
 0x67f   :  { %v1054_v21 = vpack.c.bf16 %v1039_v20, %v1038_v26  ;;  %v1387_v20 = vsel %vm112_vm1, %v1385_v60, 0 }
 0x681   :  { %3500 = vmatmul.mubr.msk.bf16.vlgmr.msra.gmra.mrb[64].mxu1 %vm209_vm3, %v1054_v21 }
 0x682   :  { %v1040_v15 = vpop.trf.xlu1  ;;  %1128 = vmatprep.mubr.bf16.mxu1 %v4128_v1  ;;  %1497 = vmatpush1.bf16.msra.mxu1 %v4229_v17 }
 0x683   :  { %1906 = vmatprep.subr.bf16.mxu1 %v4224_v16 }
 0x686   :  { %v1041_v22 = vpop.trf.xlu1 }
 0x687   :  { %v1055_v59 = vpack.c.bf16 %v1041_v22, %v1040_v15 }
 0x689   :  { %3501 = vmatmul.mubr.msk.bf16.gmra.mrb[68].mxu1 %vm209_vm3, %v1055_v59 }
 0x68a   :  { %v1042_v48 = vpop.trf.xlu1  ;;  %1138 = vmatprep.mubr.bf16.mxu1 %v4128_v1 }
 0x68e   :  { %v1043_v33 = vpop.trf.xlu1 }
 0x68f   :  { %v1056_v31 = vpack.c.bf16 %v1043_v33, %v1042_v48 }
 0x691   :  { %3502 = vmatmul.mubr.msk.bf16.gmra.mrb[72].mxu1 %vm209_vm3, %v1056_v31  ;;  %v4632_v31 = vld [vmem:[#allocation5] sm:$0xff]  }
 0x692   :  { %v1044_v50 = vpop.trf.xlu1  ;;  %1148 = vmatprep.mubr.bf16.mxu1 %v4128_v1 }
 0x696   :  { %v1045_v61 = vpop.trf.xlu1 }
 0x697   :  { %v1057_v63 = vpack.c.bf16 %v1045_v61, %v1044_v50 }
 0x699   :  { %3503 = vmatmul.mubr.msk.bf16.gmra.mrb[76].mxu1 %vm209_vm3, %v1057_v63 }
 0x69a   :  { %v1046_v17 = vpop.trf.xlu1  ;;  %1158 = vmatprep.mubr.bf16.mxu1 %v4128_v1 }
 0x69e   :  { %v1047_v16 = vpop.trf.xlu1 }
 0x69f   :  { %v1058_v46 = vpack.c.bf16 %v1047_v16, %v1046_v17 }
 0x6a1   :  { %3504 = vmatmul.mubr.msk.bf16.gmra.mrb[80].mxu1 %vm209_vm3, %v1058_v46 }
 0x6a2   :  { %v1048_v24 = vpop.trf.xlu1  ;;  %1168 = vmatprep.mubr.bf16.mxu1 %v4128_v1 }
 0x6a6   :  { %v1049_v53 = vpop.trf.xlu1 }
 0x6a7   :  { %v1059_v54 = vpack.c.bf16 %v1049_v53, %v1048_v24 }
 0x6a9   :  { %3505 = vmatmul.mubr.msk.bf16.gmra.mrb[84].mxu1 %vm209_vm3, %v1059_v54 }
 0x6aa   :  { %v1050_v34 = vpop.trf.xlu1  ;;  %1178 = vmatprep.mubr.bf16.mxu1 %v4128_v1 }
 0x6ae   :  { %v1051_v42 = vpop.trf.xlu1 }
 0x6af   :  { %v1060_v58 = vpack.c.bf16 %v1051_v42, %v1050_v34 }
 0x6b1   :  { %3506 = vmatmul.mubr.msk.bf16.gmra.mrb[88].mxu1 %vm209_vm3, %v1060_v58 }
 0x6b2   :  { %v1052_v62 = vpop.trf.xlu1  ;;  %1188 = vmatprep.mubr.bf16.mxu1 %v4128_v1 }
 0x6b6   :  { %v1053_v35 = vpop.trf.xlu1 }
 0x6b7   :  { %v1061_v5 = vpack.c.bf16 %v1053_v35, %v1052_v62 }
 0x6b9   :  { %3507 = vmatmul.mubr.msk.bf16.gmra.mrb[92].mxu1 %vm209_vm3, %v1061_v5 }
 0x6ba   :  { %1528 = vmatprep.mubr.bf16.mxu1 %v4128_v1 }
 0x754   :  { %v1120_v56 = vpop.f32.mrb[64].mxu1 }
 0x755   :  { %v1199_v2 = vadd.f32 %v4288_v51, %v1120_v56  ;;  %v4614_v10 = vpop.f32.mrb[65].mxu1 }
 0x756   :  { %v1124_v18 = vpop.f32.mrb[66].mxu1 }
 0x757   :  { %v1200_v3 = vadd.f32 %v4288_v51, %v1124_v18  ;;  %v4617_v6 = vpop.f32.mrb[67].mxu1  ;;  %v1215_v38 = vmax.f32 %v1199_v2, 0.0 }
 0x759   :  { %v1216_v43 = vmax.f32 %v1200_v3, 0.0 }
 0x75b   :  { %v1231_v29 = vpack.c.bf16 %v1216_v43, %v1215_v38 }
 0x75c   :  { %v1130_v8 = vpop.f32.mrb[68].mxu1 }
 0x75d   :  { %v1201_v41 = vadd.f32 %v4288_v51, %v1130_v8  ;;  %v4620_v23 = vpop.f32.mrb[69].mxu1  ;;  %3795 = vmatprep.mubr.bf16.mxu0 %v1231_v29 }
 0x75e   :  { %v1134_v52 = vpop.f32.mrb[70].mxu1 }
 0x75f   :  { %v1202_v57 = vadd.f32 %v4288_v51, %v1134_v52  ;;  %v4623_v45 = vpop.f32.mrb[71].mxu1  ;;  %v1217_v19 = vmax.f32 %v1201_v41, 0.0 }
 0x761   :  { %v1218_v30 = vmax.f32 %v1202_v57, 0.0  ;;  %v4653_v57 = vld [vmem:[%s5641_s4] ss:$0 sm:$0xff] }
 0x763   :  { %v1232_v26 = vpack.c.bf16 %v1218_v30, %v1217_v19 }
 0x764   :  { %v1140_v21 = vpop.f32.mrb[72].mxu1 }
 0x765   :  { %v1203_v15 = vadd.f32 %v4288_v51, %v1140_v21  ;;  %v4627_v22 = vpop.f32.mrb[73].mxu1  ;;  %3796 = vmatmul.mubr.bf16.vlgmr.msra.gmra.mrb[44].mxu0 %v1232_v26 }
 0x766   :  { %v1144_v59 = vpop.f32.mrb[74].mxu1  ;;  %3812 = vmatpush3.bf16.msra.mxu0 %v1387_v20 }
 0x767   :  { %v1204_v48 = vadd.f32 %v4288_v51, %v1144_v59  ;;  %v4630_v33 = vpop.f32.mrb[75].mxu1  ;;  %3817 = vmatprep.subr.bf16.mxu0 %v4632_v31  ;;  %v1219_v50 = vmax.f32 %v1203_v15, 0.0 }
 0x769   :  { %v1220_v61 = vmax.f32 %v1204_v48, 0.0 }
 0x76b   :  { %v1233_v63 = vpack.c.bf16 %v1220_v61, %v1219_v50 }
 0x76c   :  { %v1150_v17 = vpop.f32.mrb[76].mxu1 }
 0x76d   :  { %v1205_v16 = vadd.f32 %v4288_v51, %v1150_v17  ;;  %v4636_v46 = vpop.f32.mrb[77].mxu1  ;;  %3799 = vmatprep.mubr.bf16.mxu0 %v1233_v63 }
 0x76e   :  { %v1154_v24 = vpop.f32.mrb[78].mxu1 }
 0x76f   :  { %v1206_v53 = vadd.f32 %v4288_v51, %v1154_v24  ;;  %v4639_v54 = vpop.f32.mrb[79].mxu1  ;;  %v1221_v34 = vmax.f32 %v1205_v16, 0.0 }
 0x771   :  { %v1222_v42 = vmax.f32 %v1206_v53, 0.0 }
 0x773   :  { %v1234_v58 = vpack.c.bf16 %v1222_v42, %v1221_v34 }
 0x774   :  { %v1160_v62 = vpop.f32.mrb[80].mxu1 }
 0x775   :  { %v1207_v35 = vadd.f32 %v4288_v51, %v1160_v62  ;;  %v4642_v5 = vpop.f32.mrb[81].mxu1  ;;  %3800 = vmatmul.mubr.bf16.gmra.mrb[48].mxu0 %v1234_v58 }
 0x776   :  { %v1164_v56 = vpop.f32.mrb[82].mxu1 }
 0x777   :  { %v1208_v2 = vadd.f32 %v4288_v51, %v1164_v56  ;;  %v4645_v18 = vpop.f32.mrb[83].mxu1  ;;  %v1223_v3 = vmax.f32 %v1207_v35, 0.0 }
 0x779   :  { %v1224_v38 = vmax.f32 %v1208_v2, 0.0  ;;  %v4675_v2 = vld [vmem:[%s5638_s1] sm:$0xff]  }
 0x77b   :  { %v1235_v43 = vpack.c.bf16 %v1224_v38, %v1223_v3  ;;  %v4680_v3 = vld [vmem:[#allocation5 + $0x8] sm:$0xff]   ;;  %v4684_v38 = vld [vmem:[#allocation5 + $0x10] sm:$0xff]  }
 0x77c   :  { %v1170_v29 = vpop.f32.mrb[84].mxu1 }
 0x77d   :  { %v1209_v8 = vadd.f32 %v4288_v51, %v1170_v29  ;;  %v4648_v41 = vpop.f32.mrb[85].mxu1  ;;  %3803 = vmatprep.mubr.bf16.mxu0 %v1235_v43  ;;  %v4688_v43 = vld [vmem:[#allocation5 + $0x18] sm:$0xff]   ;;  %v4692_v29 = vld [vmem:[#allocation5 + $0x20] sm:$0xff]  }
 0x77e   :  { %v1174_v52 = vpop.f32.mrb[86].mxu1 }
 0x77f   :  { %v1210_v60 = vadd.f32 %v4653_v57, %v1174_v52  ;;  %v4656_v19 = vpop.f32.mrb[87].mxu1  ;;  %v1225_v30 = vmax.f32 %v1209_v8, 0.0  ;;  %v4696_v8 = vld [vmem:[#allocation5 + $0x28] sm:$0xff]   ;;  %v4700_v52 = vld [vmem:[#allocation5 + $0x30] sm:$0xff]  }
 0x781   :  { %v1226_v26 = vmax.f32 %v1210_v60, 0.0  ;;  %v4704_v60 = vld [vmem:[#allocation5 + $0x38] sm:$0xff]  }
 0x783   :  { %v1236_v20 = vpack.c.bf16 %v1226_v26, %v1225_v30 }
 0x784   :  { %v1180_v21 = vpop.f32.mrb[88].mxu1 }
 0x785   :  { %v1211_v15 = vadd.f32 %v4653_v57, %v1180_v21  ;;  %v4659_v51 = vpop.f32.mrb[89].mxu1  ;;  %3804 = vmatmul.mubr.bf16.gmra.mrb[52].mxu0 %v1236_v20 }
 0x786   :  { %v1184_v59 = vpop.f32.mrb[90].mxu1 }
 0x787   :  { %v1212_v48 = vadd.f32 %v4653_v57, %v1184_v59  ;;  %v4662_v50 = vpop.f32.mrb[91].mxu1  ;;  %v1227_v61 = vmax.f32 %v1211_v15, 0.0 }
 0x789   :  { %v1228_v63 = vmax.f32 %v1212_v48, 0.0 }
 0x78b   :  { %v1237_v17 = vpack.c.bf16 %v1228_v63, %v1227_v61 }
 0x78c   :  { %v1190_v16 = vpop.f32.mrb[92].mxu1 }
 0x78d   :  { %v1213_v24 = vadd.f32 %v4653_v57, %v1190_v16  ;;  %v4665_v53 = vpop.f32.mrb[93].mxu1  ;;  %3807 = vmatprep.mubr.bf16.mxu0 %v1237_v17 }
 0x78e   :  { %v1194_v34 = vpop.f32.mrb[94].mxu1 }
 0x78f   :  { %v1214_v42 = vadd.f32 %v4653_v57, %v1194_v34  ;;  %v4668_v58 = vpop.f32.mrb[95].mxu1  ;;  %v1229_v62 = vmax.f32 %v1213_v24, 0.0 }
 0x791   :  { %v1230_v35 = vmax.f32 %v1214_v42, 0.0 }
 0x793   :  { %v1238_v56 = vpack.c.bf16 %v1230_v35, %v1229_v62 }
 0x795   :  { %3808 = vmatmul.mubr.bf16.gmra.mrb[56].mxu0 %v1238_v56 }
 0x796   :  { %3813 = vmatprep.mubr.msk.bf16.mxu0 %vm4127_vm0, %v4126_v0 }
 0x79d   :  { %3814 = vmatmul.mubr.msk.bf16.vlgmr.msra.gmra.mrb[60].mxu0 %vm108_vm2, %v4675_v2 }
 0x79e   :  { %3818 = vmatpush3.bf16.msra.mxu0 %v4632_v31 }
 0x79f   :  { %3819 = vmatprep.subr.bf16.mxu0 %v4680_v3 }
 0x7a2   :  { %3820 = vmatpush3.bf16.msra.mxu0 %v4680_v3 }
 0x7a3   :  { %3821 = vmatprep.subr.bf16.mxu0 %v4684_v38 }
 0x7a6   :  { %3822 = vmatpush3.bf16.msra.mxu0 %v4684_v38 }
 0x7a7   :  { %3823 = vmatprep.subr.bf16.mxu0 %v4688_v43 }
 0x7aa   :  { %3824 = vmatpush3.bf16.msra.mxu0 %v4688_v43 }
 0x7ab   :  { %3825 = vmatprep.subr.bf16.mxu0 %v4692_v29 }
 0x7ae   :  { %3826 = vmatpush3.bf16.msra.mxu0 %v4692_v29 }
 0x7af   :  { %3827 = vmatprep.subr.bf16.mxu0 %v4696_v8 }
 0x7b2   :  { %3828 = vmatpush3.bf16.msra.mxu0 %v4696_v8 }
 0x7b3   :  { %3829 = vmatprep.subr.bf16.mxu0 %v4700_v52 }
 0x7b6   :  { %3830 = vmatpush3.bf16.msra.mxu0 %v4700_v52 }
 0x7b7   :  { %3831 = vmatprep.subr.bf16.mxu0 %v4704_v60 }
 0x7ba   :  { %3832 = vmatpush3.bf16.msra.mxu0 %v4704_v60 }
 0x7bb   :  { %3849 = vmatprep.subr.bf16.mxu0 %v4126_v0 }
 0x838   :  { %v3797_v30 = vpop.f32.mrb[44].mxu0 }
 0x839   :  { %v1282_v26 = vadd.f32 %v3797_v30, %v4620_v23  ;;  %v1273_v20 = vpop.f32.mrb[45].mxu0 }
 0x83a   :  { %v1274_v21 = vadd.f32 %v1273_v20, %v4614_v10  ;;  %v3798_v15 = vpop.f32.mrb[46].mxu0 }
 0x83b   :  { %v1338_v59 = vadd.f32 %v4495_v4, %v1282_v26  ;;  %v1285_v48 = vadd.f32 %v3798_v15, %v4623_v45  ;;  %v1276_v61 = vpop.f32.mrb[47].mxu0 }
 0x83c   :  { %v1336_v63 = vadd.f32 %v4495_v4, %v1274_v21  ;;  %v1277_v17 = vadd.f32 %v1276_v61, %v4617_v6 }
 0x83d   :  { %v1354_v16 = vmax.f32 %v1338_v59, 0.0  ;;  %v1339_v24 = vadd.f32 %v4495_v4, %v1285_v48 }
 0x83e   :  { %v1352_v34 = vmax.f32 %v1336_v63, 0.0  ;;  %v1337_v42 = vadd.f32 %v4495_v4, %v1277_v17 }
 0x83f   :  { %v4718_v23 = vmax.f32 %v4513_v9, %v1354_v16  ;;  %v1355_v10 = vmax.f32 %v1339_v24, 0.0 }
 0x840   :  { %v4721_v62 = vmax.f32 %v4515_v32, %v1352_v34  ;;  %v1353_v35 = vmax.f32 %v1337_v42, 0.0 }
 0x841   :  { %v4724_v45 = vmax.f32 %v4517_v37, %v1355_v10 }
 0x842   :  { %v4727_v56 = vmax.f32 %v4519_v40, %v1353_v35 }
 0x848   :  { %v3801_v6 = vpop.f32.mrb[48].mxu0 }
 0x849   :  { %v1298_v30 = vadd.f32 %v3801_v6, %v4636_v46  ;;  %v1289_v26 = vpop.f32.mrb[49].mxu0 }
 0x84a   :  { %v1290_v20 = vadd.f32 %v1289_v26, %v4627_v22  ;;  %v3802_v21 = vpop.f32.mrb[50].mxu0 }
 0x84b   :  { %v1342_v9 = vadd.f32 %v4495_v4, %v1298_v30  ;;  %v1301_v15 = vadd.f32 %v3802_v21, %v4639_v54  ;;  %v1292_v32 = vpop.f32.mrb[51].mxu0 }
 0x84c   :  { %v1340_v59 = vadd.f32 %v4495_v4, %v1290_v20  ;;  %v1293_v37 = vadd.f32 %v1292_v32, %v4630_v33 }
 0x84d   :  { %v1358_v48 = vmax.f32 %v1342_v9, 0.0  ;;  %v1343_v40 = vadd.f32 %v4495_v4, %v1301_v15 }
 0x84e   :  { %v1356_v61 = vmax.f32 %v1340_v59, 0.0  ;;  %v1341_v63 = vadd.f32 %v4495_v4, %v1293_v37 }
 0x84f   :  { %v4738_v46 = vmax.f32 %v4537_v27, %v1358_v48  ;;  %v1359_v22 = vmax.f32 %v1343_v40, 0.0 }
 0x850   :  { %v4741_v17 = vmax.f32 %v4539_v13, %v1356_v61  ;;  %v1357_v16 = vmax.f32 %v1341_v63, 0.0 }
 0x851   :  { %v4744_v54 = vmax.f32 %v4541_v36, %v1359_v22 }
 0x852   :  { %v4747_v24 = vmax.f32 %v4543_v12, %v1357_v16 }
 0x858   :  { %v3805_v33 = vpop.f32.mrb[52].mxu0 }
 0x859   :  { %v1314_v34 = vadd.f32 %v3805_v33, %v4648_v41  ;;  %v1305_v42 = vpop.f32.mrb[53].mxu0 }
 0x85a   :  { %v1306_v10 = vadd.f32 %v1305_v42, %v4642_v5  ;;  %v3806_v35 = vpop.f32.mrb[54].mxu0 }
 0x85b   :  { %v1346_v27 = vadd.f32 %v4495_v4, %v1314_v34  ;;  %v1317_v6 = vadd.f32 %v3806_v35, %v4656_v19  ;;  %v1308_v13 = vpop.f32.mrb[55].mxu0 }
 0x85c   :  { %v1344_v30 = vadd.f32 %v4495_v4, %v1306_v10  ;;  %v1309_v36 = vadd.f32 %v1308_v13, %v4645_v18 }
 0x85d   :  { %v1362_v26 = vmax.f32 %v1346_v27, 0.0  ;;  %v1347_v12 = vadd.f32 %v4495_v4, %v1317_v6 }
 0x85e   :  { %v1360_v20 = vmax.f32 %v1344_v30, 0.0  ;;  %v1345_v21 = vadd.f32 %v4495_v4, %v1309_v36 }
 0x85f   :  { %v4758_v41 = vmax.f32 %v4561_v47, %v1362_v26  ;;  %v1363_v5 = vmax.f32 %v1347_v12, 0.0 }
 0x860   :  { %v4761_v9 = vmax.f32 %v4563_v49, %v1360_v20  ;;  %v1361_v15 = vmax.f32 %v1345_v21, 0.0  ;;  %v4802_v20 = vld [vmem:[%s5640_s3 + $0x4] ss:$8 sps:$4 sm:$0xff]  }
 0x861   :  { %v4764_v19 = vmax.f32 %v4565_v44, %v1363_v5 }
 0x862   :  { %v4767_v32 = vmax.f32 %v4567_v39, %v1361_v15 }
 0x868   :  { %v3809_v18 = vpop.f32.mrb[56].mxu0 }
 0x869   :  { %v1330_v59 = vadd.f32 %v3809_v18, %v4665_v53  ;;  %v1321_v37 = vpop.f32.mrb[57].mxu0 }
 0x86a   :  { %v1322_v48 = vadd.f32 %v1321_v37, %v4659_v51  ;;  %v3810_v40 = vpop.f32.mrb[58].mxu0 }
 0x86b   :  { %v1350_v47 = vadd.f32 %v4495_v4, %v1330_v59  ;;  %v1333_v61 = vadd.f32 %v3810_v40, %v4668_v58  ;;  %v1324_v49 = vpop.f32.mrb[59].mxu0 }
 0x86c   :  { %v1348_v63 = vadd.f32 %v4495_v4, %v1322_v48  ;;  %v1325_v44 = vadd.f32 %v1324_v49, %v4662_v50 }
 0x86d   :  { %v1366_v22 = vmax.f32 %v1350_v47, 0.0  ;;  %v1351_v39 = vadd.f32 %v4495_v4, %v1333_v61 }
 0x86e   :  { %v1364_v16 = vmax.f32 %v1348_v63, 0.0  ;;  %v1349_v33 = vadd.f32 %v4495_v4, %v1325_v44 }
 0x86f   :  { %v4778_v53 = vmax.f32 %v4585_v25, %v1366_v22  ;;  %v1367_v51 = vmax.f32 %v1351_v39, 0.0 }
 0x870   :  { %v4781_v34 = vmax.f32 %v4587_v28, %v1364_v16  ;;  %v1365_v42 = vmax.f32 %v1349_v33, 0.0  ;;  %v1423_v58 = vpop.f32.mrb[60].mxu0 }
 0x871   :  { %v4784_v10 = vmax.f32 %v4589_v14, %v1367_v51  ;;  %v1424_v50 = vadd.f32 %v1423_v58, %v4215_v7  ;;  %v3815_v35 = vpop.f32.mrb[61].mxu0 }
 0x872   :  { %v4788_v27 = vmax.f32 %v4592_v55, %v1365_v42  ;;  %v1426_v6 = vpop.f32.mrb[62].mxu0  ;;  %v4796_v55 = vld [vmem:[%s5640_s3] ss:$8 sps:$4 sm:$0xff]  }
 0x873   :  { %v1430_v13 = vmax.f32 %v1424_v50, 0.0  ;;  %v1427_v25 = vadd.f32 %v1426_v6, %v4218_v11  ;;  %v3816_v30 = vpop.f32.mrb[63].mxu0 }
 0x875   :  { %1432 = vxpose.xlu0.b32.start [1/2] (short) %v1430_v13, 128  ;;  %v1431_v36 = vmax.f32 %v1427_v25, 0.0 }
 0x879   :  { %1433 = vxpose.xlu0.b32.end [2/2] (short) %v1431_v36, 128 }
 0x8f5   :  { %v1448_v28 = vpop.trf.xlu0 }
 0x8f9   :  { %v1449_v26 = vpop.trf.xlu0 }
 0x8fa   :  { %v1464_v12 = vpack.c.bf16 %v1449_v26, %v1448_v28 }
 0x8fc   :  { %3509 = vmatmul.mubr.msk.bf16.vlgmr.msra.gmra.mrb[96].mxu1 %vm209_vm3, %v1464_v12 }
 0x8fd   :  { %v1450_v14 = vpop.trf.xlu0  ;;  %1538 = vmatprep.mubr.bf16.mxu1 %v4128_v1  ;;  %1907 = vmatpush1.bf16.msra.mxu1 %v4796_v55 }
 0x8fe   :  { %2316 = vmatprep.subr.bf16.mxu1 %v4802_v20 }
 0x901   :  { %v1451_v21 = vpop.trf.xlu0 }
 0x902   :  { %v1465_v5 = vpack.c.bf16 %v1451_v21, %v1450_v14 }
 0x904   :  { %3510 = vmatmul.mubr.msk.bf16.gmra.mrb[100].mxu1 %vm209_vm3, %v1465_v5 }
 0x905   :  { %v1452_v15 = vpop.trf.xlu0  ;;  %1548 = vmatprep.mubr.bf16.mxu1 %v4128_v1 }
 0x909   :  { %v1453_v18 = vpop.trf.xlu0 }
 0x90a   :  { %v1466_v59 = vpack.c.bf16 %v1453_v18, %v1452_v15 }
 0x90c   :  { %3511 = vmatmul.mubr.msk.bf16.gmra.mrb[104].mxu1 %vm209_vm3, %v1466_v59  ;;  %v1795_v59 = vld [vmem:[#allocation2 + $0x10] sm:$0xf] }
 0x90d   :  { %v1454_v37 = vpop.trf.xlu0  ;;  %1558 = vmatprep.mubr.bf16.mxu1 %v4128_v1 }
 0x911   :  { %v1455_v48 = vpop.trf.xlu0 }
 0x912   :  { %v1467_v40 = vpack.c.bf16 %v1455_v48, %v1454_v37 }
 0x914   :  { %3512 = vmatmul.mubr.msk.bf16.gmra.mrb[108].mxu1 %vm209_vm3, %v1467_v40 }
 0x915   :  { %v1456_v47 = vpop.trf.xlu0  ;;  %1568 = vmatprep.mubr.bf16.mxu1 %v4128_v1 }
 0x919   :  { %v1457_v61 = vpop.trf.xlu0 }
 0x91a   :  { %v1468_v49 = vpack.c.bf16 %v1457_v61, %v1456_v47  ;;  %v1797_v47 = vsel %vm112_vm1, %v1795_v59, 0 }
 0x91c   :  { %3513 = vmatmul.mubr.msk.bf16.gmra.mrb[112].mxu1 %vm209_vm3, %v1468_v49 }
 0x91d   :  { %v1458_v63 = vpop.trf.xlu0  ;;  %1578 = vmatprep.mubr.bf16.mxu1 %v4128_v1 }
 0x921   :  { %v1459_v44 = vpop.trf.xlu0 }
 0x922   :  { %v1469_v22 = vpack.c.bf16 %v1459_v44, %v1458_v63 }
 0x924   :  { %3514 = vmatmul.mubr.msk.bf16.gmra.mrb[116].mxu1 %vm209_vm3, %v1469_v22 }
 0x925   :  { %v1460_v39 = vpop.trf.xlu0  ;;  %1588 = vmatprep.mubr.bf16.mxu1 %v4128_v1 }
 0x929   :  { %v1461_v16 = vpop.trf.xlu0 }
 0x92a   :  { %v1470_v33 = vpack.c.bf16 %v1461_v16, %v1460_v39 }
 0x92c   :  { %3515 = vmatmul.mubr.msk.bf16.gmra.mrb[120].mxu1 %vm209_vm3, %v1470_v33 }
 0x92d   :  { %v1462_v51 = vpop.trf.xlu0  ;;  %1598 = vmatprep.mubr.bf16.mxu1 %v4128_v1 }
 0x931   :  { %v1463_v42 = vpop.trf.xlu0 }
 0x932   :  { %v1471_v58 = vpack.c.bf16 %v1463_v42, %v1462_v51 }
 0x934   :  { %3516 = vmatmul.mubr.msk.bf16.gmra.mrb[124].mxu1 %vm209_vm3, %v1471_v58 }
 0x935   :  { %1938 = vmatprep.mubr.bf16.mxu1 %v4128_v1 }
 0x9cf   :  { %v1530_v50 = vpop.f32.mrb[96].mxu1 }
 0x9d0   :  { %v1609_v35 = vadd.f32 %v4653_v57, %v1530_v50  ;;  %v4820_v6 = vpop.f32.mrb[97].mxu1 }
 0x9d1   :  { %v1534_v13 = vpop.f32.mrb[98].mxu1 }
 0x9d2   :  { %v1610_v25 = vadd.f32 %v4653_v57, %v1534_v13  ;;  %v4823_v30 = vpop.f32.mrb[99].mxu1  ;;  %v1625_v36 = vmax.f32 %v1609_v35, 0.0 }
 0x9d4   :  { %v1626_v28 = vmax.f32 %v1610_v25, 0.0 }
 0x9d6   :  { %v1641_v26 = vpack.c.bf16 %v1626_v28, %v1625_v36 }
 0x9d7   :  { %v1540_v12 = vpop.f32.mrb[100].mxu1 }
 0x9d8   :  { %v1611_v14 = vadd.f32 %v4653_v57, %v1540_v12  ;;  %v4826_v21 = vpop.f32.mrb[101].mxu1  ;;  %3833 = vmatprep.mubr.bf16.mxu0 %v1641_v26 }
 0x9d9   :  { %v1544_v5 = vpop.f32.mrb[102].mxu1 }
 0x9da   :  { %v1612_v15 = vadd.f32 %v4653_v57, %v1544_v5  ;;  %v4829_v18 = vpop.f32.mrb[103].mxu1  ;;  %v1627_v37 = vmax.f32 %v1611_v14, 0.0 }
 0x9dc   :  { %v1628_v48 = vmax.f32 %v1612_v15, 0.0 }
 0x9de   :  { %v1642_v40 = vpack.c.bf16 %v1628_v48, %v1627_v37 }
 0x9df   :  { %v1550_v61 = vpop.f32.mrb[104].mxu1 }
 0x9e0   :  { %v1613_v49 = vadd.f32 %v4653_v57, %v1550_v61  ;;  %v4833_v63 = vpop.f32.mrb[105].mxu1  ;;  %3834 = vmatmul.mubr.bf16.vlgmr.msra.gmra.mrb[64].mxu0 %v1642_v40 }
 0x9e1   :  { %v1554_v44 = vpop.f32.mrb[106].mxu1  ;;  %3850 = vmatpush3.bf16.msra.mxu0 %v1797_v47 }
 0x9e2   :  { %v1614_v22 = vadd.f32 %v4653_v57, %v1554_v44  ;;  %v4836_v39 = vpop.f32.mrb[107].mxu1  ;;  %3855 = vmatprep.subr.bf16.mxu0 %v4632_v31  ;;  %v1629_v16 = vmax.f32 %v1613_v49, 0.0 }
 0x9e4   :  { %v1630_v33 = vmax.f32 %v1614_v22, 0.0 }
 0x9e6   :  { %v1643_v51 = vpack.c.bf16 %v1630_v33, %v1629_v16 }
 0x9e7   :  { %v1560_v42 = vpop.f32.mrb[108].mxu1 }
 0x9e8   :  { %v1615_v58 = vadd.f32 %v4653_v57, %v1560_v42  ;;  %v4840_v50 = vpop.f32.mrb[109].mxu1  ;;  %3837 = vmatprep.mubr.bf16.mxu0 %v1643_v51 }
 0x9e9   :  { %v1564_v35 = vpop.f32.mrb[110].mxu1 }
 0x9ea   :  { %v1616_v13 = vadd.f32 %v4653_v57, %v1564_v35  ;;  %v4843_v25 = vpop.f32.mrb[111].mxu1  ;;  %v1631_v36 = vmax.f32 %v1615_v58, 0.0 }
 0x9ec   :  { %v1632_v28 = vmax.f32 %v1616_v13, 0.0 }
 0x9ee   :  { %v1644_v26 = vpack.c.bf16 %v1632_v28, %v1631_v36 }
 0x9ef   :  { %v1570_v12 = vpop.f32.mrb[112].mxu1 }
 0x9f0   :  { %v1617_v14 = vadd.f32 %v4653_v57, %v1570_v12  ;;  %v4846_v5 = vpop.f32.mrb[113].mxu1  ;;  %3838 = vmatmul.mubr.bf16.gmra.mrb[68].mxu0 %v1644_v26 }
 0x9f1   :  { %v1574_v15 = vpop.f32.mrb[114].mxu1 }
 0x9f2   :  { %v1618_v59 = vadd.f32 %v4653_v57, %v1574_v15  ;;  %v4849_v37 = vpop.f32.mrb[115].mxu1  ;;  %v1633_v48 = vmax.f32 %v1617_v14, 0.0 }
 0x9f4   :  { %v1634_v40 = vmax.f32 %v1618_v59, 0.0 }
 0x9f6   :  { %v1645_v47 = vpack.c.bf16 %v1634_v40, %v1633_v48 }
 0x9f7   :  { %v1580_v61 = vpop.f32.mrb[116].mxu1 }
 0x9f8   :  { %v1619_v49 = vadd.f32 %v4653_v57, %v1580_v61  ;;  %v4852_v44 = vpop.f32.mrb[117].mxu1  ;;  %3841 = vmatprep.mubr.bf16.mxu0 %v1645_v47 }
 0x9f9   :  { %v1584_v22 = vpop.f32.mrb[118].mxu1 }
 0x9fa   :  { %v1620_v16 = vadd.f32 %v4653_v57, %v1584_v22  ;;  %v4855_v33 = vpop.f32.mrb[119].mxu1  ;;  %v1635_v51 = vmax.f32 %v1619_v49, 0.0 }
 0x9fc   :  { %v1636_v42 = vmax.f32 %v1620_v16, 0.0 }
 0x9fe   :  { %v1646_v58 = vpack.c.bf16 %v1636_v42, %v1635_v51 }
 0x9ff   :  { %v1590_v35 = vpop.f32.mrb[120].mxu1 }
 0xa00   :  { %v1621_v13 = vadd.f32 %v4653_v57, %v1590_v35  ;;  %v4858_v36 = vpop.f32.mrb[121].mxu1  ;;  %3842 = vmatmul.mubr.bf16.gmra.mrb[72].mxu0 %v1646_v58 }
 0xa01   :  { %v1594_v28 = vpop.f32.mrb[122].mxu1 }
 0xa02   :  { %v1622_v26 = vadd.f32 %v4653_v57, %v1594_v28  ;;  %v4861_v12 = vpop.f32.mrb[123].mxu1  ;;  %v1637_v14 = vmax.f32 %v1621_v13, 0.0 }
 0xa04   :  { %v1638_v15 = vmax.f32 %v1622_v26, 0.0 }
 0xa06   :  { %v1647_v59 = vpack.c.bf16 %v1638_v15, %v1637_v14 }
 0xa07   :  { %v1600_v48 = vpop.f32.mrb[124].mxu1 }
 0xa08   :  { %v1623_v40 = vadd.f32 %v4653_v57, %v1600_v48  ;;  %v4864_v47 = vpop.f32.mrb[125].mxu1  ;;  %3845 = vmatprep.mubr.bf16.mxu0 %v1647_v59 }
 0xa09   :  { %v1604_v61 = vpop.f32.mrb[126].mxu1 }
 0xa0a   :  { %v1624_v49 = vadd.f32 %v4653_v57, %v1604_v61  ;;  %v4867_v22 = vpop.f32.mrb[127].mxu1  ;;  %v1639_v16 = vmax.f32 %v1623_v40, 0.0 }
 0xa0c   :  { %v1640_v51 = vmax.f32 %v1624_v49, 0.0  ;;  %v4898_v49 = vld [vmem:[%s5643_s6] ss:$0 sm:$0xff] }
 0xa0e   :  { %v1648_v42 = vpack.c.bf16 %v1640_v51, %v1639_v16 }
 0xa10   :  { %3846 = vmatmul.mubr.bf16.gmra.mrb[76].mxu0 %v1648_v42 }
 0xa11   :  { %3851 = vmatprep.mubr.msk.bf16.mxu0 %vm4127_vm0, %v4126_v0 }
 0xa18   :  { %3852 = vmatmul.mubr.msk.bf16.vlgmr.msra.gmra.mrb[80].mxu0 %vm108_vm2, %v4675_v2 }
 0xa19   :  { %3856 = vmatpush3.bf16.msra.mxu0 %v4632_v31 }
 0xa1a   :  { %3857 = vmatprep.subr.bf16.mxu0 %v4680_v3 }
 0xa1d   :  { %3858 = vmatpush3.bf16.msra.mxu0 %v4680_v3 }
 0xa1e   :  { %3859 = vmatprep.subr.bf16.mxu0 %v4684_v38 }
 0xa21   :  { %3860 = vmatpush3.bf16.msra.mxu0 %v4684_v38 }
 0xa22   :  { %3861 = vmatprep.subr.bf16.mxu0 %v4688_v43 }
 0xa25   :  { %3862 = vmatpush3.bf16.msra.mxu0 %v4688_v43 }
 0xa26   :  { %3863 = vmatprep.subr.bf16.mxu0 %v4692_v29 }
 0xa29   :  { %3864 = vmatpush3.bf16.msra.mxu0 %v4692_v29 }
 0xa2a   :  { %3865 = vmatprep.subr.bf16.mxu0 %v4696_v8 }
 0xa2d   :  { %3866 = vmatpush3.bf16.msra.mxu0 %v4696_v8 }
 0xa2e   :  { %3867 = vmatprep.subr.bf16.mxu0 %v4700_v52 }
 0xa31   :  { %3868 = vmatpush3.bf16.msra.mxu0 %v4700_v52 }
 0xa32   :  { %3869 = vmatprep.subr.bf16.mxu0 %v4704_v60 }
 0xa35   :  { %3870 = vmatpush3.bf16.msra.mxu0 %v4704_v60 }
 0xa36   :  { %3887 = vmatprep.subr.bf16.mxu0 %v4126_v0 }
 0xab3   :  { %v3835_v58 = vpop.f32.mrb[64].mxu0 }
 0xab4   :  { %v1692_v35 = vadd.f32 %v3835_v58, %v4826_v21  ;;  %v1683_v13 = vpop.f32.mrb[65].mxu0 }
 0xab5   :  { %v1684_v28 = vadd.f32 %v1683_v13, %v4820_v6  ;;  %v3836_v26 = vpop.f32.mrb[66].mxu0 }
 0xab6   :  { %v1748_v14 = vadd.f32 %v4495_v4, %v1692_v35  ;;  %v1695_v15 = vadd.f32 %v3836_v26, %v4829_v18  ;;  %v1686_v59 = vpop.f32.mrb[67].mxu0 }
 0xab7   :  { %v1746_v48 = vadd.f32 %v4495_v4, %v1684_v28  ;;  %v1687_v40 = vadd.f32 %v1686_v59, %v4823_v30 }
 0xab8   :  { %v1764_v61 = vmax.f32 %v1748_v14, 0.0  ;;  %v1749_v21 = vadd.f32 %v4898_v49, %v1695_v15 }
 0xab9   :  { %v1762_v16 = vmax.f32 %v1746_v48, 0.0  ;;  %v1747_v6 = vadd.f32 %v4898_v49, %v1687_v40 }
 0xaba   :  { %v4903_v51 = vmax.f32 %v4718_v23, %v1764_v61  ;;  %v1765_v18 = vmax.f32 %v1749_v21, 0.0 }
 0xabb   :  { %v4906_v42 = vmax.f32 %v4721_v62, %v1762_v16  ;;  %v1763_v4 = vmax.f32 %v1747_v6, 0.0 }
 0xabc   :  { %v4909_v30 = vmax.f32 %v4724_v45, %v1765_v18 }
 0xabd   :  { %v4912_v58 = vmax.f32 %v4727_v56, %v1763_v4 }
 0xac3   :  { %v3839_v35 = vpop.f32.mrb[68].mxu0 }
 0xac4   :  { %v1708_v13 = vadd.f32 %v3839_v35, %v4840_v50  ;;  %v1699_v28 = vpop.f32.mrb[69].mxu0 }
 0xac5   :  { %v1700_v26 = vadd.f32 %v1699_v28, %v4833_v63  ;;  %v3840_v14 = vpop.f32.mrb[70].mxu0 }
 0xac6   :  { %v1752_v23 = vadd.f32 %v4898_v49, %v1708_v13  ;;  %v1711_v15 = vadd.f32 %v3840_v14, %v4843_v25  ;;  %v1702_v62 = vpop.f32.mrb[71].mxu0 }
 0xac7   :  { %v1750_v59 = vadd.f32 %v4898_v49, %v1700_v26  ;;  %v1703_v45 = vadd.f32 %v1702_v62, %v4836_v39 }
 0xac8   :  { %v1768_v48 = vmax.f32 %v1752_v23, 0.0  ;;  %v1753_v56 = vadd.f32 %v4898_v49, %v1711_v15 }
 0xac9   :  { %v1766_v40 = vmax.f32 %v1750_v59, 0.0  ;;  %v1751_v61 = vadd.f32 %v4898_v49, %v1703_v45 }
 0xaca   :  { %v4923_v50 = vmax.f32 %v4738_v46, %v1768_v48  ;;  %v1769_v63 = vmax.f32 %v1753_v56, 0.0 }
 0xacb   :  { %v4926_v21 = vmax.f32 %v4741_v17, %v1766_v40  ;;  %v1767_v16 = vmax.f32 %v1751_v61, 0.0 }
 0xacc   :  { %v4929_v25 = vmax.f32 %v4744_v54, %v1769_v63 }
 0xacd   :  { %v4932_v6 = vmax.f32 %v4747_v24, %v1767_v16 }
 0xad3   :  { %v3843_v39 = vpop.f32.mrb[72].mxu0 }
 0xad4   :  { %v1724_v18 = vadd.f32 %v3843_v39, %v4852_v44  ;;  %v1715_v4 = vpop.f32.mrb[73].mxu0 }
 0xad5   :  { %v1716_v35 = vadd.f32 %v1715_v4, %v4846_v5  ;;  %v3844_v13 = vpop.f32.mrb[74].mxu0 }
 0xad6   :  { %v1756_v46 = vadd.f32 %v4898_v49, %v1724_v18  ;;  %v1727_v28 = vadd.f32 %v3844_v13, %v4855_v33  ;;  %v1718_v17 = vpop.f32.mrb[75].mxu0 }
 0xad7   :  { %v1754_v26 = vadd.f32 %v4898_v49, %v1716_v35  ;;  %v1719_v54 = vadd.f32 %v1718_v17, %v4849_v37 }
 0xad8   :  { %v1772_v14 = vmax.f32 %v1756_v46, 0.0  ;;  %v1757_v24 = vadd.f32 %v4898_v49, %v1727_v28 }
 0xad9   :  { %v1770_v23 = vmax.f32 %v1754_v26, 0.0  ;;  %v1755_v15 = vadd.f32 %v4898_v49, %v1719_v54 }
 0xada   :  { %v4943_v44 = vmax.f32 %v4758_v41, %v1772_v14  ;;  %v1773_v5 = vmax.f32 %v1757_v24, 0.0 }
 0xadb   :  { %v4946_v62 = vmax.f32 %v4761_v9, %v1770_v23  ;;  %v1771_v59 = vmax.f32 %v1755_v15, 0.0 }
 0xadc   :  { %v4949_v33 = vmax.f32 %v4764_v19, %v1773_v5 }
 0xadd   :  { %v4952_v45 = vmax.f32 %v4767_v32, %v1771_v59 }
 0xae3   :  { %v3847_v37 = vpop.f32.mrb[76].mxu0 }
 0xae4   :  { %v1740_v48 = vadd.f32 %v3847_v37, %v4864_v47  ;;  %v1731_v56 = vpop.f32.mrb[77].mxu0 }
 0xae5   :  { %v1732_v40 = vadd.f32 %v1731_v56, %v4858_v36  ;;  %v3848_v61 = vpop.f32.mrb[78].mxu0 }
 0xae6   :  { %v1760_v41 = vadd.f32 %v4898_v49, %v1740_v48  ;;  %v1743_v63 = vadd.f32 %v3848_v61, %v4867_v22  ;;  %v1734_v9 = vpop.f32.mrb[79].mxu0 }
 0xae7   :  { %v1758_v16 = vadd.f32 %v4898_v49, %v1732_v40  ;;  %v1735_v19 = vadd.f32 %v1734_v9, %v4861_v12 }
 0xae8   :  { %v1776_v39 = vmax.f32 %v1760_v41, 0.0  ;;  %v1761_v32 = vadd.f32 %v4898_v49, %v1743_v63 }
 0xae9   :  { %v1774_v18 = vmax.f32 %v1758_v16, 0.0  ;;  %v1759_v4 = vadd.f32 %v4898_v49, %v1735_v19 }
 0xaea   :  { %v4963_v47 = vmax.f32 %v4778_v53, %v1776_v39  ;;  %v1777_v36 = vmax.f32 %v1761_v32, 0.0 }
 0xaeb   :  { %v4966_v35 = vmax.f32 %v4781_v34, %v1774_v18  ;;  %v1775_v13 = vmax.f32 %v1759_v4, 0.0  ;;  %v1833_v22 = vpop.f32.mrb[80].mxu0 }
 0xaec   :  { %v4969_v46 = vmax.f32 %v4784_v10, %v1777_v36  ;;  %v1834_v12 = vadd.f32 %v1833_v22, %v4215_v7  ;;  %v3853_v28 = vpop.f32.mrb[81].mxu0 }
 0xaed   :  { %v4973_v17 = vmax.f32 %v4788_v27, %v1775_v13  ;;  %v1836_v26 = vpop.f32.mrb[82].mxu0 }
 0xaee   :  { %v1840_v54 = vmax.f32 %v1834_v12, 0.0  ;;  %v1837_v53 = vadd.f32 %v1836_v26, %v4218_v11  ;;  %v3854_v14 = vpop.f32.mrb[83].mxu0 }
 0xaf0   :  { %1842 = vxpose.xlu1.b32.start [1/2] (short) %v1840_v54, 128  ;;  %v1841_v24 = vmax.f32 %v1837_v53, 0.0 }
 0xaf4   :  { %1843 = vxpose.xlu1.b32.end [2/2] (short) %v1841_v24, 128 }
 0xb70   :  { %v1858_v34 = vpop.trf.xlu1 }
 0xb74   :  { %v1859_v23 = vpop.trf.xlu1 }
 0xb75   :  { %v1874_v15 = vpack.c.bf16 %v1859_v23, %v1858_v34 }
 0xb77   :  { %3518 = vmatmul.mubr.msk.bf16.vlgmr.msra.gmra.mrb[128].mxu1 %vm209_vm3, %v1874_v15 }
 0xb78   :  { %v1860_v10 = vpop.trf.xlu1  ;;  %1948 = vmatprep.mubr.bf16.mxu1 %v4128_v1  ;;  %2317 = vmatpush1.bf16.msra.mxu1 %v4796_v55 }
 0xb79   :  { %2726 = vmatprep.subr.bf16.mxu1 %v4802_v20 }
 0xb7c   :  { %v1861_v27 = vpop.trf.xlu1 }
 0xb7d   :  { %v1875_v5 = vpack.c.bf16 %v1861_v27, %v1860_v10 }
 0xb7f   :  { %3519 = vmatmul.mubr.msk.bf16.gmra.mrb[132].mxu1 %vm209_vm3, %v1875_v5 }
 0xb80   :  { %v1862_v59 = vpop.trf.xlu1  ;;  %1958 = vmatprep.mubr.bf16.mxu1 %v4128_v1 }
 0xb84   :  { %v1863_v37 = vpop.trf.xlu1 }
 0xb85   :  { %v1876_v48 = vpack.c.bf16 %v1863_v37, %v1862_v59 }
 0xb87   :  { %3520 = vmatmul.mubr.msk.bf16.gmra.mrb[136].mxu1 %vm209_vm3, %v1876_v48  ;;  %v2205_v48 = vld [vmem:[#allocation2 + $0x14] sm:$0xf] }
 0xb88   :  { %v1864_v56 = vpop.trf.xlu1  ;;  %1968 = vmatprep.mubr.bf16.mxu1 %v4128_v1 }
 0xb8c   :  { %v1865_v40 = vpop.trf.xlu1 }
 0xb8d   :  { %v1877_v61 = vpack.c.bf16 %v1865_v40, %v1864_v56 }
 0xb8f   :  { %3521 = vmatmul.mubr.msk.bf16.gmra.mrb[140].mxu1 %vm209_vm3, %v1877_v61 }
 0xb90   :  { %v1866_v41 = vpop.trf.xlu1  ;;  %1978 = vmatprep.mubr.bf16.mxu1 %v4128_v1 }
 0xb94   :  { %v1867_v63 = vpop.trf.xlu1 }
 0xb95   :  { %v1878_v9 = vpack.c.bf16 %v1867_v63, %v1866_v41  ;;  %v2207_v41 = vsel %vm112_vm1, %v2205_v48, 0 }
 0xb97   :  { %3522 = vmatmul.mubr.msk.bf16.gmra.mrb[144].mxu1 %vm209_vm3, %v1878_v9 }
 0xb98   :  { %v1868_v16 = vpop.trf.xlu1  ;;  %1988 = vmatprep.mubr.bf16.mxu1 %v4128_v1 }
 0xb9c   :  { %v1869_v19 = vpop.trf.xlu1 }
 0xb9d   :  { %v1879_v39 = vpack.c.bf16 %v1869_v19, %v1868_v16 }
 0xb9f   :  { %3523 = vmatmul.mubr.msk.bf16.gmra.mrb[148].mxu1 %vm209_vm3, %v1879_v39 }
 0xba0   :  { %v1870_v32 = vpop.trf.xlu1  ;;  %1998 = vmatprep.mubr.bf16.mxu1 %v4128_v1 }
 0xba4   :  { %v1871_v18 = vpop.trf.xlu1 }
 0xba5   :  { %v1880_v4 = vpack.c.bf16 %v1871_v18, %v1870_v32 }
 0xba7   :  { %3524 = vmatmul.mubr.msk.bf16.gmra.mrb[152].mxu1 %vm209_vm3, %v1880_v4 }
 0xba8   :  { %v1872_v36 = vpop.trf.xlu1  ;;  %2008 = vmatprep.mubr.bf16.mxu1 %v4128_v1 }
 0xbac   :  { %v1873_v13 = vpop.trf.xlu1 }
 0xbad   :  { %v1881_v22 = vpack.c.bf16 %v1873_v13, %v1872_v36 }
 0xbaf   :  { %3525 = vmatmul.mubr.msk.bf16.gmra.mrb[156].mxu1 %vm209_vm3, %v1881_v22 }
 0xbb0   :  { %2348 = vmatprep.mubr.bf16.mxu1 %v4128_v1 }
 0xc4a   :  { %v1940_v12 = vpop.f32.mrb[128].mxu1 }
 0xc4b   :  { %v2019_v28 = vadd.f32 %v4653_v57, %v1940_v12  ;;  %v4995_v26 = vpop.f32.mrb[129].mxu1 }
 0xc4c   :  { %v1944_v54 = vpop.f32.mrb[130].mxu1 }
 0xc4d   :  { %v2020_v53 = vadd.f32 %v4653_v57, %v1944_v54  ;;  %v4998_v14 = vpop.f32.mrb[131].mxu1  ;;  %v2035_v24 = vmax.f32 %v2019_v28, 0.0 }
 0xc4f   :  { %v2036_v34 = vmax.f32 %v2020_v53, 0.0 }
 0xc51   :  { %v2051_v23 = vpack.c.bf16 %v2036_v34, %v2035_v24 }
 0xc52   :  { %v1950_v15 = vpop.f32.mrb[132].mxu1 }
 0xc53   :  { %v2021_v10 = vadd.f32 %v4653_v57, %v1950_v15  ;;  %v5001_v27 = vpop.f32.mrb[133].mxu1  ;;  %3871 = vmatprep.mubr.bf16.mxu0 %v2051_v23 }
 0xc54   :  { %v1954_v5 = vpop.f32.mrb[134].mxu1 }
 0xc55   :  { %v2022_v59 = vadd.f32 %v4653_v57, %v1954_v5  ;;  %v5004_v37 = vpop.f32.mrb[135].mxu1  ;;  %v2037_v56 = vmax.f32 %v2021_v10, 0.0 }
 0xc57   :  { %v2038_v40 = vmax.f32 %v2022_v59, 0.0 }
 0xc59   :  { %v2052_v61 = vpack.c.bf16 %v2038_v40, %v2037_v56 }
 0xc5a   :  { %v1960_v63 = vpop.f32.mrb[136].mxu1 }
 0xc5b   :  { %v2023_v9 = vadd.f32 %v4653_v57, %v1960_v63  ;;  %v5008_v16 = vpop.f32.mrb[137].mxu1  ;;  %3872 = vmatmul.mubr.bf16.vlgmr.msra.gmra.mrb[84].mxu0 %v2052_v61 }
 0xc5c   :  { %v1964_v19 = vpop.f32.mrb[138].mxu1  ;;  %3888 = vmatpush3.bf16.msra.mxu0 %v2207_v41 }
 0xc5d   :  { %v2024_v39 = vadd.f32 %v4653_v57, %v1964_v19  ;;  %v5011_v32 = vpop.f32.mrb[139].mxu1  ;;  %3893 = vmatprep.subr.bf16.mxu0 %v4632_v31  ;;  %v2039_v18 = vmax.f32 %v2023_v9, 0.0 }
 0xc5f   :  { %v2040_v4 = vmax.f32 %v2024_v39, 0.0 }
 0xc61   :  { %v2053_v36 = vpack.c.bf16 %v2040_v4, %v2039_v18 }
 0xc62   :  { %v1970_v13 = vpop.f32.mrb[140].mxu1 }
 0xc63   :  { %v2025_v22 = vadd.f32 %v4653_v57, %v1970_v13  ;;  %v5015_v12 = vpop.f32.mrb[141].mxu1  ;;  %3875 = vmatprep.mubr.bf16.mxu0 %v2053_v36 }
 0xc64   :  { %v1974_v28 = vpop.f32.mrb[142].mxu1 }
 0xc65   :  { %v2026_v54 = vadd.f32 %v4653_v57, %v1974_v28  ;;  %v5018_v53 = vpop.f32.mrb[143].mxu1  ;;  %v2041_v24 = vmax.f32 %v2025_v22, 0.0 }
 0xc67   :  { %v2042_v34 = vmax.f32 %v2026_v54, 0.0 }
 0xc69   :  { %v2054_v23 = vpack.c.bf16 %v2042_v34, %v2041_v24 }
 0xc6a   :  { %v1980_v15 = vpop.f32.mrb[144].mxu1 }
 0xc6b   :  { %v2027_v31 = vadd.f32 %v4653_v57, %v1980_v15  ;;  %v5021_v10 = vpop.f32.mrb[145].mxu1  ;;  %3876 = vmatmul.mubr.bf16.gmra.mrb[88].mxu0 %v2054_v23 }
 0xc6c   :  { %v1984_v5 = vpop.f32.mrb[146].mxu1 }
 0xc6d   :  { %v2028_v59 = vadd.f32 %v4653_v57, %v1984_v5  ;;  %v5024_v48 = vpop.f32.mrb[147].mxu1  ;;  %v2043_v56 = vmax.f32 %v2027_v31, 0.0 }
 0xc6f   :  { %v2044_v40 = vmax.f32 %v2028_v59, 0.0 }
 0xc71   :  { %v2055_v61 = vpack.c.bf16 %v2044_v40, %v2043_v56 }
 0xc72   :  { %v1990_v41 = vpop.f32.mrb[148].mxu1 }
 0xc73   :  { %v2029_v63 = vadd.f32 %v4653_v57, %v1990_v41  ;;  %v5027_v9 = vpop.f32.mrb[149].mxu1  ;;  %3879 = vmatprep.mubr.bf16.mxu0 %v2055_v61 }
 0xc74   :  { %v1994_v19 = vpop.f32.mrb[150].mxu1 }
 0xc75   :  { %v2030_v39 = vadd.f32 %v4653_v57, %v1994_v19  ;;  %v5030_v18 = vpop.f32.mrb[151].mxu1  ;;  %v2045_v4 = vmax.f32 %v2029_v63, 0.0 }
 0xc77   :  { %v2046_v36 = vmax.f32 %v2030_v39, 0.0 }
 0xc79   :  { %v2056_v13 = vpack.c.bf16 %v2046_v36, %v2045_v4  ;;  %v5048_v36 = vld [vmem:[#allocation5] sm:$0xff]  }
 0xc7a   :  { %v2000_v22 = vpop.f32.mrb[152].mxu1 }
 0xc7b   :  { %v2031_v28 = vadd.f32 %v4653_v57, %v2000_v22  ;;  %v5033_v54 = vpop.f32.mrb[153].mxu1  ;;  %3880 = vmatmul.mubr.bf16.gmra.mrb[92].mxu0 %v2056_v13 }
 0xc7c   :  { %v2004_v24 = vpop.f32.mrb[154].mxu1 }
 0xc7d   :  { %v2032_v34 = vadd.f32 %v4653_v57, %v2004_v24  ;;  %v5036_v23 = vpop.f32.mrb[155].mxu1  ;;  %v2047_v15 = vmax.f32 %v2031_v28, 0.0 }
 0xc7f   :  { %v2048_v31 = vmax.f32 %v2032_v34, 0.0 }
 0xc81   :  { %v2057_v5 = vpack.c.bf16 %v2048_v31, %v2047_v15 }
 0xc82   :  { %v2010_v59 = vpop.f32.mrb[156].mxu1 }
 0xc83   :  { %v2033_v56 = vadd.f32 %v4653_v57, %v2010_v59  ;;  %v5039_v40 = vpop.f32.mrb[157].mxu1  ;;  %3883 = vmatprep.mubr.bf16.mxu0 %v2057_v5 }
 0xc84   :  { %v2014_v61 = vpop.f32.mrb[158].mxu1 }
 0xc85   :  { %v2034_v41 = vadd.f32 %v4653_v57, %v2014_v61  ;;  %v5042_v63 = vpop.f32.mrb[159].mxu1  ;;  %v2049_v19 = vmax.f32 %v2033_v56, 0.0 }
 0xc87   :  { %v2050_v39 = vmax.f32 %v2034_v41, 0.0 }
 0xc89   :  { %v2058_v4 = vpack.c.bf16 %v2050_v39, %v2049_v19 }
 0xc8b   :  { %3884 = vmatmul.mubr.bf16.gmra.mrb[96].mxu0 %v2058_v4 }
 0xc8c   :  { %3889 = vmatprep.mubr.msk.bf16.mxu0 %vm4127_vm0, %v4126_v0 }
 0xc93   :  { %3890 = vmatmul.mubr.msk.bf16.vlgmr.msra.gmra.mrb[100].mxu0 %vm108_vm2, %v4675_v2 }
 0xc94   :  { %3894 = vmatpush3.bf16.msra.mxu0 %v5048_v36 }
 0xc95   :  { %3895 = vmatprep.subr.bf16.mxu0 %v4680_v3 }
 0xc98   :  { %3896 = vmatpush3.bf16.msra.mxu0 %v4680_v3 }
 0xc99   :  { %3897 = vmatprep.subr.bf16.mxu0 %v4684_v38 }
 0xc9c   :  { %3898 = vmatpush3.bf16.msra.mxu0 %v4684_v38 }
 0xc9d   :  { %3899 = vmatprep.subr.bf16.mxu0 %v4688_v43 }
 0xca0   :  { %3900 = vmatpush3.bf16.msra.mxu0 %v4688_v43 }
 0xca1   :  { %3901 = vmatprep.subr.bf16.mxu0 %v4692_v29 }
 0xca4   :  { %3902 = vmatpush3.bf16.msra.mxu0 %v4692_v29 }
 0xca5   :  { %3903 = vmatprep.subr.bf16.mxu0 %v4696_v8 }
 0xca8   :  { %3904 = vmatpush3.bf16.msra.mxu0 %v4696_v8 }
 0xca9   :  { %3905 = vmatprep.subr.bf16.mxu0 %v4700_v52 }
 0xcac   :  { %3906 = vmatpush3.bf16.msra.mxu0 %v4700_v52 }
 0xcad   :  { %3907 = vmatprep.subr.bf16.mxu0 %v4704_v60 }
 0xcb0   :  { %3908 = vmatpush3.bf16.msra.mxu0 %v4704_v60 }
 0xcb1   :  { %3925 = vmatprep.subr.bf16.mxu0 %v4126_v0 }
 0xd2e   :  { %v3873_v57 = vpop.f32.mrb[84].mxu0 }
 0xd2f   :  { %v2102_v2 = vadd.f32 %v3873_v57, %v5001_v27  ;;  %v2093_v3 = vpop.f32.mrb[85].mxu0 }
 0xd30   :  { %v2094_v38 = vadd.f32 %v2093_v3, %v4995_v26  ;;  %v3874_v43 = vpop.f32.mrb[86].mxu0 }
 0xd31   :  { %v2158_v29 = vadd.f32 %v4898_v49, %v2102_v2  ;;  %v2105_v8 = vadd.f32 %v3874_v43, %v5004_v37  ;;  %v2096_v13 = vpop.f32.mrb[87].mxu0 }
 0xd32   :  { %v2156_v52 = vadd.f32 %v4898_v49, %v2094_v38  ;;  %v2097_v22 = vadd.f32 %v2096_v13, %v4998_v14 }
 0xd33   :  { %v2174_v28 = vmax.f32 %v2158_v29, 0.0  ;;  %v2159_v60 = vadd.f32 %v4898_v49, %v2105_v8 }
 0xd34   :  { %v2172_v24 = vmax.f32 %v2156_v52, 0.0  ;;  %v2157_v34 = vadd.f32 %v4898_v49, %v2097_v22 }
 0xd35   :  { %v5075_v27 = vmax.f32 %v4903_v51, %v2174_v28  ;;  %v2175_v26 = vmax.f32 %v2159_v60, 0.0 }
 0xd36   :  { %v5078_v15 = vmax.f32 %v4906_v42, %v2172_v24  ;;  %v2173_v31 = vmax.f32 %v2157_v34, 0.0 }
 0xd37   :  { %v5081_v37 = vmax.f32 %v4909_v30, %v2175_v26 }
 0xd38   :  { %v5084_v5 = vmax.f32 %v4912_v58, %v2173_v31 }
 0xd3e   :  { %v3877_v14 = vpop.f32.mrb[88].mxu0 }
 0xd3f   :  { %v2118_v59 = vadd.f32 %v3877_v14, %v5015_v12  ;;  %v2109_v56 = vpop.f32.mrb[89].mxu0 }
 0xd40   :  { %v2110_v61 = vadd.f32 %v2109_v56, %v5008_v16  ;;  %v3878_v41 = vpop.f32.mrb[90].mxu0 }
 0xd41   :  { %v2162_v51 = vadd.f32 %v4898_v49, %v2118_v59  ;;  %v2121_v19 = vadd.f32 %v3878_v41, %v5018_v53  ;;  %v2112_v42 = vpop.f32.mrb[91].mxu0 }
 0xd42   :  { %v2160_v39 = vadd.f32 %v4898_v49, %v2110_v61  ;;  %v2113_v30 = vadd.f32 %v2112_v42, %v5011_v32 }
 0xd43   :  { %v2178_v4 = vmax.f32 %v2162_v51, 0.0  ;;  %v2163_v58 = vadd.f32 %v4898_v49, %v2121_v19 }
 0xd44   :  { %v2176_v57 = vmax.f32 %v2160_v39, 0.0  ;;  %v2161_v2 = vadd.f32 %v4898_v49, %v2113_v30 }
 0xd45   :  { %v5095_v12 = vmax.f32 %v4923_v50, %v2178_v4  ;;  %v2179_v16 = vmax.f32 %v2163_v58, 0.0 }
 0xd46   :  { %v5098_v3 = vmax.f32 %v4926_v21, %v2176_v57  ;;  %v2177_v38 = vmax.f32 %v2161_v2, 0.0 }
 0xd47   :  { %v5101_v53 = vmax.f32 %v4929_v25, %v2179_v16 }
 0xd48   :  { %v5104_v43 = vmax.f32 %v4932_v6, %v2177_v38 }
 0xd4e   :  { %v3881_v32 = vpop.f32.mrb[92].mxu0 }
 0xd4f   :  { %v2134_v29 = vadd.f32 %v3881_v32, %v5027_v9  ;;  %v2125_v8 = vpop.f32.mrb[93].mxu0 }
 0xd50   :  { %v2126_v13 = vadd.f32 %v2125_v8, %v5021_v10  ;;  %v3882_v52 = vpop.f32.mrb[94].mxu0 }
 0xd51   :  { %v2166_v50 = vadd.f32 %v4898_v49, %v2134_v29  ;;  %v2137_v22 = vadd.f32 %v3882_v52, %v5030_v18  ;;  %v2128_v21 = vpop.f32.mrb[95].mxu0 }
 0xd52   :  { %v2164_v28 = vadd.f32 %v4898_v49, %v2126_v13  ;;  %v2129_v25 = vadd.f32 %v2128_v21, %v5024_v48 }
 0xd53   :  { %v2182_v60 = vmax.f32 %v2166_v50, 0.0  ;;  %v2167_v6 = vadd.f32 %v4898_v49, %v2137_v22 }
 0xd54   :  { %v2180_v24 = vmax.f32 %v2164_v28, 0.0  ;;  %v2165_v34 = vadd.f32 %v4898_v49, %v2129_v25 }
 0xd55   :  { %v5115_v9 = vmax.f32 %v4943_v44, %v2182_v60  ;;  %v2183_v10 = vmax.f32 %v2167_v6, 0.0 }
 0xd56   :  { %v5118_v26 = vmax.f32 %v4946_v62, %v2180_v24  ;;  %v2181_v31 = vmax.f32 %v2165_v34, 0.0 }
 0xd57   :  { %v5121_v18 = vmax.f32 %v4949_v33, %v2183_v10 }
 0xd58   :  { %v5124_v14 = vmax.f32 %v4952_v45, %v2181_v31 }
 0xd5e   :  { %v3885_v48 = vpop.f32.mrb[96].mxu0 }
 0xd5f   :  { %v2150_v59 = vadd.f32 %v3885_v48, %v5039_v40  ;;  %v2141_v56 = vpop.f32.mrb[97].mxu0 }
 0xd60   :  { %v2142_v61 = vadd.f32 %v2141_v56, %v5033_v54  ;;  %v3886_v41 = vpop.f32.mrb[98].mxu0 }
 0xd61   :  { %v2170_v44 = vadd.f32 %v4898_v49, %v2150_v59  ;;  %v2153_v51 = vadd.f32 %v3886_v41, %v5042_v63  ;;  %v2144_v62 = vpop.f32.mrb[99].mxu0 }
 0xd62   :  { %v2168_v19 = vadd.f32 %v4898_v49, %v2142_v61  ;;  %v2145_v33 = vadd.f32 %v2144_v62, %v5036_v23  ;;  %v5169_v62 = vld [vmem:[%s5641_s4] ss:$0 sm:$0xff] }
 0xd63   :  { %v2186_v42 = vmax.f32 %v2170_v44, 0.0  ;;  %v2171_v45 = vadd.f32 %v4898_v49, %v2153_v51 }
 0xd64   :  { %v2184_v39 = vmax.f32 %v2168_v19, 0.0  ;;  %v2169_v30 = vadd.f32 %v4898_v49, %v2145_v33 }
 0xd65   :  { %v5135_v40 = vmax.f32 %v4963_v47, %v2186_v42  ;;  %v2187_v54 = vmax.f32 %v2171_v45, 0.0 }
 0xd66   :  { %v5138_v4 = vmax.f32 %v4966_v35, %v2184_v39  ;;  %v2185_v58 = vmax.f32 %v2169_v30, 0.0  ;;  %v2243_v63 = vpop.f32.mrb[100].mxu0 }
 0xd67   :  { %v5141_v57 = vmax.f32 %v4969_v46, %v2187_v54  ;;  %v2244_v23 = vadd.f32 %v2243_v63, %v4215_v7  ;;  %v3891_v2 = vpop.f32.mrb[101].mxu0 }
 0xd68   :  { %v5145_v16 = vmax.f32 %v4973_v17, %v2185_v58  ;;  %v2246_v38 = vpop.f32.mrb[102].mxu0 }
 0xd69   :  { %v2250_v32 = vmax.f32 %v2244_v23, 0.0  ;;  %v2247_v47 = vadd.f32 %v2246_v38, %v4218_v11  ;;  %v3892_v29 = vpop.f32.mrb[103].mxu0 }
 0xd6a   :  { %v2615_v29 = vld [vmem:[#allocation2 + $0x18] sm:$0xf] }
 0xd6b   :  { %2252 = vxpose.xlu0.b32.start [1/2] (short) %v2250_v32, 128  ;;  %v2251_v8 = vmax.f32 %v2247_v47, 0.0 }
 0xd6f   :  { %2253 = vxpose.xlu0.b32.end [2/2] (short) %v2251_v8, 128 }
 0xdeb   :  { %v2268_v35 = vpop.trf.xlu0 }
 0xdef   :  { %v2269_v13 = vpop.trf.xlu0 }
 0xdf0   :  { %v2284_v52 = vpack.c.bf16 %v2269_v13, %v2268_v35 }
 0xdf2   :  { %3527 = vmatmul.mubr.msk.bf16.vlgmr.msra.gmra.mrb[160].mxu1 %vm209_vm3, %v2284_v52  ;;  %v2617_v52 = vsel %vm112_vm1, %v2615_v29, 0 }
 0xdf3   :  { %v2270_v46 = vpop.trf.xlu0  ;;  %2358 = vmatprep.mubr.bf16.mxu1 %v4128_v1  ;;  %2727 = vmatpush1.bf16.msra.mxu1 %v4796_v55 }
 0xdf4   :  { %3136 = vmatprep.subr.bf16.mxu1 %v4802_v20 }
 0xdf7   :  { %v2271_v17 = vpop.trf.xlu0 }
 0xdf8   :  { %v2285_v50 = vpack.c.bf16 %v2271_v17, %v2270_v46 }
 0xdfa   :  { %3528 = vmatmul.mubr.msk.bf16.gmra.mrb[164].mxu1 %vm209_vm3, %v2285_v50 }
 0xdfb   :  { %v2272_v22 = vpop.trf.xlu0  ;;  %2368 = vmatprep.mubr.bf16.mxu1 %v4128_v1 }
 0xdff   :  { %v2273_v21 = vpop.trf.xlu0 }
 0xe00   :  { %v2286_v28 = vpack.c.bf16 %v2273_v21, %v2272_v22 }
 0xe02   :  { %3529 = vmatmul.mubr.msk.bf16.gmra.mrb[168].mxu1 %vm209_vm3, %v2286_v28 }
 0xe03   :  { %v2274_v25 = vpop.trf.xlu0  ;;  %2378 = vmatprep.mubr.bf16.mxu1 %v4128_v1 }
 0xe07   :  { %v2275_v60 = vpop.trf.xlu0 }
 0xe08   :  { %v2287_v6 = vpack.c.bf16 %v2275_v60, %v2274_v25 }
 0xe0a   :  { %3530 = vmatmul.mubr.msk.bf16.gmra.mrb[172].mxu1 %vm209_vm3, %v2287_v6 }
 0xe0b   :  { %v2276_v55 = vpop.trf.xlu0  ;;  %2388 = vmatprep.mubr.bf16.mxu1 %v4128_v1 }
 0xe0f   :  { %v2277_v20 = vpop.trf.xlu0 }
 0xe10   :  { %v2288_v24 = vpack.c.bf16 %v2277_v20, %v2276_v55 }
 0xe12   :  { %3531 = vmatmul.mubr.msk.bf16.gmra.mrb[176].mxu1 %vm209_vm3, %v2288_v24 }
 0xe13   :  { %v2278_v34 = vpop.trf.xlu0  ;;  %2398 = vmatprep.mubr.bf16.mxu1 %v4128_v1 }
 0xe17   :  { %v2279_v10 = vpop.trf.xlu0 }
 0xe18   :  { %v2289_v31 = vpack.c.bf16 %v2279_v10, %v2278_v34 }
 0xe1a   :  { %3532 = vmatmul.mubr.msk.bf16.gmra.mrb[180].mxu1 %vm209_vm3, %v2289_v31 }
 0xe1b   :  { %v2280_v48 = vpop.trf.xlu0  ;;  %2408 = vmatprep.mubr.bf16.mxu1 %v4128_v1 }
 0xe1f   :  { %v2281_v59 = vpop.trf.xlu0 }
 0xe20   :  { %v2290_v56 = vpack.c.bf16 %v2281_v59, %v2280_v48 }
 0xe22   :  { %3533 = vmatmul.mubr.msk.bf16.gmra.mrb[184].mxu1 %vm209_vm3, %v2290_v56 }
 0xe23   :  { %v2282_v61 = vpop.trf.xlu0  ;;  %2418 = vmatprep.mubr.bf16.mxu1 %v4128_v1 }
 0xe27   :  { %v2283_v41 = vpop.trf.xlu0 }
 0xe28   :  { %v2291_v44 = vpack.c.bf16 %v2283_v41, %v2282_v61 }
 0xe2a   :  { %3534 = vmatmul.mubr.msk.bf16.gmra.mrb[188].mxu1 %vm209_vm3, %v2291_v44 }
 0xe2b   :  { %2758 = vmatprep.mubr.bf16.mxu1 %v4128_v1 }
 0xec5   :  { %v2350_v51 = vpop.f32.mrb[160].mxu1 }
 0xec6   :  { %v2429_v19 = vadd.f32 %v5169_v62, %v2350_v51  ;;  %v5172_v33 = vpop.f32.mrb[161].mxu1 }
 0xec7   :  { %v2354_v42 = vpop.f32.mrb[162].mxu1 }
 0xec8   :  { %v2430_v45 = vadd.f32 %v5169_v62, %v2354_v42  ;;  %v5175_v39 = vpop.f32.mrb[163].mxu1  ;;  %v2445_v30 = vmax.f32 %v2429_v19, 0.0 }
 0xeca   :  { %v2446_v54 = vmax.f32 %v2430_v45, 0.0 }
 0xecc   :  { %v2461_v58 = vpack.c.bf16 %v2446_v54, %v2445_v30 }
 0xecd   :  { %v2360_v63 = vpop.f32.mrb[164].mxu1 }
 0xece   :  { %v2431_v23 = vadd.f32 %v5169_v62, %v2360_v63  ;;  %v5178_v2 = vpop.f32.mrb[165].mxu1  ;;  %3909 = vmatprep.mubr.bf16.mxu0 %v2461_v58 }
 0xecf   :  { %v2364_v38 = vpop.f32.mrb[166].mxu1 }
 0xed0   :  { %v2432_v32 = vadd.f32 %v5169_v62, %v2364_v38  ;;  %v5181_v47 = vpop.f32.mrb[167].mxu1  ;;  %v2447_v8 = vmax.f32 %v2431_v23, 0.0 }
 0xed2   :  { %v2448_v35 = vmax.f32 %v2432_v32, 0.0 }
 0xed4   :  { %v2462_v13 = vpack.c.bf16 %v2448_v35, %v2447_v8 }
 0xed5   :  { %v2370_v46 = vpop.f32.mrb[168].mxu1 }
 0xed6   :  { %v2433_v17 = vadd.f32 %v5169_v62, %v2370_v46  ;;  %v5185_v50 = vpop.f32.mrb[169].mxu1  ;;  %3910 = vmatmul.mubr.bf16.vlgmr.msra.gmra.mrb[104].mxu0 %v2462_v13 }
 0xed7   :  { %v2374_v22 = vpop.f32.mrb[170].mxu1  ;;  %3926 = vmatpush3.bf16.msra.mxu0 %v2617_v52 }
 0xed8   :  { %v2434_v21 = vadd.f32 %v5169_v62, %v2374_v22  ;;  %v5188_v28 = vpop.f32.mrb[171].mxu1  ;;  %3931 = vmatprep.subr.bf16.mxu0 %v5048_v36  ;;  %v2449_v25 = vmax.f32 %v2433_v17, 0.0 }
 0xeda   :  { %v2450_v60 = vmax.f32 %v2434_v21, 0.0 }
 0xedc   :  { %v2463_v6 = vpack.c.bf16 %v2450_v60, %v2449_v25 }
 0xedd   :  { %v2380_v55 = vpop.f32.mrb[172].mxu1 }
 0xede   :  { %v2435_v20 = vadd.f32 %v5169_v62, %v2380_v55  ;;  %v5192_v24 = vpop.f32.mrb[173].mxu1  ;;  %3913 = vmatprep.mubr.bf16.mxu0 %v2463_v6 }
 0xedf   :  { %v2384_v34 = vpop.f32.mrb[174].mxu1 }
 0xee0   :  { %v2436_v10 = vadd.f32 %v5169_v62, %v2384_v34  ;;  %v5195_v31 = vpop.f32.mrb[175].mxu1  ;;  %v2451_v48 = vmax.f32 %v2435_v20, 0.0 }
 0xee2   :  { %v2452_v59 = vmax.f32 %v2436_v10, 0.0 }
 0xee4   :  { %v2464_v56 = vpack.c.bf16 %v2452_v59, %v2451_v48 }
 0xee5   :  { %v2390_v61 = vpop.f32.mrb[176].mxu1 }
 0xee6   :  { %v2437_v41 = vadd.f32 %v5169_v62, %v2390_v61  ;;  %v5198_v44 = vpop.f32.mrb[177].mxu1  ;;  %3914 = vmatmul.mubr.bf16.gmra.mrb[108].mxu0 %v2464_v56 }
 0xee7   :  { %v2394_v51 = vpop.f32.mrb[178].mxu1 }
 0xee8   :  { %v2438_v19 = vadd.f32 %v5169_v62, %v2394_v51  ;;  %v5201_v42 = vpop.f32.mrb[179].mxu1  ;;  %v2453_v45 = vmax.f32 %v2437_v41, 0.0 }
 0xeea   :  { %v2454_v30 = vmax.f32 %v2438_v19, 0.0  ;;  %v5226_v19 = vld [vmem:[%s5638_s1] sm:$0xff]  }
 0xeec   :  { %v2465_v54 = vpack.c.bf16 %v2454_v30, %v2453_v45  ;;  %v5231_v45 = vld [vmem:[#allocation5 + $0x8] sm:$0xff]   ;;  %v5235_v30 = vld [vmem:[#allocation5 + $0x10] sm:$0xff]  }
 0xeed   :  { %v2400_v58 = vpop.f32.mrb[180].mxu1 }
 0xeee   :  { %v2439_v63 = vadd.f32 %v5169_v62, %v2400_v58  ;;  %v5204_v23 = vpop.f32.mrb[181].mxu1  ;;  %3917 = vmatprep.mubr.bf16.mxu0 %v2465_v54  ;;  %v5239_v54 = vld [vmem:[#allocation5 + $0x18] sm:$0xff]   ;;  %v5243_v58 = vld [vmem:[#allocation5 + $0x20] sm:$0xff]  }
 0xeef   :  { %v2404_v38 = vpop.f32.mrb[182].mxu1 }
 0xef0   :  { %v2440_v32 = vadd.f32 %v5169_v62, %v2404_v38  ;;  %v5207_v29 = vpop.f32.mrb[183].mxu1  ;;  %v2455_v8 = vmax.f32 %v2439_v63, 0.0  ;;  %v5247_v63 = vld [vmem:[#allocation5 + $0x28] sm:$0xff]   ;;  %v5251_v38 = vld [vmem:[#allocation5 + $0x30] sm:$0xff]  }
 0xef2   :  { %v2456_v35 = vmax.f32 %v2440_v32, 0.0  ;;  %v5255_v32 = vld [vmem:[#allocation5 + $0x38] sm:$0xff]  }
 0xef4   :  { %v2466_v13 = vpack.c.bf16 %v2456_v35, %v2455_v8 }
 0xef5   :  { %v2410_v52 = vpop.f32.mrb[184].mxu1 }
 0xef6   :  { %v2441_v46 = vadd.f32 %v5169_v62, %v2410_v52  ;;  %v5210_v17 = vpop.f32.mrb[185].mxu1  ;;  %3918 = vmatmul.mubr.bf16.gmra.mrb[112].mxu0 %v2466_v13 }
 0xef7   :  { %v2414_v22 = vpop.f32.mrb[186].mxu1 }
 0xef8   :  { %v2442_v21 = vadd.f32 %v5169_v62, %v2414_v22  ;;  %v5213_v25 = vpop.f32.mrb[187].mxu1  ;;  %v2457_v60 = vmax.f32 %v2441_v46, 0.0 }
 0xefa   :  { %v2458_v6 = vmax.f32 %v2442_v21, 0.0 }
 0xefc   :  { %v2467_v55 = vpack.c.bf16 %v2458_v6, %v2457_v60 }
 0xefd   :  { %v2420_v20 = vpop.f32.mrb[188].mxu1 }
 0xefe   :  { %v2443_v34 = vadd.f32 %v5169_v62, %v2420_v20  ;;  %v5216_v10 = vpop.f32.mrb[189].mxu1  ;;  %3921 = vmatprep.mubr.bf16.mxu0 %v2467_v55 }
 0xeff   :  { %v2424_v48 = vpop.f32.mrb[190].mxu1 }
 0xf00   :  { %v2444_v59 = vadd.f32 %v5169_v62, %v2424_v48  ;;  %v5219_v56 = vpop.f32.mrb[191].mxu1  ;;  %v2459_v61 = vmax.f32 %v2443_v34, 0.0 }
 0xf02   :  { %v2460_v41 = vmax.f32 %v2444_v59, 0.0 }
 0xf04   :  { %v2468_v51 = vpack.c.bf16 %v2460_v41, %v2459_v61 }
 0xf06   :  { %3922 = vmatmul.mubr.bf16.gmra.mrb[116].mxu0 %v2468_v51 }
 0xf07   :  { %3927 = vmatprep.mubr.msk.bf16.mxu0 %vm4127_vm0, %v4126_v0 }
 0xf0e   :  { %3928 = vmatmul.mubr.msk.bf16.vlgmr.msra.gmra.mrb[120].mxu0 %vm108_vm2, %v5226_v19 }
 0xf0f   :  { %3932 = vmatpush3.bf16.msra.mxu0 %v5048_v36 }
 0xf10   :  { %3933 = vmatprep.subr.bf16.mxu0 %v5231_v45 }
 0xf13   :  { %3934 = vmatpush3.bf16.msra.mxu0 %v5231_v45 }
 0xf14   :  { %3935 = vmatprep.subr.bf16.mxu0 %v5235_v30 }
 0xf17   :  { %3936 = vmatpush3.bf16.msra.mxu0 %v5235_v30 }
 0xf18   :  { %3937 = vmatprep.subr.bf16.mxu0 %v5239_v54 }
 0xf1b   :  { %3938 = vmatpush3.bf16.msra.mxu0 %v5239_v54 }
 0xf1c   :  { %3939 = vmatprep.subr.bf16.mxu0 %v5243_v58 }
 0xf1f   :  { %3940 = vmatpush3.bf16.msra.mxu0 %v5243_v58 }
 0xf20   :  { %3941 = vmatprep.subr.bf16.mxu0 %v5247_v63 }
 0xf23   :  { %3942 = vmatpush3.bf16.msra.mxu0 %v5247_v63 }
 0xf24   :  { %3943 = vmatprep.subr.bf16.mxu0 %v5251_v38 }
 0xf27   :  { %3944 = vmatpush3.bf16.msra.mxu0 %v5251_v38 }
 0xf28   :  { %3945 = vmatprep.subr.bf16.mxu0 %v5255_v32 }
 0xf2b   :  { %3946 = vmatpush3.bf16.msra.mxu0 %v5255_v32 }
 0xf2c   :  { %3963 = vmatprep.subr.bf16.mxu0 %v4126_v0 }
 0xfa9   :  { %v3911_v8 = vpop.f32.mrb[104].mxu0 }
 0xfaa   :  { %v2512_v35 = vadd.f32 %v3911_v8, %v5178_v2  ;;  %v2503_v13 = vpop.f32.mrb[105].mxu0 }
 0xfab   :  { %v2504_v52 = vadd.f32 %v2503_v13, %v5172_v33  ;;  %v3912_v46 = vpop.f32.mrb[106].mxu0 }
 0xfac   :  { %v2568_v22 = vadd.f32 %v4898_v49, %v2512_v35  ;;  %v2515_v21 = vadd.f32 %v3912_v46, %v5181_v47  ;;  %v2506_v60 = vpop.f32.mrb[107].mxu0 }
 0xfad   :  { %v2566_v6 = vadd.f32 %v4898_v49, %v2504_v52  ;;  %v2507_v55 = vadd.f32 %v2506_v60, %v5175_v39 }
 0xfae   :  { %v2584_v20 = vmax.f32 %v2568_v22, 0.0  ;;  %v2569_v34 = vadd.f32 %v4898_v49, %v2515_v21 }
 0xfaf   :  { %v2582_v48 = vmax.f32 %v2566_v6, 0.0  ;;  %v2567_v59 = vadd.f32 %v4898_v49, %v2507_v55 }
 0xfb0   :  { %v5269_v2 = vmax.f32 %v5075_v27, %v2584_v20  ;;  %v2585_v33 = vmax.f32 %v2569_v34, 0.0 }
 0xfb1   :  { %v5272_v61 = vmax.f32 %v5078_v15, %v2582_v48  ;;  %v2583_v41 = vmax.f32 %v2567_v59, 0.0 }
 0xfb2   :  { %v5275_v47 = vmax.f32 %v5081_v37, %v2585_v33 }
 0xfb3   :  { %v5278_v51 = vmax.f32 %v5084_v5, %v2583_v41 }
 0xfb9   :  { %v3915_v39 = vpop.f32.mrb[108].mxu0 }
 0xfba   :  { %v2528_v8 = vadd.f32 %v3915_v39, %v5192_v24  ;;  %v2519_v35 = vpop.f32.mrb[109].mxu0 }
 0xfbb   :  { %v2520_v13 = vadd.f32 %v2519_v35, %v5185_v50  ;;  %v3916_v52 = vpop.f32.mrb[110].mxu0 }
 0xfbc   :  { %v2572_v27 = vadd.f32 %v4898_v49, %v2528_v8  ;;  %v2531_v46 = vadd.f32 %v3916_v52, %v5195_v31  ;;  %v2522_v15 = vpop.f32.mrb[111].mxu0 }
 0xfbd   :  { %v2570_v22 = vadd.f32 %v4898_v49, %v2520_v13  ;;  %v2523_v37 = vadd.f32 %v2522_v15, %v5188_v28 }
 0xfbe   :  { %v2588_v21 = vmax.f32 %v2572_v27, 0.0  ;;  %v2573_v5 = vadd.f32 %v4898_v49, %v2531_v46 }
 0xfbf   :  { %v2586_v60 = vmax.f32 %v2570_v22, 0.0  ;;  %v2571_v6 = vadd.f32 %v4898_v49, %v2523_v37 }
 0xfc0   :  { %v5289_v24 = vmax.f32 %v5095_v12, %v2588_v21  ;;  %v2589_v50 = vmax.f32 %v2573_v5, 0.0 }
 0xfc1   :  { %v5292_v55 = vmax.f32 %v5098_v3, %v2586_v60  ;;  %v2587_v20 = vmax.f32 %v2571_v6, 0.0 }
 0xfc2   :  { %v5295_v31 = vmax.f32 %v5101_v53, %v2589_v50 }
 0xfc3   :  { %v5298_v34 = vmax.f32 %v5104_v43, %v2587_v20 }
 0xfc9   :  { %v3919_v28 = vpop.f32.mrb[112].mxu0 }
 0xfca   :  { %v2544_v48 = vadd.f32 %v3919_v28, %v5204_v23  ;;  %v2535_v59 = vpop.f32.mrb[113].mxu0 }
 0xfcb   :  { %v2536_v33 = vadd.f32 %v2535_v59, %v5198_v44  ;;  %v3920_v41 = vpop.f32.mrb[114].mxu0 }
 0xfcc   :  { %v2576_v12 = vadd.f32 %v4898_v49, %v2544_v48  ;;  %v2547_v39 = vadd.f32 %v3920_v41, %v5207_v29  ;;  %v2538_v3 = vpop.f32.mrb[115].mxu0 }
 0xfcd   :  { %v2574_v8 = vadd.f32 %v4898_v49, %v2536_v33  ;;  %v2539_v53 = vadd.f32 %v2538_v3, %v5201_v42 }
 0xfce   :  { %v2592_v35 = vmax.f32 %v2576_v12, 0.0  ;;  %v2577_v43 = vadd.f32 %v4898_v49, %v2547_v39 }
 0xfcf   :  { %v2590_v13 = vmax.f32 %v2574_v8, 0.0  ;;  %v2575_v52 = vadd.f32 %v4898_v49, %v2539_v53 }
 0xfd0   :  { %v5309_v23 = vmax.f32 %v5115_v9, %v2592_v35  ;;  %v2593_v44 = vmax.f32 %v2577_v43, 0.0  ;;  %v5325_v9 = vld [vmem:[%s5643_s6] ss:$0 sm:$0xff] }
 0xfd1   :  { %v5312_v27 = vmax.f32 %v5118_v26, %v2590_v13  ;;  %v2591_v46 = vmax.f32 %v2575_v52, 0.0 }
 0xfd2   :  { %v5315_v29 = vmax.f32 %v5121_v18, %v2593_v44 }
 0xfd3   :  { %v5318_v15 = vmax.f32 %v5124_v14, %v2591_v46 }
 0xfd9   :  { %v3923_v42 = vpop.f32.mrb[116].mxu0 }
 0xfda   :  { %v2560_v22 = vadd.f32 %v3923_v42, %v5216_v10  ;;  %v2551_v37 = vpop.f32.mrb[117].mxu0 }
 0xfdb   :  { %v2552_v49 = vadd.f32 %v2551_v37, %v5210_v17  ;;  %v3924_v21 = vpop.f32.mrb[118].mxu0 }
 0xfdc   :  { %v2580_v26 = vadd.f32 %v5325_v9, %v2560_v22  ;;  %v2563_v18 = vadd.f32 %v3924_v21, %v5219_v56  ;;  %v2554_v5 = vpop.f32.mrb[119].mxu0 }
 0xfdd   :  { %v2578_v14 = vadd.f32 %v5325_v9, %v2552_v49  ;;  %v2555_v60 = vadd.f32 %v2554_v5, %v5213_v25 }
 0xfde   :  { %v2596_v6 = vmax.f32 %v2580_v26, 0.0  ;;  %v2581_v10 = vadd.f32 %v5325_v9, %v2563_v18 }
 0xfdf   :  { %v2594_v50 = vmax.f32 %v2578_v14, 0.0  ;;  %v2579_v17 = vadd.f32 %v5325_v9, %v2555_v60 }
 0xfe0   :  { %v5334_v20 = vmax.f32 %v5135_v40, %v2596_v6  ;;  %v2597_v28 = vmax.f32 %v2581_v10, 0.0 }
 0xfe1   :  { %v5337_v48 = vmax.f32 %v5138_v4, %v2594_v50  ;;  %v2595_v59 = vmax.f32 %v2579_v17, 0.0  ;;  %v2653_v56 = vpop.f32.mrb[120].mxu0 }
 0xfe2   :  { %v5340_v33 = vmax.f32 %v5141_v57, %v2597_v28  ;;  %v2654_v25 = vadd.f32 %v2653_v56, %v4215_v7  ;;  %v3929_v41 = vpop.f32.mrb[121].mxu0 }
 0xfe3   :  { %v5344_v12 = vmax.f32 %v5145_v16, %v2595_v59  ;;  %v2656_v39 = vpop.f32.mrb[122].mxu0  ;;  %v4048_v16 = vld [vmem:[%s5640_s3] ss:$8 sps:$4 sm:$0xff]  }
 0xfe4   :  { %v2660_v3 = vmax.f32 %v2654_v25, 0.0  ;;  %v2657_v40 = vadd.f32 %v2656_v39, %v4218_v11  ;;  %v3930_v8 = vpop.f32.mrb[123].mxu0 }
 0xfe6   :  { %2662 = vxpose.xlu1.b32.start [1/2] (short) %v2660_v3, 128  ;;  %v2661_v53 = vmax.f32 %v2657_v40, 0.0 }
 0xfea   :  { %2663 = vxpose.xlu1.b32.end [2/2] (short) %v2661_v53, 128 }
0x1066   :  { %v2678_v4 = vpop.trf.xlu1 }
0x106a   :  { %v2679_v35 = vpop.trf.xlu1 }
0x106b   :  { %v2694_v43 = vpack.c.bf16 %v2679_v35, %v2678_v4 }
0x106d   :  { %3536 = vmatmul.mubr.msk.bf16.vlgmr.msra.gmra.mrb[192].mxu1 %vm209_vm3, %v2694_v43 }
0x106e   :  { %v2680_v57 = vpop.trf.xlu1  ;;  %2768 = vmatprep.mubr.bf16.mxu1 %v4128_v1  ;;  %3137 = vmatpush1.bf16.msra.mxu1 %v4048_v16 }
0x1072   :  { %v2681_v13 = vpop.trf.xlu1 }
0x1073   :  { %v2695_v52 = vpack.c.bf16 %v2681_v13, %v2680_v57 }
0x1075   :  { %3537 = vmatmul.mubr.msk.bf16.gmra.mrb[196].mxu1 %vm209_vm3, %v2695_v52 }
0x1076   :  { %v2682_v44 = vpop.trf.xlu1  ;;  %2778 = vmatprep.mubr.bf16.mxu1 %v4128_v1 }
0x107a   :  { %v2683_v46 = vpop.trf.xlu1 }
0x107b   :  { %v2696_v42 = vpack.c.bf16 %v2683_v46, %v2682_v44  ;;  %v3025_v44 = vld [vmem:[#allocation2 + $0x1c] sm:$0xf] }
0x107d   :  { %3538 = vmatmul.mubr.msk.bf16.gmra.mrb[200].mxu1 %vm209_vm3, %v2696_v42 }
0x107e   :  { %v2684_v22 = vpop.trf.xlu1  ;;  %2788 = vmatprep.mubr.bf16.mxu1 %v4128_v1 }
0x1082   :  { %v2685_v37 = vpop.trf.xlu1 }
0x1083   :  { %v2697_v49 = vpack.c.bf16 %v2685_v37, %v2684_v22  ;;  %v3027_v37 = vsel %vm112_vm1, %v3025_v44, 0 }
0x1085   :  { %3539 = vmatmul.mubr.msk.bf16.gmra.mrb[204].mxu1 %vm209_vm3, %v2697_v49 }
0x1086   :  { %v2686_v21 = vpop.trf.xlu1  ;;  %2798 = vmatprep.mubr.bf16.mxu1 %v4128_v1 }
0x108a   :  { %v2687_v26 = vpop.trf.xlu1 }
0x108b   :  { %v2698_v18 = vpack.c.bf16 %v2687_v26, %v2686_v21 }
0x108d   :  { %3540 = vmatmul.mubr.msk.bf16.gmra.mrb[208].mxu1 %vm209_vm3, %v2698_v18 }
0x108e   :  { %v2688_v5 = vpop.trf.xlu1  ;;  %2808 = vmatprep.mubr.bf16.mxu1 %v4128_v1 }
0x1092   :  { %v2689_v14 = vpop.trf.xlu1 }
0x1093   :  { %v2699_v60 = vpack.c.bf16 %v2689_v14, %v2688_v5 }
0x1095   :  { %3541 = vmatmul.mubr.msk.bf16.gmra.mrb[212].mxu1 %vm209_vm3, %v2699_v60 }
0x1096   :  { %v2690_v6 = vpop.trf.xlu1  ;;  %2818 = vmatprep.mubr.bf16.mxu1 %v4128_v1 }
0x109a   :  { %v2691_v10 = vpop.trf.xlu1 }
0x109b   :  { %v2700_v50 = vpack.c.bf16 %v2691_v10, %v2690_v6 }
0x109d   :  { %3542 = vmatmul.mubr.msk.bf16.gmra.mrb[216].mxu1 %vm209_vm3, %v2700_v50 }
0x109e   :  { %v2692_v17 = vpop.trf.xlu1  ;;  %2828 = vmatprep.mubr.bf16.mxu1 %v4128_v1 }
0x10a2   :  { %v2693_v28 = vpop.trf.xlu1 }
0x10a3   :  { %v2701_v59 = vpack.c.bf16 %v2693_v28, %v2692_v17 }
0x10a5   :  { %3543 = vmatmul.mubr.msk.bf16.gmra.mrb[220].mxu1 %vm209_vm3, %v2701_v59 }
0x10a6   :  { %3168 = vmatprep.mubr.bf16.mxu1 %v4128_v1 }
0x1140   :  { %v2760_v56 = vpop.f32.mrb[192].mxu1 }
0x1141   :  { %v2839_v25 = vadd.f32 %v5169_v62, %v2760_v56  ;;  %v5367_v41 = vpop.f32.mrb[193].mxu1 }
0x1142   :  { %v2764_v39 = vpop.f32.mrb[194].mxu1 }
0x1143   :  { %v2840_v3 = vadd.f32 %v5169_v62, %v2764_v39  ;;  %v5370_v40 = vpop.f32.mrb[195].mxu1  ;;  %v2855_v8 = vmax.f32 %v2839_v25, 0.0 }
0x1145   :  { %v2856_v53 = vmax.f32 %v2840_v3, 0.0 }
0x1147   :  { %v2871_v4 = vpack.c.bf16 %v2856_v53, %v2855_v8 }
0x1148   :  { %v2770_v35 = vpop.f32.mrb[196].mxu1 }
0x1149   :  { %v2841_v43 = vadd.f32 %v5169_v62, %v2770_v35  ;;  %v5373_v57 = vpop.f32.mrb[197].mxu1  ;;  %3947 = vmatprep.mubr.bf16.mxu0 %v2871_v4 }
0x114a   :  { %v2774_v16 = vpop.f32.mrb[198].mxu1 }
0x114b   :  { %v2842_v13 = vadd.f32 %v5169_v62, %v2774_v16  ;;  %v5376_v52 = vpop.f32.mrb[199].mxu1  ;;  %v2857_v46 = vmax.f32 %v2841_v43, 0.0 }
0x114d   :  { %v2858_v42 = vmax.f32 %v2842_v13, 0.0 }
0x114f   :  { %v2872_v22 = vpack.c.bf16 %v2858_v42, %v2857_v46 }
0x1150   :  { %v2780_v49 = vpop.f32.mrb[200].mxu1 }
0x1151   :  { %v2843_v21 = vadd.f32 %v5169_v62, %v2780_v49  ;;  %v5380_v26 = vpop.f32.mrb[201].mxu1  ;;  %3948 = vmatmul.mubr.bf16.vlgmr.msra.gmra.mrb[124].mxu0 %v2872_v22 }
0x1152   :  { %v2784_v18 = vpop.f32.mrb[202].mxu1  ;;  %3964 = vmatpush3.bf16.msra.mxu0 %v3027_v37 }
0x1153   :  { %v2844_v5 = vadd.f32 %v5169_v62, %v2784_v18  ;;  %v5383_v14 = vpop.f32.mrb[203].mxu1  ;;  %3969 = vmatprep.subr.bf16.mxu0 %v5048_v36  ;;  %v2859_v60 = vmax.f32 %v2843_v21, 0.0 }
0x1155   :  { %v2860_v6 = vmax.f32 %v2844_v5, 0.0 }
0x1157   :  { %v2873_v10 = vpack.c.bf16 %v2860_v6, %v2859_v60 }
0x1158   :  { %v2790_v50 = vpop.f32.mrb[204].mxu1 }
0x1159   :  { %v2845_v17 = vadd.f32 %v5169_v62, %v2790_v50  ;;  %v5387_v28 = vpop.f32.mrb[205].mxu1  ;;  %3951 = vmatprep.mubr.bf16.mxu0 %v2873_v10 }
0x115a   :  { %v2794_v59 = vpop.f32.mrb[206].mxu1 }
0x115b   :  { %v2846_v56 = vadd.f32 %v5169_v62, %v2794_v59  ;;  %v5390_v25 = vpop.f32.mrb[207].mxu1  ;;  %v2861_v39 = vmax.f32 %v2845_v17, 0.0 }
0x115d   :  { %v2862_v3 = vmax.f32 %v2846_v56, 0.0 }
0x115f   :  { %v2874_v8 = vpack.c.bf16 %v2862_v3, %v2861_v39 }
0x1160   :  { %v2800_v53 = vpop.f32.mrb[208].mxu1 }
0x1161   :  { %v2847_v4 = vadd.f32 %v5169_v62, %v2800_v53  ;;  %v5393_v35 = vpop.f32.mrb[209].mxu1  ;;  %3952 = vmatmul.mubr.bf16.gmra.mrb[128].mxu0 %v2874_v8 }
0x1162   :  { %v2804_v43 = vpop.f32.mrb[210].mxu1 }
0x1163   :  { %v2848_v16 = vadd.f32 %v5169_v62, %v2804_v43  ;;  %v5396_v13 = vpop.f32.mrb[211].mxu1  ;;  %v2863_v44 = vmax.f32 %v2847_v4, 0.0 }
0x1165   :  { %v2864_v46 = vmax.f32 %v2848_v16, 0.0 }
0x1167   :  { %v2875_v42 = vpack.c.bf16 %v2864_v46, %v2863_v44 }
0x1168   :  { %v2810_v22 = vpop.f32.mrb[212].mxu1 }
0x1169   :  { %v2849_v37 = vadd.f32 %v5169_v62, %v2810_v22  ;;  %v5399_v49 = vpop.f32.mrb[213].mxu1  ;;  %3955 = vmatprep.mubr.bf16.mxu0 %v2875_v42 }
0x116a   :  { %v2814_v21 = vpop.f32.mrb[214].mxu1 }
0x116b   :  { %v2850_v18 = vadd.f32 %v5169_v62, %v2814_v21  ;;  %v5402_v5 = vpop.f32.mrb[215].mxu1  ;;  %v2865_v60 = vmax.f32 %v2849_v37, 0.0 }
0x116d   :  { %v2866_v6 = vmax.f32 %v2850_v18, 0.0 }
0x116f   :  { %v2876_v10 = vpack.c.bf16 %v2866_v6, %v2865_v60 }
0x1170   :  { %v2820_v50 = vpop.f32.mrb[216].mxu1 }
0x1171   :  { %v2851_v17 = vadd.f32 %v5169_v62, %v2820_v50  ;;  %v5405_v59 = vpop.f32.mrb[217].mxu1  ;;  %3956 = vmatmul.mubr.bf16.gmra.mrb[132].mxu0 %v2876_v10 }
0x1172   :  { %v2824_v56 = vpop.f32.mrb[218].mxu1 }
0x1173   :  { %v2852_v39 = vadd.f32 %v5169_v62, %v2824_v56  ;;  %v5408_v3 = vpop.f32.mrb[219].mxu1  ;;  %v2867_v8 = vmax.f32 %v2851_v17, 0.0 }
0x1175   :  { %v2868_v53 = vmax.f32 %v2852_v39, 0.0 }
0x1177   :  { %v2877_v4 = vpack.c.bf16 %v2868_v53, %v2867_v8 }
0x1178   :  { %v2830_v43 = vpop.f32.mrb[220].mxu1 }
0x1179   :  { %v2853_v16 = vadd.f32 %v5169_v62, %v2830_v43  ;;  %v5411_v44 = vpop.f32.mrb[221].mxu1  ;;  %3959 = vmatprep.mubr.bf16.mxu0 %v2877_v4 }
0x117a   :  { %v2834_v46 = vpop.f32.mrb[222].mxu1 }
0x117b   :  { %v2854_v42 = vadd.f32 %v5169_v62, %v2834_v46  ;;  %v5414_v22 = vpop.f32.mrb[223].mxu1  ;;  %v2869_v37 = vmax.f32 %v2853_v16, 0.0 }
0x117d   :  { %v2870_v21 = vmax.f32 %v2854_v42, 0.0 }
0x117f   :  { %v2878_v18 = vpack.c.bf16 %v2870_v21, %v2869_v37 }
0x1181   :  { %3960 = vmatmul.mubr.bf16.gmra.mrb[136].mxu0 %v2878_v18 }
0x1182   :  { %3965 = vmatprep.mubr.msk.bf16.mxu0 %vm4127_vm0, %v4126_v0 }
0x1189   :  { %3966 = vmatmul.mubr.msk.bf16.vlgmr.msra.gmra.mrb[140].mxu0 %vm108_vm2, %v5226_v19 }
0x118a   :  { %3970 = vmatpush3.bf16.msra.mxu0 %v5048_v36 }
0x118b   :  { %3971 = vmatprep.subr.bf16.mxu0 %v5231_v45 }
0x118e   :  { %3972 = vmatpush3.bf16.msra.mxu0 %v5231_v45 }
0x118f   :  { %3973 = vmatprep.subr.bf16.mxu0 %v5235_v30 }
0x1192   :  { %3974 = vmatpush3.bf16.msra.mxu0 %v5235_v30 }
0x1193   :  { %3975 = vmatprep.subr.bf16.mxu0 %v5239_v54 }
0x1196   :  { %3976 = vmatpush3.bf16.msra.mxu0 %v5239_v54 }
0x1197   :  { %3977 = vmatprep.subr.bf16.mxu0 %v5243_v58 }
0x119a   :  { %3978 = vmatpush3.bf16.msra.mxu0 %v5243_v58 }
0x119b   :  { %3979 = vmatprep.subr.bf16.mxu0 %v5247_v63 }
0x119e   :  { %3980 = vmatpush3.bf16.msra.mxu0 %v5247_v63 }
0x119f   :  { %3981 = vmatprep.subr.bf16.mxu0 %v5251_v38 }
0x11a2   :  { %3982 = vmatpush3.bf16.msra.mxu0 %v5251_v38 }
0x11a3   :  { %3983 = vmatprep.subr.bf16.mxu0 %v5255_v32 }
0x11a6   :  { %3984 = vmatpush3.bf16.msra.mxu0 %v5255_v32 }
0x1224   :  { %v3949_v0 = vpop.f32.mrb[124].mxu0 }
0x1225   :  { %v2922_v36 = vadd.f32 %v3949_v0, %v5373_v57  ;;  %v2913_v19 = vpop.f32.mrb[125].mxu0 }
0x1226   :  { %v2914_v45 = vadd.f32 %v2913_v19, %v5367_v41  ;;  %v3950_v30 = vpop.f32.mrb[126].mxu0 }
0x1227   :  { %v2978_v54 = vadd.f32 %v5325_v9, %v2922_v36  ;;  %v2925_v58 = vadd.f32 %v3950_v30, %v5376_v52  ;;  %v2916_v63 = vpop.f32.mrb[127].mxu0 }
0x1228   :  { %v2976_v60 = vadd.f32 %v5325_v9, %v2914_v45  ;;  %v2917_v38 = vadd.f32 %v2916_v63, %v5370_v40 }
0x1229   :  { %v2994_v6 = vmax.f32 %v2978_v54, 0.0  ;;  %v2979_v10 = vadd.f32 %v5325_v9, %v2925_v58 }
0x122a   :  { %v2992_v32 = vmax.f32 %v2976_v60, 0.0  ;;  %v2977_v50 = vadd.f32 %v5325_v9, %v2917_v38 }
0x122b   :  { %v5444_v57 = vmax.f32 %v5269_v2, %v2994_v6  ;;  %v2995_v41 = vmax.f32 %v2979_v10, 0.0 }
0x122c   :  { %v5447_v17 = vmax.f32 %v5272_v61, %v2992_v32  ;;  %v2993_v56 = vmax.f32 %v2977_v50, 0.0 }
0x122d   :  { %v5450_v52 = vmax.f32 %v5275_v47, %v2995_v41 }
0x122e   :  { %v5453_v39 = vmax.f32 %v5278_v51, %v2993_v56 }
0x1234   :  { %v3953_v40 = vpop.f32.mrb[128].mxu0 }
0x1235   :  { %v2938_v8 = vadd.f32 %v3953_v40, %v5387_v28  ;;  %v2929_v53 = vpop.f32.mrb[129].mxu0 }
0x1236   :  { %v2930_v4 = vadd.f32 %v2929_v53, %v5380_v26  ;;  %v3954_v43 = vpop.f32.mrb[130].mxu0 }
0x1237   :  { %v2982_v2 = vadd.f32 %v5325_v9, %v2938_v8  ;;  %v2941_v16 = vadd.f32 %v3954_v43, %v5390_v25  ;;  %v2932_v61 = vpop.f32.mrb[131].mxu0 }
0x1238   :  { %v2980_v46 = vadd.f32 %v5325_v9, %v2930_v4  ;;  %v2933_v47 = vadd.f32 %v2932_v61, %v5383_v14 }
0x1239   :  { %v2998_v42 = vmax.f32 %v2982_v2, 0.0  ;;  %v2983_v51 = vadd.f32 %v5325_v9, %v2941_v16 }
0x123a   :  { %v2996_v37 = vmax.f32 %v2980_v46, 0.0  ;;  %v2981_v21 = vadd.f32 %v5325_v9, %v2933_v47 }
0x123b   :  { %v5464_v28 = vmax.f32 %v5289_v24, %v2998_v42  ;;  %v2999_v26 = vmax.f32 %v2983_v51, 0.0 }
0x123c   :  { %v5467_v18 = vmax.f32 %v5292_v55, %v2996_v37  ;;  %v2997_v0 = vmax.f32 %v2981_v21, 0.0 }
0x123d   :  { %v5470_v25 = vmax.f32 %v5295_v31, %v2999_v26 }
0x123e   :  { %v5473_v36 = vmax.f32 %v5298_v34, %v2997_v0 }
0x1244   :  { %v3957_v14 = vpop.f32.mrb[132].mxu0 }
0x1245   :  { %v2954_v19 = vadd.f32 %v3957_v14, %v5399_v49  ;;  %v2945_v45 = vpop.f32.mrb[133].mxu0 }
0x1246   :  { %v2946_v30 = vadd.f32 %v2945_v45, %v5393_v35  ;;  %v3958_v54 = vpop.f32.mrb[134].mxu0 }
0x1247   :  { %v2986_v24 = vadd.f32 %v5325_v9, %v2954_v19  ;;  %v2957_v58 = vadd.f32 %v3958_v54, %v5402_v5  ;;  %v2948_v55 = vpop.f32.mrb[135].mxu0 }
0x1248   :  { %v2984_v63 = vadd.f32 %v5325_v9, %v2946_v30  ;;  %v2949_v31 = vadd.f32 %v2948_v55, %v5396_v13 }
0x1249   :  { %v3002_v60 = vmax.f32 %v2986_v24, 0.0  ;;  %v2987_v34 = vadd.f32 %v5325_v9, %v2957_v58 }
0x124a   :  { %v3000_v38 = vmax.f32 %v2984_v63, 0.0  ;;  %v2985_v6 = vadd.f32 %v5325_v9, %v2949_v31 }
0x124b   :  { %v5484_v49 = vmax.f32 %v5309_v23, %v3002_v60  ;;  %v3003_v35 = vmax.f32 %v2987_v34, 0.0 }
0x124c   :  { %v5487_v10 = vmax.f32 %v5312_v27, %v3000_v38  ;;  %v3001_v32 = vmax.f32 %v2985_v6, 0.0 }
0x124d   :  { %v5490_v5 = vmax.f32 %v5315_v29, %v3003_v35 }
0x124e   :  { %v5493_v50 = vmax.f32 %v5318_v15, %v3001_v32 }
0x1254   :  { %v3961_v13 = vpop.f32.mrb[136].mxu0 }
0x1255   :  { %v2970_v41 = vadd.f32 %v3961_v13, %v5411_v44  ;;  %v2961_v56 = vpop.f32.mrb[137].mxu0 }
0x1256   :  { %v2962_v40 = vadd.f32 %v2961_v56, %v5405_v59  ;;  %v3962_v8 = vpop.f32.mrb[138].mxu0 }
0x1257   :  { %v2990_v23 = vadd.f32 %v5325_v9, %v2970_v41  ;;  %v2973_v53 = vadd.f32 %v3962_v8, %v5414_v22  ;;  %v2964_v27 = vpop.f32.mrb[139].mxu0 }
0x1258   :  { %v2988_v4 = vadd.f32 %v5325_v9, %v2962_v40  ;;  %v2965_v29 = vadd.f32 %v2964_v27, %v5408_v3 }
0x1259   :  { %v3006_v43 = vmax.f32 %v2990_v23, 0.0  ;;  %v2991_v15 = vadd.f32 %v5325_v9, %v2973_v53 }
0x125a   :  { %v3004_v2 = vmax.f32 %v2988_v4, 0.0  ;;  %v2989_v16 = vadd.f32 %v5325_v9, %v2965_v29 }
0x125b   :  { %v5504_v44 = vmax.f32 %v5334_v20, %v3006_v43  ;;  %v3007_v59 = vmax.f32 %v2991_v15, 0.0 }
0x125c   :  { %v5507_v61 = vmax.f32 %v5337_v48, %v3004_v2  ;;  %v3005_v46 = vmax.f32 %v2989_v16, 0.0  ;;  %v3063_v22 = vpop.f32.mrb[140].mxu0 }
0x125d   :  { %v5510_v47 = vmax.f32 %v5340_v33, %v3007_v59  ;;  %v3064_v3 = vadd.f32 %v3063_v22, %v4215_v7  ;;  %v3967_v42 = vpop.f32.mrb[141].mxu0 }
0x125e   :  { %v5514_v51 = vmax.f32 %v5344_v12, %v3005_v46  ;;  %v3066_v37 = vpop.f32.mrb[142].mxu0 }
0x125f   :  { %v3070_v21 = vmax.f32 %v3064_v3, 0.0  ;;  %v3067_v20 = vadd.f32 %v3066_v37, %v4218_v11  ;;  %v3968_v26 = vpop.f32.mrb[143].mxu0 }
0x1261   :  { %3072 = vxpose.xlu0.b32.start [1/2] (short) %v3070_v21, 128  ;;  %v3071_v0 = vmax.f32 %v3067_v20, 0.0 }
0x1265   :  { %3073 = vxpose.xlu0.b32.end [2/2] (short) %v3071_v0, 128 }
0x12e1   :  { %v3088_v48 = vpop.trf.xlu0 }
0x12e5   :  { %v3089_v14 = vpop.trf.xlu0 }
0x12e6   :  { %v3104_v19 = vpack.c.bf16 %v3089_v14, %v3088_v48 }
0x12e8   :  { %3545 = vmatmul.mubr.msk.bf16.vlgmr.msra.gmra.mrb[224].mxu1 %vm209_vm3, %v3104_v19 }
0x12e9   :  { %v3090_v33 = vpop.trf.xlu0  ;;  %3178 = vmatprep.mubr.bf16.mxu1 %v4128_v1 }
0x12ed   :  { %v3091_v7 = vpop.trf.xlu0 }
0x12ee   :  { %v3105_v45 = vpack.c.bf16 %v3091_v7, %v3090_v33 }
0x12f0   :  { %3546 = vmatmul.mubr.msk.bf16.gmra.mrb[228].mxu1 %vm209_vm3, %v3105_v45 }
0x12f1   :  { %v3092_v12 = vpop.trf.xlu0  ;;  %3188 = vmatprep.mubr.bf16.mxu1 %v4128_v1 }
0x12f5   :  { %v3093_v11 = vpop.trf.xlu0 }
0x12f6   :  { %v3106_v30 = vpack.c.bf16 %v3093_v11, %v3092_v12 }
0x12f8   :  { %3547 = vmatmul.mubr.msk.bf16.gmra.mrb[232].mxu1 %vm209_vm3, %v3106_v30 }
0x12f9   :  { %v3094_v54 = vpop.trf.xlu0  ;;  %3198 = vmatprep.mubr.bf16.mxu1 %v4128_v1 }
0x12fd   :  { %v3095_v24 = vpop.trf.xlu0 }
0x12fe   :  { %v3107_v58 = vpack.c.bf16 %v3095_v24, %v3094_v54 }
0x1300   :  { %3548 = vmatmul.mubr.msk.bf16.gmra.mrb[236].mxu1 %vm209_vm3, %v3107_v58 }
0x1301   :  { %v3096_v55 = vpop.trf.xlu0  ;;  %3208 = vmatprep.mubr.bf16.mxu1 %v4128_v1 }
0x1305   :  { %v3097_v63 = vpop.trf.xlu0 }
0x1306   :  { %v3108_v31 = vpack.c.bf16 %v3097_v63, %v3096_v55 }
0x1308   :  { %3549 = vmatmul.mubr.msk.bf16.gmra.mrb[240].mxu1 %vm209_vm3, %v3108_v31 }
0x1309   :  { %v3098_v60 = vpop.trf.xlu0  ;;  %3218 = vmatprep.mubr.bf16.mxu1 %v4128_v1 }
0x130d   :  { %v3099_v34 = vpop.trf.xlu0 }
0x130e   :  { %v3109_v38 = vpack.c.bf16 %v3099_v34, %v3098_v60 }
0x1310   :  { %3550 = vmatmul.mubr.msk.bf16.gmra.mrb[244].mxu1 %vm209_vm3, %v3109_v38 }
0x1311   :  { %v3100_v6 = vpop.trf.xlu0  ;;  %3228 = vmatprep.mubr.bf16.mxu1 %v4128_v1 }
0x1315   :  { %v3101_v35 = vpop.trf.xlu0 }
0x1316   :  { %v3110_v32 = vpack.c.bf16 %v3101_v35, %v3100_v6 }
0x1318   :  { %3551 = vmatmul.mubr.msk.bf16.gmra.mrb[248].mxu1 %vm209_vm3, %v3110_v32 }
0x1319   :  { %v3102_v13 = vpop.trf.xlu0  ;;  %3238 = vmatprep.mubr.bf16.mxu1 %v4128_v1 }
0x131d   :  { %v3103_v41 = vpop.trf.xlu0 }
0x131e   :  { %v3111_v56 = vpack.c.bf16 %v3103_v41, %v3102_v13 }
0x1320   :  { %3552 = vmatmul.mubr.msk.bf16.gmra.mrb[252].mxu1 %vm209_vm3, %v3111_v56 }
0x13bb   :  { %v3170_v40 = vpop.f32.mrb[224].mxu1 }
0x13bc   :  { %v3249_v8 = vadd.f32 %v5169_v62, %v3170_v40  ;;  %v5533_v23 = vpop.f32.mrb[225].mxu1  ;;  %v4049_v40 = vld [vmem:[%s5641_s4] ss:$0 sm:$0xff]  ;;  %s4129_s4 = smov [#allocation7]  }
0x13bd   :  { %v3174_v53 = vpop.f32.mrb[226].mxu1  ;;  %s3455_s30 = sshll.u32 %s4129_s4, 4  ;;  %s3456_s30 = int_to_ptr.vmem [resolvable:$true] %s3455_s30 }
0x13be   :  { %v3250_v27 = vadd.f32 %v5169_v62, %v3174_v53  ;;  %v5536_v4 = vpop.f32.mrb[227].mxu1  ;;  %v3265_v29 = vmax.f32 %v3249_v8, 0.0  ;;  %s4094_s2 = scalar_lea.vmem %s3456_s30, 2048  ;;  %p4099_p3 = scmp.lt.s32.totalorder %s3456_s30, %s3456_s30 }
0x13bf   :  { %p4095_p2 = scmp.ne.s32.totalorder %s3456_s30, %s4094_s2  ;;  %p4100_p4 = scmp.lt.s32.totalorder %s4094_s2, %s4094_s2 }
0x13c0   :  { %v3266_v43 = vmax.f32 %v3250_v27, 0.0 }
0x13c1   :  { %p4101_p5 = por %p4100_p4, %p4099_p3 }
0x13c2   :  { %v3281_v15 = vpack.c.bf16 %v3266_v43, %v3265_v29 }
0x13c3   :  { %v3180_v2 = vpop.f32.mrb[228].mxu1  ;;  %p4102_p6 = pnand %p4101_p5, %p4095_p2 }
0x13c4   :  { %v3251_v1 = vadd.f32 %v5169_v62, %v3180_v2  ;;  %v5539_v16 = vpop.f32.mrb[229].mxu1  ;;  %3985 = vmatprep.mubr.bf16.mxu0 %v3281_v15 }
0x13c5   :  { %v3184_v59 = vpop.f32.mrb[230].mxu1 }
0x13c6   :  { %v3252_v46 = vadd.f32 %v5169_v62, %v3184_v59  ;;  %v5542_v22 = vpop.f32.mrb[231].mxu1  ;;  %v3267_v3 = vmax.f32 %v3251_v1, 0.0 }
0x13c8   :  { %v3268_v42 = vmax.f32 %v3252_v46, 0.0 }
0x13ca   :  { %v3282_v37 = vpack.c.bf16 %v3268_v42, %v3267_v3 }
0x13cb   :  { %v3190_v21 = vpop.f32.mrb[232].mxu1 }
0x13cc   :  { %v3253_v20 = vadd.f32 %v5169_v62, %v3190_v21  ;;  %v5545_v26 = vpop.f32.mrb[233].mxu1  ;;  %3986 = vmatmul.mubr.bf16.vlgmr.msra.gmra.mrb[144].mxu0 %v3282_v37 }
0x13cd   :  { %v3194_v0 = vpop.f32.mrb[234].mxu1 }
0x13ce   :  { %v3254_v48 = vadd.f32 %v5169_v62, %v3194_v0  ;;  %v5548_v14 = vpop.f32.mrb[235].mxu1  ;;  %v3269_v19 = vmax.f32 %v3253_v20, 0.0 }
0x13d0   :  { %v3270_v33 = vmax.f32 %v3254_v48, 0.0 }
0x13d2   :  { %v3283_v7 = vpack.c.bf16 %v3270_v33, %v3269_v19 }
0x13d3   :  { %v3200_v45 = vpop.f32.mrb[236].mxu1 }
0x13d4   :  { %v3255_v12 = vadd.f32 %v5169_v62, %v3200_v45  ;;  %v5551_v11 = vpop.f32.mrb[237].mxu1  ;;  %3989 = vmatprep.mubr.bf16.mxu0 %v3283_v7 }
0x13d5   :  { %v3204_v30 = vpop.f32.mrb[238].mxu1 }
0x13d6   :  { %v3256_v54 = vadd.f32 %v5169_v62, %v3204_v30  ;;  %v5554_v24 = vpop.f32.mrb[239].mxu1  ;;  %v3271_v58 = vmax.f32 %v3255_v12, 0.0 }
0x13d8   :  { %v3272_v55 = vmax.f32 %v3256_v54, 0.0 }
0x13da   :  { %v3284_v63 = vpack.c.bf16 %v3272_v55, %v3271_v58 }
0x13db   :  { %v3210_v31 = vpop.f32.mrb[240].mxu1 }
0x13dc   :  { %v3257_v60 = vadd.f32 %v5169_v62, %v3210_v31  ;;  %v5557_v34 = vpop.f32.mrb[241].mxu1  ;;  %3990 = vmatmul.mubr.bf16.gmra.mrb[148].mxu0 %v3284_v63 }
0x13dd   :  { %v3214_v38 = vpop.f32.mrb[242].mxu1 }
0x13de   :  { %v3258_v6 = vadd.f32 %v5169_v62, %v3214_v38  ;;  %v5560_v35 = vpop.f32.mrb[243].mxu1  ;;  %v3273_v32 = vmax.f32 %v3257_v60, 0.0 }
0x13e0   :  { %v3274_v13 = vmax.f32 %v3258_v6, 0.0 }
0x13e2   :  { %v3285_v41 = vpack.c.bf16 %v3274_v13, %v3273_v32 }
0x13e3   :  { %v3220_v56 = vpop.f32.mrb[244].mxu1 }
0x13e4   :  { %v3259_v8 = vadd.f32 %v4049_v40, %v3220_v56  ;;  %v5565_v53 = vpop.f32.mrb[245].mxu1  ;;  %3993 = vmatprep.mubr.bf16.mxu0 %v3285_v41 }
0x13e5   :  { %v3224_v27 = vpop.f32.mrb[246].mxu1 }
0x13e6   :  { %v3260_v29 = vadd.f32 %v4049_v40, %v3224_v27  ;;  %v5567_v43 = vpop.f32.mrb[247].mxu1  ;;  %v3275_v15 = vmax.f32 %v3259_v8, 0.0 }
0x13e8   :  { %v3276_v62 = vmax.f32 %v3260_v29, 0.0 }
0x13ea   :  { %v3286_v2 = vpack.c.bf16 %v3276_v62, %v3275_v15 }
0x13eb   :  { %v3230_v1 = vpop.f32.mrb[248].mxu1 }
0x13ec   :  { %v3261_v59 = vadd.f32 %v4049_v40, %v3230_v1  ;;  %v5569_v46 = vpop.f32.mrb[249].mxu1  ;;  %3994 = vmatmul.mubr.bf16.gmra.mrb[152].mxu0 %v3286_v2 }
0x13ed   :  { %v3234_v3 = vpop.f32.mrb[250].mxu1 }
0x13ee   :  { %v3262_v42 = vadd.f32 %v4049_v40, %v3234_v3  ;;  %v5571_v37 = vpop.f32.mrb[251].mxu1  ;;  %v3277_v21 = vmax.f32 %v3261_v59, 0.0 }
0x13f0   :  { %v3278_v20 = vmax.f32 %v3262_v42, 0.0 }
0x13f2   :  { %v3287_v0 = vpack.c.bf16 %v3278_v20, %v3277_v21 }
0x13f3   :  { %v3240_v48 = vpop.f32.mrb[252].mxu1 }
0x13f4   :  { %v3263_v19 = vadd.f32 %v4049_v40, %v3240_v48  ;;  %v5573_v33 = vpop.f32.mrb[253].mxu1  ;;  %3997 = vmatprep.mubr.bf16.mxu0 %v3287_v0 }
0x13f5   :  { %v3244_v7 = vpop.f32.mrb[254].mxu1 }
0x13f6   :  { %v3264_v45 = vadd.f32 %v4049_v40, %v3244_v7  ;;  %v5575_v12 = vpop.f32.mrb[255].mxu1  ;;  %v3279_v30 = vmax.f32 %v3263_v19, 0.0 }
0x13f8   :  { %v3280_v54 = vmax.f32 %v3264_v45, 0.0 }
0x13fa   :  { %v3288_v58 = vpack.c.bf16 %v3280_v54, %v3279_v30 }
0x13fc   :  { %3998 = vmatmul.mubr.bf16.gmra.mrb[156].mxu0 %v3288_v58 }
0x149f   :  { %v3987_v55 = vpop.f32.mrb[144].mxu0 }
0x14a0   :  { %v3332_v63 = vadd.f32 %v3987_v55, %v5539_v16  ;;  %v3323_v31 = vpop.f32.mrb[145].mxu0 }
0x14a1   :  { %v3324_v60 = vadd.f32 %v3323_v31, %v5533_v23  ;;  %v3988_v38 = vpop.f32.mrb[146].mxu0 }
0x14a2   :  { %v3388_v6 = vadd.f32 %v5325_v9, %v3332_v63  ;;  %v3335_v32 = vadd.f32 %v3988_v38, %v5542_v22  ;;  %v3326_v13 = vpop.f32.mrb[147].mxu0 }
0x14a3   :  { %v3386_v41 = vadd.f32 %v5325_v9, %v3324_v60  ;;  %v3327_v56 = vadd.f32 %v3326_v13, %v5536_v4 }
0x14a4   :  { %v3404_v40 = vmax.f32 %v3388_v6, 0.0  ;;  %v3389_v8 = vadd.f32 %v5325_v9, %v3335_v32 }
0x14a5   :  { %v3402_v27 = vmax.f32 %v3386_v41, 0.0  ;;  %v3387_v29 = vadd.f32 %v5325_v9, %v3327_v56 }
0x14a6   :  { %v3420_v16 = vmax.f32 %v5444_v57, %v3404_v40  ;;  %v3405_v15 = vmax.f32 %v3389_v8, 0.0 }
0x14a7   :  { %v3418_v23 = vmax.f32 %v5447_v17, %v3402_v27  ;;  %v3403_v62 = vmax.f32 %v3387_v29, 0.0 }
0x14a8   :  { %3436 = vst [vmem:[#allocation7 + $0x10] sm:$0xff] %v3420_v16  ;;  %v3421_v22 = vmax.f32 %v5450_v52, %v3405_v15 }
0x14a9   :  { %3434 = vst [vmem:[#allocation7] sm:$0xff] %v3418_v23  ;;  %v3419_v2 = vmax.f32 %v5453_v39, %v3403_v62 }
0x14aa   :  { %3437 = vst [vmem:[#allocation7 + $0x18] sm:$0xff] %v3421_v22 }
0x14ab   :  { %3435 = vst [vmem:[#allocation7 + $0x8] sm:$0xff] %v3419_v2 }
0x14af   :  { %v3991_v4 = vpop.f32.mrb[148].mxu0 }
0x14b0   :  { %v3348_v1 = vadd.f32 %v3991_v4, %v5551_v11  ;;  %v3339_v59 = vpop.f32.mrb[149].mxu0 }
0x14b1   :  { %v3340_v3 = vadd.f32 %v3339_v59, %v5545_v26  ;;  %v3992_v42 = vpop.f32.mrb[150].mxu0 }
0x14b2   :  { %v3392_v57 = vadd.f32 %v5325_v9, %v3348_v1  ;;  %v3351_v17 = vadd.f32 %v3992_v42, %v5554_v24  ;;  %v3342_v21 = vpop.f32.mrb[151].mxu0 }
0x14b3   :  { %v3390_v20 = vadd.f32 %v5325_v9, %v3340_v3  ;;  %v3343_v52 = vadd.f32 %v3342_v21, %v5548_v14 }
0x14b4   :  { %v3408_v0 = vmax.f32 %v3392_v57, 0.0  ;;  %v3393_v39 = vadd.f32 %v5325_v9, %v3351_v17 }
0x14b5   :  { %v3406_v48 = vmax.f32 %v3390_v20, 0.0  ;;  %v3391_v19 = vadd.f32 %v5325_v9, %v3343_v52 }
0x14b6   :  { %v3424_v11 = vmax.f32 %v5464_v28, %v3408_v0  ;;  %v3409_v7 = vmax.f32 %v3393_v39, 0.0 }
0x14b7   :  { %v3422_v26 = vmax.f32 %v5467_v18, %v3406_v48  ;;  %v3407_v45 = vmax.f32 %v3391_v19, 0.0 }
0x14b8   :  { %3440 = vst [vmem:[#allocation7 + $0x30] sm:$0xff] %v3424_v11  ;;  %v3425_v24 = vmax.f32 %v5470_v25, %v3409_v7 }
0x14b9   :  { %3438 = vst [vmem:[#allocation7 + $0x20] sm:$0xff] %v3422_v26  ;;  %v3423_v30 = vmax.f32 %v5473_v36, %v3407_v45 }
0x14ba   :  { %3441 = vst [vmem:[#allocation7 + $0x38] sm:$0xff] %v3425_v24 }
0x14bb   :  { %3439 = vst [vmem:[#allocation7 + $0x28] sm:$0xff] %v3423_v30 }
0x14bf   :  { %v3995_v14 = vpop.f32.mrb[152].mxu0 }
0x14c0   :  { %v3364_v54 = vadd.f32 %v3995_v14, %v5565_v53  ;;  %v3355_v58 = vpop.f32.mrb[153].mxu0 }
0x14c1   :  { %v3356_v55 = vadd.f32 %v3355_v58, %v5557_v34  ;;  %v3996_v63 = vpop.f32.mrb[154].mxu0 }
0x14c2   :  { %v3396_v28 = vadd.f32 %v5325_v9, %v3364_v54  ;;  %v3367_v18 = vadd.f32 %v3996_v63, %v5567_v43  ;;  %v3358_v31 = vpop.f32.mrb[155].mxu0 }
0x14c3   :  { %v3394_v60 = vadd.f32 %v5325_v9, %v3356_v55  ;;  %v3359_v25 = vadd.f32 %v3358_v31, %v5560_v35 }
0x14c4   :  { %v3412_v38 = vmax.f32 %v3396_v28, 0.0  ;;  %v3397_v36 = vadd.f32 %v5325_v9, %v3367_v18 }
0x14c5   :  { %v3410_v6 = vmax.f32 %v3394_v60, 0.0  ;;  %v3395_v32 = vadd.f32 %v5325_v9, %v3359_v25 }
0x14c6   :  { %v3428_v53 = vmax.f32 %v5484_v49, %v3412_v38  ;;  %v3413_v13 = vmax.f32 %v3397_v36, 0.0 }
0x14c7   :  { %v3426_v34 = vmax.f32 %v5487_v10, %v3410_v6  ;;  %v3411_v41 = vmax.f32 %v3395_v32, 0.0 }
0x14c8   :  { %3444 = vst [vmem:[#allocation7 + $0x50] sm:$0xff] %v3428_v53  ;;  %v3429_v43 = vmax.f32 %v5490_v5, %v3413_v13 }
0x14c9   :  { %3442 = vst [vmem:[#allocation7 + $0x40] sm:$0xff] %v3426_v34  ;;  %v3427_v56 = vmax.f32 %v5493_v50, %v3411_v41 }
0x14ca   :  { %3445 = vst [vmem:[#allocation7 + $0x58] sm:$0xff] %v3429_v43 }
0x14cb   :  { %3443 = vst [vmem:[#allocation7 + $0x48] sm:$0xff] %v3427_v56 }
0x14cf   :  { %v3999_v35 = vpop.f32.mrb[156].mxu0 }
0x14d0   :  { %v3380_v40 = vadd.f32 %v3999_v35, %v5573_v33  ;;  %v3371_v8 = vpop.f32.mrb[157].mxu0 }
0x14d1   :  { %v3372_v27 = vadd.f32 %v3371_v8, %v5569_v46  ;;  %v4000_v29 = vpop.f32.mrb[158].mxu0 }
0x14d2   :  { %v3400_v49 = vadd.f32 %v5325_v9, %v3380_v40  ;;  %v3383_v10 = vadd.f32 %v4000_v29, %v5575_v12  ;;  %v3374_v16 = vpop.f32.mrb[159].mxu0 }
0x14d3   :  { %v3398_v15 = vadd.f32 %v5325_v9, %v3372_v27  ;;  %v3375_v5 = vadd.f32 %v3374_v16, %v5571_v37 }
0x14d4   :  { %v3416_v23 = vmax.f32 %v3400_v49, 0.0  ;;  %v3401_v50 = vadd.f32 %v5325_v9, %v3383_v10 }
0x14d5   :  { %v3414_v62 = vmax.f32 %v3398_v15, 0.0  ;;  %v3399_v22 = vadd.f32 %v5325_v9, %v3375_v5 }
0x14d6   :  { %v3432_v46 = vmax.f32 %v5504_v44, %v3416_v23  ;;  %v3417_v33 = vmax.f32 %v3401_v50, 0.0 }
0x14d7   :  { %v3430_v2 = vmax.f32 %v5507_v61, %v3414_v62  ;;  %v3415_v4 = vmax.f32 %v3399_v22, 0.0 }
0x14d8   :  { %3448 = vst [vmem:[#allocation7 + $0x70] sm:$0xff] %v3432_v46  ;;  %v3433_v12 = vmax.f32 %v5510_v47, %v3417_v33 }
0x14d9   :  { %3446 = vst [vmem:[#allocation7 + $0x60] sm:$0xff] %v3430_v2  ;;  %v3431_v37 = vmax.f32 %v5514_v51, %v3415_v4 }
0x14da   :  { %3449 = vst [vmem:[#allocation7 + $0x78] sm:$0xff] %v3433_v12 }
0x14db   :  { %3447 = vst [vmem:[#allocation7 + $0x68] sm:$0xff] %v3431_v37 }
0x14dc   :  { %4105 = shalt.err (!%p4102_p6)
}
0x14dd   :  { %s4106_s10 = scalar_lea.hbm %s5644_s7, 2048 }
0x14de   :  { %p4107_p7 = scmp.ne.s32.totalorder %s5644_s7, %s4106_s10  ;;  %p4110_p8 = scmp.lt.u32.totalorder %s4106_s10, %s5644_s7 }
0x14e0   :  { %p4112_p9 = pnand %p4110_p8, %p4107_p7 }
0x14e2   :  { %4115 = shalt.err (!%p4112_p9)
}
0x14e3   :  { %s4130_s15 = smov 128   ;;  %s4131_s16 = smov 8  }
0x14e4   :  { %3461 = dma.vmem_to_hbm [thread:$0]  %s3456_s30, 2048, %s5644_s7, [#allocation4], %s4130_s15, %s4130_s15, %s4131_s16  }
0x14e5   :  { %4120 = dma.done.wait [#allocation4], 2048  }
0x14e6   :  { %4121 = vsyncadd [#allocation4], 4294965248 }
0x14e7   :  { %3465 = vsyncpa [#allocation3], 1 }
0x14e8   :  { %3466 = vsyncpa [#allocation6], 1 }
0x14e9   :  { %3467 = vsyncpa [#allocation4], 1 }

</bundles_post_ra>
